<compile_context>
chip_gen: v7x
topology: tpu7x:2x2x1
jax: 0.10.0
libtpu: 0.0.40
codegen_flags: <defaults>
</compile_context>

<pallas_src>
import functools

import jax
import jax.numpy as jnp
from jax import lax
from jax.experimental import pallas as pl
from jax.experimental.pallas import tpu as pltpu


def _choose_block_b(B, N, Nc, C, min_m=256, vmem_budget=24 << 20):
    """Batch elements folded per grid step (MXU- and VMEM-aware).

    Keep >= 2 grid steps (so both v7x TensorCores get work) only if each step
    still has M = block_b * N >= min_m rows; otherwise fold the whole batch
    into one step rather than starving the MXU and paying per-step overhead.
    """
    S = N + Nc

    def fits(d):
        scr = d * S * 4 * C * 2                    # bf16 qkv + out scratches
        io = 2 * 2 * d * S * C * 4                 # f32 in+out, double-buffered
        return scr + io <= vmem_budget

    cands = [d for d in range(1, B + 1)
             if B % d == 0 and B // d >= 2 and d * N >= min_m and fits(d)]
    if cands:
        return max(cands)                          # biggest fold that keeps 2 steps
    cands = [d for d in range(1, B + 1) if B % d == 0 and fits(d)]
    return max(cands) if cands else 1              # otherwise fold everything


def _vmem_limit_bytes(block_b, N, Nc, C, in_itemsize, single_buffer_weights):
    """Scoped-VMEM request derived from actual buffer sizes (default scoped
    limit is only 16 MiB on v5e / 32 MiB on v6e/v7x)."""
    S = N + Nc
    nbuf_w = 1 if single_buffer_weights else 2
    io = 2 * 2 * block_b * S * C * in_itemsize              # (in+out) x 2 bufs
    w = nbuf_w * (2 * C * 3 * C * 2 + 2 * C * C * 2 + 2 * C * 4)
    scr = block_b * S * 4 * C * 2                           # bf16 scratches
    need = io + w + scr
    # 2x headroom for compiler temporaries; clamp to a range that is safe on
    # v5e/v6e (128 MiB physical) and v7x (64 MiB physical).
    return int(min(max(2 * need, 32 << 20), 64 << 20))


def mhsa_kernel(num_heads, head_dim, n_x, n_c,
                x_ref, c_ref, wqkv_ref, wqkvc_ref,
                wp_ref, bp_ref, wpc_ref, bpc_ref,
                xo_ref, co_ref,
                qkv_scr, out_scr):
    C = num_heads * head_dim
    Bb = x_ref.shape[0]

    # --- fused qkv projections, batch folded into M (bf16 operands, f32 acc).
    # Softmax scale is already folded into the q columns of the weights. ---
    x2 = x_ref[...].reshape(Bb * n_x, C).astype(jnp.bfloat16)
    c2 = c_ref[...].reshape(Bb * n_c, C).astype(jnp.bfloat16)
    qkv = jnp.dot(x2, wqkv_ref[...], preferred_element_type=jnp.float32)
    qkvc = jnp.dot(c2, wqkvc_ref[...], preferred_element_type=jnp.float32)

    # Stage the concatenated (x, cond) sequence once in bf16; slice per head.
    qkv_scr[:, :n_x, :] = qkv.astype(jnp.bfloat16).reshape(Bb, n_x, 3 * C)
    qkv_scr[:, n_x:, :] = qkvc.astype(jnp.bfloat16).reshape(Bb, n_c, 3 * C)

    # --- per-head attention over the concatenated sequence ---
    # num_heads is small here so a trace-time unrolled loop is fine; switch to
    # lax.fori_loop(..., unroll=True) + pl.ds slices if num_heads grows > ~4.
    for h in range(num_heads):
        lo = h * head_dim
        q = qkv_scr[:, :, lo:lo + head_dim]                      # bf16 (Bb,S,hd)
        k = qkv_scr[:, :, C + lo:C + lo + head_dim]
        v = qkv_scr[:, :, 2 * C + lo:2 * C + lo + head_dim]

        s = jnp.einsum('bqd,bkd->bqk', q, k,
                       preferred_element_type=jnp.float32)       # (Bb,S,S) f32
        s = s - jnp.max(s, axis=-1, keepdims=True)
        p = jnp.exp(s)                                           # EUP
        p = p * pl.reciprocal(jnp.sum(p, axis=-1, keepdims=True), approx=True)
        o = jnp.einsum('bqk,bkd->bqd', p.astype(jnp.bfloat16), v,
                       preferred_element_type=jnp.float32)       # (Bb,S,hd)
        out_scr[:, :, lo:lo + head_dim] = o.astype(jnp.bfloat16)

    # --- output projections (batch folded into M again; bf16 operands) ---
    xa = out_scr[:, :n_x, :].reshape(Bb * n_x, C)
    ca = out_scr[:, n_x:, :].reshape(Bb * n_c, C)
    xo = jnp.dot(xa, wp_ref[...], preferred_element_type=jnp.float32) + bp_ref[...]
    co = jnp.dot(ca, wpc_ref[...], preferred_element_type=jnp.float32) + bpc_ref[...]
    xo_ref[...] = xo.reshape(Bb, n_x, C).astype(xo_ref.dtype)
    co_ref[...] = co.reshape(Bb, n_c, C).astype(co_ref.dtype)


def _build_mhsa_call(B, N, Nc, C, num_heads, head_dim, block_b,
                     x_dtype, cond_dtype, single_buffer_weights):
    S = N + Nc
    kernel = functools.partial(mhsa_kernel, num_heads, head_dim, N, Nc)

    # Grid-invariant weights/biases (index_map is constant) don't need
    # double-buffering; single-buffering halves their VMEM footprint, which
    # matters at production C on v7x (64 MiB VMEM).
    w_mode = dict(pipeline_mode=pl.Buffered(1)) if single_buffer_weights else {}

    grid_spec = pltpu.PrefetchScalarGridSpec(
        num_scalar_prefetch=0,
        grid=(B // block_b,),
        in_specs=[
            pl.BlockSpec((block_b, N, C), lambda b: (b, 0, 0)),          # x
            pl.BlockSpec((block_b, Nc, C), lambda b: (b, 0, 0)),         # cond
            pl.BlockSpec((C, 3 * C), lambda b: (0, 0), **w_mode),        # W_qkv^T
            pl.BlockSpec((C, 3 * C), lambda b: (0, 0), **w_mode),        # W_qkv_c^T
            pl.BlockSpec((C, C), lambda b: (0, 0), **w_mode),            # W_proj^T
            pl.BlockSpec((1, C), lambda b: (0, 0), **w_mode),            # b_proj
            pl.BlockSpec((C, C), lambda b: (0, 0), **w_mode),            # W_proj_c^T
            pl.BlockSpec((1, C), lambda b: (0, 0), **w_mode),            # b_proj_c
        ],
        out_specs=[
            pl.BlockSpec((block_b, N, C), lambda b: (b, 0, 0)),
            pl.BlockSpec((block_b, Nc, C), lambda b: (b, 0, 0)),
        ],
        scratch_shapes=[
            pltpu.VMEM((block_b, S, 3 * C), jnp.bfloat16),   # staged q|k|v (bf16)
            pltpu.VMEM((block_b, S, C), jnp.bfloat16),       # per-head outputs
        ],
    )

    vmem_limit = _vmem_limit_bytes(block_b, N, Nc, C,
                                   jnp.dtype(x_dtype).itemsize,
                                   single_buffer_weights)
    return pl.pallas_call(
        kernel,
        out_shape=(jax.ShapeDtypeStruct((B, N, C), x_dtype),
                   jax.ShapeDtypeStruct((B, Nc, C), cond_dtype)),
        grid_spec=grid_spec,
        compiler_params=pltpu.CompilerParams(
            dimension_semantics=("parallel",),
            vmem_limit_bytes=vmem_limit),
    )


def mhsa_forward(x, cond, params, num_heads):
    B, N, C = x.shape
    _, Nc, _ = cond.shape
    assert C % num_heads == 0
    head_dim = C // num_heads
    scale = head_dim ** -0.5
    wqkv, wqkv_c, wp, bp, wpc, bpc = params

    # One-time host-side layout prep: (out,in) -> (in,out), bf16 MXU operands,
    # f32 biases broadcastable as (1, C).  The softmax scale is folded into
    # the q columns (first C outputs) of the qkv weights.
    q_scale = jnp.concatenate([jnp.full((C,), scale, jnp.float32),
                               jnp.ones((2 * C,), jnp.float32)])
    wqkv_t = (jnp.asarray(wqkv, jnp.float32).T * q_scale).astype(jnp.bfloat16)
    wqkvc_t = (jnp.asarray(wqkv_c, jnp.float32).T * q_scale).astype(jnp.bfloat16)
    wp_t = jnp.asarray(wp, jnp.float32).T.astype(jnp.bfloat16)       # (C, C)
    wpc_t = jnp.asarray(wpc, jnp.float32).T.astype(jnp.bfloat16)     # (C, C)
    bp2 = jnp.asarray(bp, jnp.float32).reshape(1, C)
    bpc2 = jnp.asarray(bpc, jnp.float32).reshape(1, C)

    block_b = _choose_block_b(B, N, Nc, C)
    assert B % block_b == 0

    # NOTE: head_dim % 128 == 0 and N, Nc % 8 == 0 keep the per-head lane
    # slices and the x/cond row split tile-aligned; other values are still
    # correct but take masked/partial (slower) accesses.
    args = (x, cond, wqkv_t, wqkvc_t, wp_t, bp2, wpc_t, bpc2)
    try:
        fn = _build_mhsa_call(B, N, Nc, C, num_heads, head_dim, block_b,
                              x.dtype, cond.dtype, single_buffer_weights=True)
        return jax.block_until_ready(fn(*args))
    except Exception:
        # pl.Buffered(1) not supported by this jax/Mosaic build: fall back to
        # default (double-buffered) weight specs -- same result, more VMEM.
        fn = _build_mhsa_call(B, N, Nc, C, num_heads, head_dim, block_b,
                              x.dtype, cond.dtype, single_buffer_weights=False)
        return jax.block_until_ready(fn(*args))


def mhsa_reference(x, cond, params, num_heads):
    # Pure-JAX f32 transcription of the PyTorch forward (for verification).
    wqkv, wqkv_c, wp, bp, wpc, bpc = params
    B, N, C = x.shape
    _, Nc, _ = cond.shape
    hd = C // num_heads
    scale = hd ** -0.5
    hp = lax.Precision.HIGHEST

    qkv = jnp.einsum('bnc,oc->bno', x, wqkv, precision=hp)
    qkv = qkv.reshape(B, N, 3, num_heads, hd).transpose(2, 0, 3, 1, 4)
    q, k, v = qkv[0], qkv[1], qkv[2]
    qkvc = jnp.einsum('bnc,oc->bno', cond, wqkv_c, precision=hp)
    qkvc = qkvc.reshape(B, Nc, 3, num_heads, hd).transpose(2, 0, 3, 1, 4)
    qc, kc, vc = qkvc[0], qkvc[1], qkvc[2]

    q = jnp.concatenate([q, qc], axis=2) * scale
    k = jnp.concatenate([k, kc], axis=2)
    v = jnp.concatenate([v, vc], axis=2)

    attn = jnp.einsum('bhqd,bhkd->bhqk', q, k, precision=hp)
    attn = jax.nn.softmax(attn, axis=-1)
    out = jnp.einsum('bhqk,bhkd->bhqd', attn, v, precision=hp)
    out = out.transpose(0, 2, 1, 3).reshape(B, N + Nc, C)

    xo = jnp.einsum('bnc,oc->bno', out[:, :N], wp, precision=hp) + bp
    co = jnp.einsum('bnc,oc->bno', out[:, N:], wpc, precision=hp) + bpc
    return xo, co


if __name__ == "__main__":
    # Small, TPU-friendly shapes: head_dim = 128 (lane-aligned), C = 256.
    B, N, Nc = 2, 16, 8
    num_heads = 2
    C = num_heads * 128

    key = jax.random.PRNGKey(0)
    ks = jax.random.split(key, 8)
    x = jax.random.normal(ks[0], (B, N, C), jnp.float32)
    cond = jax.random.normal(ks[1], (B, Nc, C), jnp.float32)

    # Deterministic synthetic parameters (module __init__ shapes; qkv_bias=False).
    wqkv = jax.random.normal(ks[2], (3 * C, C), jnp.float32) * 0.05
    wqkv_c = jax.random.normal(ks[3], (3 * C, C), jnp.float32) * 0.05
    wp = jax.random.normal(ks[4], (C, C), jnp.float32) * 0.05
    bp = jax.random.normal(ks[5], (C,), jnp.float32) * 0.05
    wpc = jax.random.normal(ks[6], (C, C), jnp.float32) * 0.05
    bpc = jax.random.normal(ks[7], (C,), jnp.float32) * 0.05
    params = (wqkv, wqkv_c, wp, bp, wpc, bpc)

    xo, co = jax.block_until_ready(mhsa_forward(x, cond, params, num_heads))
    xr, cr = mhsa_reference(x, cond, params, num_heads)

    assert xo.shape == (B, N, C) and co.shape == (B, Nc, C)
    assert jnp.allclose(xo, xr, atol=5e-2, rtol=5e-2), "x output mismatch"
    assert jnp.allclose(co, cr, atol=5e-2, rtol=5e-2), "cond output mismatch"
    print("KERNEL_OK")
</pallas_src>

<mosaic_0001>
module attributes {stable_mosaic.version = 11 : i64} {
  func.func @mhsa_kernel(%arg0: i32, %arg1: memref<2x16x256xf32, #tpu.memory_space<vmem>>, %arg2: memref<2x8x256xf32, #tpu.memory_space<vmem>>, %arg3: memref<256x768xbf16, #tpu.memory_space<vmem>>, %arg4: memref<256x768xbf16, #tpu.memory_space<vmem>>, %arg5: memref<256x256xbf16, #tpu.memory_space<vmem>>, %arg6: memref<1x256xf32, #tpu.memory_space<vmem>>, %arg7: memref<256x256xbf16, #tpu.memory_space<vmem>>, %arg8: memref<1x256xf32, #tpu.memory_space<vmem>>, %arg9: memref<2x16x256xf32, #tpu.memory_space<vmem>>, %arg10: memref<2x8x256xf32, #tpu.memory_space<vmem>>, %arg11: memref<2x24x768xbf16, #tpu.memory_space<vmem>>, %arg12: memref<2x24x256xbf16, #tpu.memory_space<vmem>>) attributes {dimension_semantics = [#tpu.dimension_semantics<parallel>], iteration_bounds = array<i64: 1>, scalar_prefetch = 0 : i64, scratch_operands = 2 : i64, tpu.core_type = #tpu.core_type<tc>, window_params = [{transform_indices = @transform_0, window_bounds = array<i64: 2, 16, 256>}, {transform_indices = @transform_1, window_bounds = array<i64: 2, 8, 256>}, {pipeline_mode = #tpu.pipeline_mode<synchronous>, transform_indices = @transform_2, window_bounds = array<i64: 256, 768>}, {pipeline_mode = #tpu.pipeline_mode<synchronous>, transform_indices = @transform_3, window_bounds = array<i64: 256, 768>}, {pipeline_mode = #tpu.pipeline_mode<synchronous>, transform_indices = @transform_4, window_bounds = array<i64: 256, 256>}, {pipeline_mode = #tpu.pipeline_mode<synchronous>, transform_indices = @transform_5, window_bounds = array<i64: 1, 256>}, {pipeline_mode = #tpu.pipeline_mode<synchronous>, transform_indices = @transform_6, window_bounds = array<i64: 256, 256>}, {pipeline_mode = #tpu.pipeline_mode<synchronous>, transform_indices = @transform_7, window_bounds = array<i64: 1, 256>}, {transform_indices = @transform_8, window_bounds = array<i64: 2, 16, 256>}, {transform_indices = @transform_9, window_bounds = array<i64: 2, 8, 256>}]} {
    %c0 = arith.constant 0 : index
    %c0_0 = arith.constant 0 : index
    %c0_1 = arith.constant 0 : index
    %0 = vector.load %arg1[%c0, %c0_0, %c0_1] : memref<2x16x256xf32, #tpu.memory_space<vmem>>, vector<2x16x256xf32>
    %1 = vector.shape_cast %0 : vector<2x16x256xf32> to vector<32x256xf32>
    %2 = arith.truncf %1 : vector<32x256xf32> to vector<32x256xbf16>
    %c0_2 = arith.constant 0 : index
    %c0_3 = arith.constant 0 : index
    %c0_4 = arith.constant 0 : index
    %3 = vector.load %arg2[%c0_2, %c0_3, %c0_4] : memref<2x8x256xf32, #tpu.memory_space<vmem>>, vector<2x8x256xf32>
    %4 = vector.shape_cast %3 : vector<2x8x256xf32> to vector<16x256xf32>
    %5 = arith.truncf %4 : vector<16x256xf32> to vector<16x256xbf16>
    %c0_5 = arith.constant 0 : index
    %c0_6 = arith.constant 0 : index
    %6 = vector.load %arg3[%c0_5, %c0_6] : memref<256x768xbf16, #tpu.memory_space<vmem>>, vector<256x768xbf16>
    %cst = arith.constant dense<0.000000e+00> : vector<32x768xf32>
    %7 = tpu.matmul %2, %6, %cst {dimension_numbers = #tpu.dot_dimension_numbers<[1], [0], [0], [1], [0, 0, 1, 1], [], []>} : vector<32x256xbf16>, vector<256x768xbf16>, vector<32x768xf32> -> vector<32x768xf32>
    %c0_7 = arith.constant 0 : index
    %c0_8 = arith.constant 0 : index
    %8 = vector.load %arg4[%c0_7, %c0_8] : memref<256x768xbf16, #tpu.memory_space<vmem>>, vector<256x768xbf16>
    %cst_9 = arith.constant dense<0.000000e+00> : vector<16x768xf32>
    %9 = tpu.matmul %5, %8, %cst_9 {dimension_numbers = #tpu.dot_dimension_numbers<[1], [0], [0], [1], [0, 0, 1, 1], [], []>} : vector<16x256xbf16>, vector<256x768xbf16>, vector<16x768xf32> -> vector<16x768xf32>
    %10 = arith.truncf %7 : vector<32x768xf32> to vector<32x768xbf16>
    %11 = vector.shape_cast %10 : vector<32x768xbf16> to vector<2x16x768xbf16>
    %c0_10 = arith.constant 0 : index
    %c0_11 = arith.constant 0 : index
    %c0_12 = arith.constant 0 : index
    %12 = vector.load %arg11[%c0_10, %c0_11, %c0_12] : memref<2x24x768xbf16, #tpu.memory_space<vmem>>, vector<2x16x768xbf16>
    tpu.vector_store %arg11[%c0_10, %c0_11, %c0_12], %11 {strides = array<i32>} : memref<2x24x768xbf16, #tpu.memory_space<vmem>>, vector<2x16x768xbf16>,
    %13 = arith.truncf %9 : vector<16x768xf32> to vector<16x768xbf16>
    %14 = vector.shape_cast %13 : vector<16x768xbf16> to vector<2x8x768xbf16>
    %c0_13 = arith.constant 0 : index
    %c16 = arith.constant 16 : index
    %c0_14 = arith.constant 0 : index
    %15 = vector.load %arg11[%c0_13, %c16, %c0_14] : memref<2x24x768xbf16, #tpu.memory_space<vmem>>, vector<2x8x768xbf16>
    tpu.vector_store %arg11[%c0_13, %c16, %c0_14], %14 {strides = array<i32>} : memref<2x24x768xbf16, #tpu.memory_space<vmem>>, vector<2x8x768xbf16>,
    %c0_15 = arith.constant 0 : index
    %c0_16 = arith.constant 0 : index
    %c0_17 = arith.constant 0 : index
    %16 = vector.load %arg11[%c0_15, %c0_16, %c0_17] : memref<2x24x768xbf16, #tpu.memory_space<vmem>>, vector<2x24x128xbf16>
    %c0_18 = arith.constant 0 : index
    %c0_19 = arith.constant 0 : index
    %c256 = arith.constant 256 : index
    %17 = vector.load %arg11[%c0_18, %c0_19, %c256] : memref<2x24x768xbf16, #tpu.memory_space<vmem>>, vector<2x24x128xbf16>
    %c0_20 = arith.constant 0 : index
    %c0_21 = arith.constant 0 : index
    %c512 = arith.constant 512 : index
    %18 = vector.load %arg11[%c0_20, %c0_21, %c512] : memref<2x24x768xbf16, #tpu.memory_space<vmem>>, vector<2x24x128xbf16>
    "tpu.trace_start"() <{level = 10 : i32, message = "bqd,bkd->bqk"}> : () -> ()
    %cst_22 = arith.constant dense<0.000000e+00> : vector<2x24x24xf32>
    %19 = tpu.matmul %16, %17, %cst_22 {dimension_numbers = #tpu.dot_dimension_numbers<[2], [2], [1], [1], [0, 0, 0, 1, 1, 1], [0], [0]>} : vector<2x24x128xbf16>, vector<2x24x128xbf16>, vector<2x24x24xf32> -> vector<2x24x24xf32>
    "tpu.trace_stop"() : () -> ()
    %cst_23 = arith.constant dense<0xFF800000> : vector<2x24xf32>
    %20 = vector.multi_reduction <maximumf>, %19, %cst_23 [2] : vector<2x24x24xf32> to vector<2x24xf32>
    %21 = vector.shape_cast %20 : vector<2x24xf32> to vector<2x24x1xf32>
    %22 = vector.broadcast %21 : vector<2x24x1xf32> to vector<2x24x24xf32>
    %23 = arith.subf %19, %22 : vector<2x24x24xf32>
    %24 = math.exp %23 : vector<2x24x24xf32>
    %cst_24 = arith.constant dense<0.000000e+00> : vector<2x24xf32>
    %25 = vector.multi_reduction <add>, %24, %cst_24 [2] : vector<2x24x24xf32> to vector<2x24xf32>
    %26 = vector.shape_cast %25 : vector<2x24xf32> to vector<2x24x1xf32>
    %27 = tpu.reciprocal %26 {approx = true} : vector<2x24x1xf32> -> vector<2x24x1xf32>
    %28 = vector.broadcast %27 : vector<2x24x1xf32> to vector<2x24x24xf32>
    %29 = arith.mulf %24, %28 : vector<2x24x24xf32>
    %30 = arith.truncf %29 : vector<2x24x24xf32> to vector<2x24x24xbf16>
    "tpu.trace_start"() <{level = 10 : i32, message = "bqk,bkd->bqd"}> : () -> ()
    %cst_25 = arith.constant dense<0.000000e+00> : vector<2x24x128xf32>
    %31 = tpu.matmul %30, %18, %cst_25 {dimension_numbers = #tpu.dot_dimension_numbers<[2], [1], [1], [2], [0, 0, 0, 1, 1, 2], [0], [0]>} : vector<2x24x24xbf16>, vector<2x24x128xbf16>, vector<2x24x128xf32> -> vector<2x24x128xf32>
    "tpu.trace_stop"() : () -> ()
    %32 = arith.truncf %31 : vector<2x24x128xf32> to vector<2x24x128xbf16>
    %c0_26 = arith.constant 0 : index
    %c0_27 = arith.constant 0 : index
    %c0_28 = arith.constant 0 : index
    %33 = vector.load %arg12[%c0_26, %c0_27, %c0_28] : memref<2x24x256xbf16, #tpu.memory_space<vmem>>, vector<2x24x128xbf16>
    tpu.vector_store %arg12[%c0_26, %c0_27, %c0_28], %32 {strides = array<i32>} : memref<2x24x256xbf16, #tpu.memory_space<vmem>>, vector<2x24x128xbf16>,
    %c0_29 = arith.constant 0 : index
    %c0_30 = arith.constant 0 : index
    %c128 = arith.constant 128 : index
    %34 = vector.load %arg11[%c0_29, %c0_30, %c128] : memref<2x24x768xbf16, #tpu.memory_space<vmem>>, vector<2x24x128xbf16>
    %c0_31 = arith.constant 0 : index
    %c0_32 = arith.constant 0 : index
    %c384 = arith.constant 384 : index
    %35 = vector.load %arg11[%c0_31, %c0_32, %c384] : memref<2x24x768xbf16, #tpu.memory_space<vmem>>, vector<2x24x128xbf16>
    %c0_33 = arith.constant 0 : index
    %c0_34 = arith.constant 0 : index
    %c640 = arith.constant 640 : index
    %36 = vector.load %arg11[%c0_33, %c0_34, %c640] : memref<2x24x768xbf16, #tpu.memory_space<vmem>>, vector<2x24x128xbf16>
    "tpu.trace_start"() <{level = 10 : i32, message = "bqd,bkd->bqk"}> : () -> ()
    %cst_35 = arith.constant dense<0.000000e+00> : vector<2x24x24xf32>
    %37 = tpu.matmul %34, %35, %cst_35 {dimension_numbers = #tpu.dot_dimension_numbers<[2], [2], [1], [1], [0, 0, 0, 1, 1, 1], [0], [0]>} : vector<2x24x128xbf16>, vector<2x24x128xbf16>, vector<2x24x24xf32> -> vector<2x24x24xf32>
    "tpu.trace_stop"() : () -> ()
    %cst_36 = arith.constant dense<0xFF800000> : vector<2x24xf32>
    %38 = vector.multi_reduction <maximumf>, %37, %cst_36 [2] : vector<2x24x24xf32> to vector<2x24xf32>
    %39 = vector.shape_cast %38 : vector<2x24xf32> to vector<2x24x1xf32>
    %40 = vector.broadcast %39 : vector<2x24x1xf32> to vector<2x24x24xf32>
    %41 = arith.subf %37, %40 : vector<2x24x24xf32>
    %42 = math.exp %41 : vector<2x24x24xf32>
    %cst_37 = arith.constant dense<0.000000e+00> : vector<2x24xf32>
    %43 = vector.multi_reduction <add>, %42, %cst_37 [2] : vector<2x24x24xf32> to vector<2x24xf32>
    %44 = vector.shape_cast %43 : vector<2x24xf32> to vector<2x24x1xf32>
    %45 = tpu.reciprocal %44 {approx = true} : vector<2x24x1xf32> -> vector<2x24x1xf32>
    %46 = vector.broadcast %45 : vector<2x24x1xf32> to vector<2x24x24xf32>
    %47 = arith.mulf %42, %46 : vector<2x24x24xf32>
    %48 = arith.truncf %47 : vector<2x24x24xf32> to vector<2x24x24xbf16>
    "tpu.trace_start"() <{level = 10 : i32, message = "bqk,bkd->bqd"}> : () -> ()
    %cst_38 = arith.constant dense<0.000000e+00> : vector<2x24x128xf32>
    %49 = tpu.matmul %48, %36, %cst_38 {dimension_numbers = #tpu.dot_dimension_numbers<[2], [1], [1], [2], [0, 0, 0, 1, 1, 2], [0], [0]>} : vector<2x24x24xbf16>, vector<2x24x128xbf16>, vector<2x24x128xf32> -> vector<2x24x128xf32>
    "tpu.trace_stop"() : () -> ()
    %50 = arith.truncf %49 : vector<2x24x128xf32> to vector<2x24x128xbf16>
    %c0_39 = arith.constant 0 : index
    %c0_40 = arith.constant 0 : index
    %c128_41 = arith.constant 128 : index
    %51 = vector.load %arg12[%c0_39, %c0_40, %c128_41] : memref<2x24x256xbf16, #tpu.memory_space<vmem>>, vector<2x24x128xbf16>
    tpu.vector_store %arg12[%c0_39, %c0_40, %c128_41], %50 {strides = array<i32>} : memref<2x24x256xbf16, #tpu.memory_space<vmem>>, vector<2x24x128xbf16>,
    %c0_42 = arith.constant 0 : index
    %c0_43 = arith.constant 0 : index
    %c0_44 = arith.constant 0 : index
    %52 = vector.load %arg12[%c0_42, %c0_43, %c0_44] : memref<2x24x256xbf16, #tpu.memory_space<vmem>>, vector<2x16x256xbf16>
    %53 = vector.shape_cast %52 : vector<2x16x256xbf16> to vector<32x256xbf16>
    %c0_45 = arith.constant 0 : index
    %c16_46 = arith.constant 16 : index
    %c0_47 = arith.constant 0 : index
    %54 = vector.load %arg12[%c0_45, %c16_46, %c0_47] : memref<2x24x256xbf16, #tpu.memory_space<vmem>>, vector<2x8x256xbf16>
    %55 = vector.shape_cast %54 : vector<2x8x256xbf16> to vector<16x256xbf16>
    %c0_48 = arith.constant 0 : index
    %c0_49 = arith.constant 0 : index
    %56 = vector.load %arg5[%c0_48, %c0_49] : memref<256x256xbf16, #tpu.memory_space<vmem>>, vector<256x256xbf16>
    %cst_50 = arith.constant dense<0.000000e+00> : vector<32x256xf32>
    %57 = tpu.matmul %53, %56, %cst_50 {dimension_numbers = #tpu.dot_dimension_numbers<[1], [0], [0], [1], [0, 0, 1, 1], [], []>} : vector<32x256xbf16>, vector<256x256xbf16>, vector<32x256xf32> -> vector<32x256xf32>
    %c0_51 = arith.constant 0 : index
    %c0_52 = arith.constant 0 : index
    %58 = vector.load %arg6[%c0_51, %c0_52] : memref<1x256xf32, #tpu.memory_space<vmem>>, vector<1x256xf32>
    %59 = vector.broadcast %58 : vector<1x256xf32> to vector<32x256xf32>
    %60 = arith.addf %57, %59 : vector<32x256xf32>
    %c0_53 = arith.constant 0 : index
    %c0_54 = arith.constant 0 : index
    %61 = vector.load %arg7[%c0_53, %c0_54] : memref<256x256xbf16, #tpu.memory_space<vmem>>, vector<256x256xbf16>
    %cst_55 = arith.constant dense<0.000000e+00> : vector<16x256xf32>
    %62 = tpu.matmul %55, %61, %cst_55 {dimension_numbers = #tpu.dot_dimension_numbers<[1], [0], [0], [1], [0, 0, 1, 1], [], []>} : vector<16x256xbf16>, vector<256x256xbf16>, vector<16x256xf32> -> vector<16x256xf32>
    %c0_56 = arith.constant 0 : index
    %c0_57 = arith.constant 0 : index
    %63 = vector.load %arg8[%c0_56, %c0_57] : memref<1x256xf32, #tpu.memory_space<vmem>>, vector<1x256xf32>
    %64 = vector.broadcast %63 : vector<1x256xf32> to vector<16x256xf32>
    %65 = arith.addf %62, %64 : vector<16x256xf32>
    %66 = vector.shape_cast %60 : vector<32x256xf32> to vector<2x16x256xf32>
    %c0_58 = arith.constant 0 : index
    %c0_59 = arith.constant 0 : index
    %c0_60 = arith.constant 0 : index
    %67 = vector.load %arg9[%c0_58, %c0_59, %c0_60] : memref<2x16x256xf32, #tpu.memory_space<vmem>>, vector<2x16x256xf32>
    tpu.vector_store %arg9[%c0_58, %c0_59, %c0_60], %66 {strides = array<i32>} : memref<2x16x256xf32, #tpu.memory_space<vmem>>, vector<2x16x256xf32>,
    %68 = vector.shape_cast %65 : vector<16x256xf32> to vector<2x8x256xf32>
    %c0_61 = arith.constant 0 : index
    %c0_62 = arith.constant 0 : index
    %c0_63 = arith.constant 0 : index
    %69 = vector.load %arg10[%c0_61, %c0_62, %c0_63] : memref<2x8x256xf32, #tpu.memory_space<vmem>>, vector<2x8x256xf32>
    tpu.vector_store %arg10[%c0_61, %c0_62, %c0_63], %68 {strides = array<i32>} : memref<2x8x256xf32, #tpu.memory_space<vmem>>, vector<2x8x256xf32>,
    return
  }
  func.func @transform_0(%arg0: i32) -> (i32, i32, i32) {
    %c0_i32 = arith.constant 0 : i32
    %c0_i32_0 = arith.constant 0 : i32
    %c0_i32_1 = arith.constant 0 : i32
    return %arg0, %c0_i32, %c0_i32_0 : i32, i32, i32
  }
  func.func @transform_1(%arg0: i32) -> (i32, i32, i32) {
    %c0_i32 = arith.constant 0 : i32
    %c0_i32_0 = arith.constant 0 : i32
    %c0_i32_1 = arith.constant 0 : i32
    return %arg0, %c0_i32, %c0_i32_0 : i32, i32, i32
  }
  func.func @transform_2(%arg0: i32) -> (i32, i32) {
    %c0_i32 = arith.constant 0 : i32
    %c0_i32_0 = arith.constant 0 : i32
    %c0_i32_1 = arith.constant 0 : i32
    return %c0_i32, %c0_i32_0 : i32, i32
  }
  func.func @transform_3(%arg0: i32) -> (i32, i32) {
    %c0_i32 = arith.constant 0 : i32
    %c0_i32_0 = arith.constant 0 : i32
    %c0_i32_1 = arith.constant 0 : i32
    return %c0_i32, %c0_i32_0 : i32, i32
  }
  func.func @transform_4(%arg0: i32) -> (i32, i32) {
    %c0_i32 = arith.constant 0 : i32
    %c0_i32_0 = arith.constant 0 : i32
    %c0_i32_1 = arith.constant 0 : i32
    return %c0_i32, %c0_i32_0 : i32, i32
  }
  func.func @transform_5(%arg0: i32) -> (i32, i32) {
    %c0_i32 = arith.constant 0 : i32
    %c0_i32_0 = arith.constant 0 : i32
    %c0_i32_1 = arith.constant 0 : i32
    return %c0_i32, %c0_i32_0 : i32, i32
  }
  func.func @transform_6(%arg0: i32) -> (i32, i32) {
    %c0_i32 = arith.constant 0 : i32
    %c0_i32_0 = arith.constant 0 : i32
    %c0_i32_1 = arith.constant 0 : i32
    return %c0_i32, %c0_i32_0 : i32, i32
  }
  func.func @transform_7(%arg0: i32) -> (i32, i32) {
    %c0_i32 = arith.constant 0 : i32
    %c0_i32_0 = arith.constant 0 : i32
    %c0_i32_1 = arith.constant 0 : i32
    return %c0_i32, %c0_i32_0 : i32, i32
  }
  func.func @transform_8(%arg0: i32) -> (i32, i32, i32) {
    %c0_i32 = arith.constant 0 : i32
    %c0_i32_0 = arith.constant 0 : i32
    %c0_i32_1 = arith.constant 0 : i32
    return %arg0, %c0_i32, %c0_i32_0 : i32, i32, i32
  }
  func.func @transform_9(%arg0: i32) -> (i32, i32, i32) {
    %c0_i32 = arith.constant 0 : i32
    %c0_i32_0 = arith.constant 0 : i32
    %c0_i32_1 = arith.constant 0 : i32
    return %arg0, %c0_i32, %c0_i32_0 : i32, i32, i32
  }
}

module attributes {stable_mosaic.version = 11 : i64} {
  func.func @mhsa_kernel(%arg0: i32, %arg1: memref<2x16x256xf32, #tpu.memory_space<vmem>>, %arg2: memref<2x8x256xf32, #tpu.memory_space<vmem>>, %arg3: memref<256x768xbf16, #tpu.memory_space<vmem>>, %arg4: memref<256x768xbf16, #tpu.memory_space<vmem>>, %arg5: memref<256x256xbf16, #tpu.memory_space<vmem>>, %arg6: memref<1x256xf32, #tpu.memory_space<vmem>>, %arg7: memref<256x256xbf16, #tpu.memory_space<vmem>>, %arg8: memref<1x256xf32, #tpu.memory_space<vmem>>, %arg9: memref<2x16x256xf32, #tpu.memory_space<vmem>>, %arg10: memref<2x8x256xf32, #tpu.memory_space<vmem>>, %arg11: memref<2x24x768xbf16, #tpu.memory_space<vmem>>, %arg12: memref<2x24x256xbf16, #tpu.memory_space<vmem>>) attributes {dimension_semantics = [#tpu.dimension_semantics<parallel>], iteration_bounds = array<i64: 1>, scalar_prefetch = 0 : i64, scratch_operands = 2 : i64, tpu.core_type = #tpu.core_type<tc>, window_params = [{transform_indices = @transform_0, window_bounds = array<i64: 2, 16, 256>}, {transform_indices = @transform_1, window_bounds = array<i64: 2, 8, 256>}, {pipeline_mode = #tpu.pipeline_mode<synchronous>, transform_indices = @transform_2, window_bounds = array<i64: 256, 768>}, {pipeline_mode = #tpu.pipeline_mode<synchronous>, transform_indices = @transform_3, window_bounds = array<i64: 256, 768>}, {pipeline_mode = #tpu.pipeline_mode<synchronous>, transform_indices = @transform_4, window_bounds = array<i64: 256, 256>}, {pipeline_mode = #tpu.pipeline_mode<synchronous>, transform_indices = @transform_5, window_bounds = array<i64: 1, 256>}, {pipeline_mode = #tpu.pipeline_mode<synchronous>, transform_indices = @transform_6, window_bounds = array<i64: 256, 256>}, {pipeline_mode = #tpu.pipeline_mode<synchronous>, transform_indices = @transform_7, window_bounds = array<i64: 1, 256>}, {transform_indices = @transform_8, window_bounds = array<i64: 2, 16, 256>}, {transform_indices = @transform_9, window_bounds = array<i64: 2, 8, 256>}]} {
    %c0 = arith.constant 0 : index
    %c0_0 = arith.constant 0 : index
    %c0_1 = arith.constant 0 : index
    %0 = vector.load %arg1[%c0, %c0_0, %c0_1] : memref<2x16x256xf32, #tpu.memory_space<vmem>>, vector<2x16x256xf32>
    %1 = vector.shape_cast %0 : vector<2x16x256xf32> to vector<32x256xf32>
    %2 = arith.truncf %1 : vector<32x256xf32> to vector<32x256xbf16>
    %c0_2 = arith.constant 0 : index
    %c0_3 = arith.constant 0 : index
    %c0_4 = arith.constant 0 : index
    %3 = vector.load %arg2[%c0_2, %c0_3, %c0_4] : memref<2x8x256xf32, #tpu.memory_space<vmem>>, vector<2x8x256xf32>
    %4 = vector.shape_cast %3 : vector<2x8x256xf32> to vector<16x256xf32>
    %5 = arith.truncf %4 : vector<16x256xf32> to vector<16x256xbf16>
    %c0_5 = arith.constant 0 : index
    %c0_6 = arith.constant 0 : index
    %6 = vector.load %arg3[%c0_5, %c0_6] : memref<256x768xbf16, #tpu.memory_space<vmem>>, vector<256x768xbf16>
    %cst = arith.constant dense<0.000000e+00> : vector<32x768xf32>
    %7 = tpu.matmul %2, %6, %cst {dimension_numbers = #tpu.dot_dimension_numbers<[1], [0], [0], [1], [0, 0, 1, 1], [], []>} : vector<32x256xbf16>, vector<256x768xbf16>, vector<32x768xf32> -> vector<32x768xf32>
    %c0_7 = arith.constant 0 : index
    %c0_8 = arith.constant 0 : index
    %8 = vector.load %arg4[%c0_7, %c0_8] : memref<256x768xbf16, #tpu.memory_space<vmem>>, vector<256x768xbf16>
    %cst_9 = arith.constant dense<0.000000e+00> : vector<16x768xf32>
    %9 = tpu.matmul %5, %8, %cst_9 {dimension_numbers = #tpu.dot_dimension_numbers<[1], [0], [0], [1], [0, 0, 1, 1], [], []>} : vector<16x256xbf16>, vector<256x768xbf16>, vector<16x768xf32> -> vector<16x768xf32>
    %10 = arith.truncf %7 : vector<32x768xf32> to vector<32x768xbf16>
    %11 = vector.shape_cast %10 : vector<32x768xbf16> to vector<2x16x768xbf16>
    %c0_10 = arith.constant 0 : index
    %c0_11 = arith.constant 0 : index
    %c0_12 = arith.constant 0 : index
    %12 = vector.load %arg11[%c0_10, %c0_11, %c0_12] : memref<2x24x768xbf16, #tpu.memory_space<vmem>>, vector<2x16x768xbf16>
    tpu.vector_store %arg11[%c0_10, %c0_11, %c0_12], %11 {strides = array<i32>} : memref<2x24x768xbf16, #tpu.memory_space<vmem>>, vector<2x16x768xbf16>,
    %13 = arith.truncf %9 : vector<16x768xf32> to vector<16x768xbf16>
    %14 = vector.shape_cast %13 : vector<16x768xbf16> to vector<2x8x768xbf16>
    %c0_13 = arith.constant 0 : index
    %c16 = arith.constant 16 : index
    %c0_14 = arith.constant 0 : index
    %15 = vector.load %arg11[%c0_13, %c16, %c0_14] : memref<2x24x768xbf16, #tpu.memory_space<vmem>>, vector<2x8x768xbf16>
    tpu.vector_store %arg11[%c0_13, %c16, %c0_14], %14 {strides = array<i32>} : memref<2x24x768xbf16, #tpu.memory_space<vmem>>, vector<2x8x768xbf16>,
    %c0_15 = arith.constant 0 : index
    %c0_16 = arith.constant 0 : index
    %c0_17 = arith.constant 0 : index
    %16 = vector.load %arg11[%c0_15, %c0_16, %c0_17] : memref<2x24x768xbf16, #tpu.memory_space<vmem>>, vector<2x24x128xbf16>
    %c0_18 = arith.constant 0 : index
    %c0_19 = arith.constant 0 : index
    %c256 = arith.constant 256 : index
    %17 = vector.load %arg11[%c0_18, %c0_19, %c256] : memref<2x24x768xbf16, #tpu.memory_space<vmem>>, vector<2x24x128xbf16>
    %c0_20 = arith.constant 0 : index
    %c0_21 = arith.constant 0 : index
    %c512 = arith.constant 512 : index
    %18 = vector.load %arg11[%c0_20, %c0_21, %c512] : memref<2x24x768xbf16, #tpu.memory_space<vmem>>, vector<2x24x128xbf16>
    "tpu.trace_start"() <{level = 10 : i32, message = "bqd,bkd->bqk"}> : () -> ()
    %cst_22 = arith.constant dense<0.000000e+00> : vector<2x24x24xf32>
    %19 = tpu.matmul %16, %17, %cst_22 {dimension_numbers = #tpu.dot_dimension_numbers<[2], [2], [1], [1], [0, 0, 0, 1, 1, 1], [0], [0]>} : vector<2x24x128xbf16>, vector<2x24x128xbf16>, vector<2x24x24xf32> -> vector<2x24x24xf32>
    "tpu.trace_stop"() : () -> ()
    %cst_23 = arith.constant dense<0xFF800000> : vector<2x24xf32>
    %20 = vector.multi_reduction <maximumf>, %19, %cst_23 [2] : vector<2x24x24xf32> to vector<2x24xf32>
    %21 = vector.shape_cast %20 : vector<2x24xf32> to vector<2x24x1xf32>
    %22 = vector.broadcast %21 : vector<2x24x1xf32> to vector<2x24x24xf32>
    %23 = arith.subf %19, %22 : vector<2x24x24xf32>
    %24 = math.exp %23 : vector<2x24x24xf32>
    %cst_24 = arith.constant dense<0.000000e+00> : vector<2x24xf32>
    %25 = vector.multi_reduction <add>, %24, %cst_24 [2] : vector<2x24x24xf32> to vector<2x24xf32>
    %26 = vector.shape_cast %25 : vector<2x24xf32> to vector<2x24x1xf32>
    %27 = tpu.reciprocal %26 {approx = true} : vector<2x24x1xf32> -> vector<2x24x1xf32>
    %28 = vector.broadcast %27 : vector<2x24x1xf32> to vector<2x24x24xf32>
    %29 = arith.mulf %24, %28 : vector<2x24x24xf32>
    %30 = arith.truncf %29 : vector<2x24x24xf32> to vector<2x24x24xbf16>
    "tpu.trace_start"() <{level = 10 : i32, message = "bqk,bkd->bqd"}> : () -> ()
    %cst_25 = arith.constant dense<0.000000e+00> : vector<2x24x128xf32>
    %31 = tpu.matmul %30, %18, %cst_25 {dimension_numbers = #tpu.dot_dimension_numbers<[2], [1], [1], [2], [0, 0, 0, 1, 1, 2], [0], [0]>} : vector<2x24x24xbf16>, vector<2x24x128xbf16>, vector<2x24x128xf32> -> vector<2x24x128xf32>
    "tpu.trace_stop"() : () -> ()
    %32 = arith.truncf %31 : vector<2x24x128xf32> to vector<2x24x128xbf16>
    %c0_26 = arith.constant 0 : index
    %c0_27 = arith.constant 0 : index
    %c0_28 = arith.constant 0 : index
    %33 = vector.load %arg12[%c0_26, %c0_27, %c0_28] : memref<2x24x256xbf16, #tpu.memory_space<vmem>>, vector<2x24x128xbf16>
    tpu.vector_store %arg12[%c0_26, %c0_27, %c0_28], %32 {strides = array<i32>} : memref<2x24x256xbf16, #tpu.memory_space<vmem>>, vector<2x24x128xbf16>,
    %c0_29 = arith.constant 0 : index
    %c0_30 = arith.constant 0 : index
    %c128 = arith.constant 128 : index
    %34 = vector.load %arg11[%c0_29, %c0_30, %c128] : memref<2x24x768xbf16, #tpu.memory_space<vmem>>, vector<2x24x128xbf16>
    %c0_31 = arith.constant 0 : index
    %c0_32 = arith.constant 0 : index
    %c384 = arith.constant 384 : index
    %35 = vector.load %arg11[%c0_31, %c0_32, %c384] : memref<2x24x768xbf16, #tpu.memory_space<vmem>>, vector<2x24x128xbf16>
    %c0_33 = arith.constant 0 : index
    %c0_34 = arith.constant 0 : index
    %c640 = arith.constant 640 : index
    %36 = vector.load %arg11[%c0_33, %c0_34, %c640] : memref<2x24x768xbf16, #tpu.memory_space<vmem>>, vector<2x24x128xbf16>
    "tpu.trace_start"() <{level = 10 : i32, message = "bqd,bkd->bqk"}> : () -> ()
    %cst_35 = arith.constant dense<0.000000e+00> : vector<2x24x24xf32>
    %37 = tpu.matmul %34, %35, %cst_35 {dimension_numbers = #tpu.dot_dimension_numbers<[2], [2], [1], [1], [0, 0, 0, 1, 1, 1], [0], [0]>} : vector<2x24x128xbf16>, vector<2x24x128xbf16>, vector<2x24x24xf32> -> vector<2x24x24xf32>
    "tpu.trace_stop"() : () -> ()
    %cst_36 = arith.constant dense<0xFF800000> : vector<2x24xf32>
    %38 = vector.multi_reduction <maximumf>, %37, %cst_36 [2] : vector<2x24x24xf32> to vector<2x24xf32>
    %39 = vector.shape_cast %38 : vector<2x24xf32> to vector<2x24x1xf32>
    %40 = vector.broadcast %39 : vector<2x24x1xf32> to vector<2x24x24xf32>
    %41 = arith.subf %37, %40 : vector<2x24x24xf32>
    %42 = math.exp %41 : vector<2x24x24xf32>
    %cst_37 = arith.constant dense<0.000000e+00> : vector<2x24xf32>
    %43 = vector.multi_reduction <add>, %42, %cst_37 [2] : vector<2x24x24xf32> to vector<2x24xf32>
    %44 = vector.shape_cast %43 : vector<2x24xf32> to vector<2x24x1xf32>
    %45 = tpu.reciprocal %44 {approx = true} : vector<2x24x1xf32> -> vector<2x24x1xf32>
    %46 = vector.broadcast %45 : vector<2x24x1xf32> to vector<2x24x24xf32>
    %47 = arith.mulf %42, %46 : vector<2x24x24xf32>
    %48 = arith.truncf %47 : vector<2x24x24xf32> to vector<2x24x24xbf16>
    "tpu.trace_start"() <{level = 10 : i32, message = "bqk,bkd->bqd"}> : () -> ()
    %cst_38 = arith.constant dense<0.000000e+00> : vector<2x24x128xf32>
    %49 = tpu.matmul %48, %36, %cst_38 {dimension_numbers = #tpu.dot_dimension_numbers<[2], [1], [1], [2], [0, 0, 0, 1, 1, 2], [0], [0]>} : vector<2x24x24xbf16>, vector<2x24x128xbf16>, vector<2x24x128xf32> -> vector<2x24x128xf32>
    "tpu.trace_stop"() : () -> ()
    %50 = arith.truncf %49 : vector<2x24x128xf32> to vector<2x24x128xbf16>
    %c0_39 = arith.constant 0 : index
    %c0_40 = arith.constant 0 : index
    %c128_41 = arith.constant 128 : index
    %51 = vector.load %arg12[%c0_39, %c0_40, %c128_41] : memref<2x24x256xbf16, #tpu.memory_space<vmem>>, vector<2x24x128xbf16>
    tpu.vector_store %arg12[%c0_39, %c0_40, %c128_41], %50 {strides = array<i32>} : memref<2x24x256xbf16, #tpu.memory_space<vmem>>, vector<2x24x128xbf16>,
    %c0_42 = arith.constant 0 : index
    %c0_43 = arith.constant 0 : index
    %c0_44 = arith.constant 0 : index
    %52 = vector.load %arg12[%c0_42, %c0_43, %c0_44] : memref<2x24x256xbf16, #tpu.memory_space<vmem>>, vector<2x16x256xbf16>
    %53 = vector.shape_cast %52 : vector<2x16x256xbf16> to vector<32x256xbf16>
    %c0_45 = arith.constant 0 : index
    %c16_46 = arith.constant 16 : index
    %c0_47 = arith.constant 0 : index
    %54 = vector.load %arg12[%c0_45, %c16_46, %c0_47] : memref<2x24x256xbf16, #tpu.memory_space<vmem>>, vector<2x8x256xbf16>
    %55 = vector.shape_cast %54 : vector<2x8x256xbf16> to vector<16x256xbf16>
    %c0_48 = arith.constant 0 : index
    %c0_49 = arith.constant 0 : index
    %56 = vector.load %arg5[%c0_48, %c0_49] : memref<256x256xbf16, #tpu.memory_space<vmem>>, vector<256x256xbf16>
    %cst_50 = arith.constant dense<0.000000e+00> : vector<32x256xf32>
    %57 = tpu.matmul %53, %56, %cst_50 {dimension_numbers = #tpu.dot_dimension_numbers<[1], [0], [0], [1], [0, 0, 1, 1], [], []>} : vector<32x256xbf16>, vector<256x256xbf16>, vector<32x256xf32> -> vector<32x256xf32>
    %c0_51 = arith.constant 0 : index
    %c0_52 = arith.constant 0 : index
    %58 = vector.load %arg6[%c0_51, %c0_52] : memref<1x256xf32, #tpu.memory_space<vmem>>, vector<1x256xf32>
    %59 = vector.broadcast %58 : vector<1x256xf32> to vector<32x256xf32>
    %60 = arith.addf %57, %59 : vector<32x256xf32>
    %c0_53 = arith.constant 0 : index
    %c0_54 = arith.constant 0 : index
    %61 = vector.load %arg7[%c0_53, %c0_54] : memref<256x256xbf16, #tpu.memory_space<vmem>>, vector<256x256xbf16>
    %cst_55 = arith.constant dense<0.000000e+00> : vector<16x256xf32>
    %62 = tpu.matmul %55, %61, %cst_55 {dimension_numbers = #tpu.dot_dimension_numbers<[1], [0], [0], [1], [0, 0, 1, 1], [], []>} : vector<16x256xbf16>, vector<256x256xbf16>, vector<16x256xf32> -> vector<16x256xf32>
    %c0_56 = arith.constant 0 : index
    %c0_57 = arith.constant 0 : index
    %63 = vector.load %arg8[%c0_56, %c0_57] : memref<1x256xf32, #tpu.memory_space<vmem>>, vector<1x256xf32>
    %64 = vector.broadcast %63 : vector<1x256xf32> to vector<16x256xf32>
    %65 = arith.addf %62, %64 : vector<16x256xf32>
    %66 = vector.shape_cast %60 : vector<32x256xf32> to vector<2x16x256xf32>
    %c0_58 = arith.constant 0 : index
    %c0_59 = arith.constant 0 : index
    %c0_60 = arith.constant 0 : index
    %67 = vector.load %arg9[%c0_58, %c0_59, %c0_60] : memref<2x16x256xf32, #tpu.memory_space<vmem>>, vector<2x16x256xf32>
    tpu.vector_store %arg9[%c0_58, %c0_59, %c0_60], %66 {strides = array<i32>} : memref<2x16x256xf32, #tpu.memory_space<vmem>>, vector<2x16x256xf32>,
    %68 = vector.shape_cast %65 : vector<16x256xf32> to vector<2x8x256xf32>
    %c0_61 = arith.constant 0 : index
    %c0_62 = arith.constant 0 : index
    %c0_63 = arith.constant 0 : index
    %69 = vector.load %arg10[%c0_61, %c0_62, %c0_63] : memref<2x8x256xf32, #tpu.memory_space<vmem>>, vector<2x8x256xf32>
    tpu.vector_store %arg10[%c0_61, %c0_62, %c0_63], %68 {strides = array<i32>} : memref<2x8x256xf32, #tpu.memory_space<vmem>>, vector<2x8x256xf32>,
    return
  }
  func.func @transform_0(%arg0: i32) -> (i32, i32, i32) {
    %c0_i32 = arith.constant 0 : i32
    %c0_i32_0 = arith.constant 0 : i32
    %c0_i32_1 = arith.constant 0 : i32
    return %arg0, %c0_i32, %c0_i32_0 : i32, i32, i32
  }
  func.func @transform_1(%arg0: i32) -> (i32, i32, i32) {
    %c0_i32 = arith.constant 0 : i32
    %c0_i32_0 = arith.constant 0 : i32
    %c0_i32_1 = arith.constant 0 : i32
    return %arg0, %c0_i32, %c0_i32_0 : i32, i32, i32
  }
  func.func @transform_2(%arg0: i32) -> (i32, i32) {
    %c0_i32 = arith.constant 0 : i32
    %c0_i32_0 = arith.constant 0 : i32
    %c0_i32_1 = arith.constant 0 : i32
    return %c0_i32, %c0_i32_0 : i32, i32
  }
  func.func @transform_3(%arg0: i32) -> (i32, i32) {
    %c0_i32 = arith.constant 0 : i32
    %c0_i32_0 = arith.constant 0 : i32
    %c0_i32_1 = arith.constant 0 : i32
    return %c0_i32, %c0_i32_0 : i32, i32
  }
  func.func @transform_4(%arg0: i32) -> (i32, i32) {
    %c0_i32 = arith.constant 0 : i32
    %c0_i32_0 = arith.constant 0 : i32
    %c0_i32_1 = arith.constant 0 : i32
    return %c0_i32, %c0_i32_0 : i32, i32
  }
  func.func @transform_5(%arg0: i32) -> (i32, i32) {
    %c0_i32 = arith.constant 0 : i32
    %c0_i32_0 = arith.constant 0 : i32
    %c0_i32_1 = arith.constant 0 : i32
    return %c0_i32, %c0_i32_0 : i32, i32
  }
  func.func @transform_6(%arg0: i32) -> (i32, i32) {
    %c0_i32 = arith.constant 0 : i32
    %c0_i32_0 = arith.constant 0 : i32
    %c0_i32_1 = arith.constant 0 : i32
    return %c0_i32, %c0_i32_0 : i32, i32
  }
  func.func @transform_7(%arg0: i32) -> (i32, i32) {
    %c0_i32 = arith.constant 0 : i32
    %c0_i32_0 = arith.constant 0 : i32
    %c0_i32_1 = arith.constant 0 : i32
    return %c0_i32, %c0_i32_0 : i32, i32
  }
  func.func @transform_8(%arg0: i32) -> (i32, i32, i32) {
    %c0_i32 = arith.constant 0 : i32
    %c0_i32_0 = arith.constant 0 : i32
    %c0_i32_1 = arith.constant 0 : i32
    return %arg0, %c0_i32, %c0_i32_0 : i32, i32, i32
  }
  func.func @transform_9(%arg0: i32) -> (i32, i32, i32) {
    %c0_i32 = arith.constant 0 : i32
    %c0_i32_0 = arith.constant 0 : i32
    %c0_i32_1 = arith.constant 0 : i32
    return %arg0, %c0_i32, %c0_i32_0 : i32, i32, i32
  }
}

</mosaic_0001>

<bundles_post_ra>
// kernel: tpu_custom_call.1
= control target key start
LH: loop header
LB: loop body
LE: loop exit
PB: predicated region body
PF: predicated region fallthrough
CT: control target
= control target key end

     0   :  { %15 = vsyncpa [#allocation5], 0  ;;  %s4449_s0 = inlined_call_operand.hbm [shape: f32[2,16,256], index: 0, kind: input, shape index: {}]   ;;  %s4450_s1 = inlined_call_operand.hbm [shape: f32[2,8,256], index: 1, kind: input, shape index: {}]   ;;  %s4451_s2 = inlined_call_operand.hbm [shape: bf16[256,768], index: 2, kind: input, shape index: {}]   ;;  %s4452_s3 = inlined_call_operand.hbm [shape: bf16[256,768], index: 3, kind: input, shape index: {}]   ;;  %s4453_s4 = inlined_call_operand.hbm [shape: bf16[256,256], index: 4, kind: input, shape index: {}]   ;;  %s4454_s5 = inlined_call_operand.vmem [shape: f32[1,256], index: 5, kind: input, shape index: {}]   ;;  %s4455_s6 = inlined_call_operand.hbm [shape: bf16[256,256], index: 6, kind: input, shape index: {}]   ;;  %s4456_s7 = inlined_call_operand.vmem [shape: f32[1,256], index: 7, kind: input, shape index: {}]   ;;  %s4457_s8 = inlined_call_operand.hbm [shape: f32[2,16,256], index: 8, kind: output, shape index: {0}]   ;;  %s4458_s9 = inlined_call_operand.hbm [shape: f32[2,8,256], index: 9, kind: output, shape index: {1}]  }
   0x1   :  { %16 = vsyncpa [#allocation8], 0 }
   0x2   :  { %17 = vsyncpa [#allocation11], 0 }
   0x3   :  { %18 = vsyncpa [#allocation14], 0 }
   0x4   :  { %19 = vsyncpa [#allocation6], 0 }
   0x5   :  { %20 = vsyncpa [#allocation17], 0  ;;  %s4187_s30 = smov [#allocation7]   ;;  %s3999_s13 = scalar_lea.hbm %s4450_s1, 512 }
   0x6   :  { %s38_s10 = sshll.u32 %s4187_s30, 4  ;;  %p4000_p0 = scmp.ne.s32.totalorder %s4450_s1, %s3999_s13  ;;  %s39_s10 = int_to_ptr.vmem [resolvable:$true] %s38_s10 }
   0x7   :  { %p4003_p1 = scmp.lt.u32.totalorder %s3999_s13, %s4450_s1 }
   0x9   :  { %p4005_p2 = pnand %p4003_p1, %p4000_p0 }
   0xb   :  { %4008 = shalt.err (!%p4005_p2)
}
   0xc   :  { %s4009_s18 = scalar_lea.vmem %s39_s10, 512  ;;  %p4014_p4 = scmp.lt.s32.totalorder %s39_s10, %s39_s10 }
   0xd   :  { %p4010_p3 = scmp.ne.s32.totalorder %s39_s10, %s4009_s18  ;;  %p4015_p5 = scmp.lt.s32.totalorder %s4009_s18, %s4009_s18 }
   0xf   :  { %p4016_p6 = por %p4015_p5, %p4014_p4 }
  0x11   :  { %p4017_p7 = pnand %p4016_p6, %p4010_p3 }
  0x13   :  { %4020 = shalt.err (!%p4017_p7)
}
  0x14   :  { %s4188_s19 = smov 256   ;;  %s4189_s20 = smov 16  }
  0x15   :  { %44 = dma.hbm_to_vmem [thread:$0]  %s4450_s1, 512, %s39_s10, [#allocation8], %s4188_s19, %s4188_s19, %s4189_s20  }
  0x16   :  { %s4190_s23 = smov [#allocation10]   ;;  %s4191_s25 = smov [#allocation4]  }
  0x17   :  { %s62_s24 = sshll.u32 %s4190_s23, 4  ;;  %s26_s26 = sshll.u32 %s4191_s25, 4  ;;  %s63_s24 = int_to_ptr.vmem [resolvable:$true] %s62_s24  ;;  %s27_s26 = int_to_ptr.vmem [resolvable:$true] %s26_s26 }
  0x18   :  { %s4021_s29 = scalar_lea.hbm %s4452_s3, 12288 }
  0x19   :  { %p4022_p8 = scmp.ne.s32.totalorder %s4452_s3, %s4021_s29  ;;  %p4025_p9 = scmp.lt.u32.totalorder %s4021_s29, %s4452_s3 }
  0x1b   :  { %p4027_p10 = pnand %p4025_p9, %p4022_p8 }
  0x1d   :  { %4030 = shalt.err (!%p4027_p10)
}
  0x1e   :  { %s4031_s1 = scalar_lea.vmem %s63_s24, 12288  ;;  %p4036_p12 = scmp.lt.s32.totalorder %s63_s24, %s63_s24 }
  0x1f   :  { %p4032_p11 = scmp.ne.s32.totalorder %s63_s24, %s4031_s1  ;;  %p4037_p13 = scmp.lt.s32.totalorder %s4031_s1, %s4031_s1 }
  0x21   :  { %p4038_p0 = por %p4037_p13, %p4036_p12 }
  0x23   :  { %p4039_p1 = pnand %p4038_p0, %p4032_p11 }
  0x25   :  { %4042 = shalt.err (!%p4039_p1)
}
  0x26   :  { %s4192_s10 = smov 384   ;;  %s4193_s14 = smov 24  }
  0x27   :  { %68 = dma.hbm_to_vmem [thread:$0]  %s4452_s3, 12288, %s63_s24, [#allocation11], %s4192_s10, %s4192_s10, %s4193_s14  }
  0x28   :  { %s4043_s21 = scalar_lea.hbm %s4449_s0, 1024 }
  0x29   :  { %p4044_p2 = scmp.ne.s32.totalorder %s4449_s0, %s4043_s21  ;;  %p4047_p3 = scmp.lt.u32.totalorder %s4043_s21, %s4449_s0 }
  0x2b   :  { %p4049_p4 = pnand %p4047_p3, %p4044_p2 }
  0x2d   :  { %4052 = shalt.err (!%p4049_p4)
}
  0x2e   :  { %s4053_s28 = scalar_lea.vmem %s27_s26, 1024  ;;  %p4058_p6 = scmp.lt.s32.totalorder %s27_s26, %s27_s26 }
  0x2f   :  { %p4054_p5 = scmp.ne.s32.totalorder %s27_s26, %s4053_s28  ;;  %p4059_p7 = scmp.lt.s32.totalorder %s4053_s28, %s4053_s28 }
  0x31   :  { %p4060_p8 = por %p4059_p7, %p4058_p6 }
  0x33   :  { %p4061_p9 = pnand %p4060_p8, %p4054_p5 }
  0x35   :  { %4064 = shalt.err (!%p4061_p9)
}
  0x36   :  { %32 = dma.hbm_to_vmem [thread:$0]  %s4449_s0, 1024, %s27_s26, [#allocation5], %s4188_s19, %s4188_s19, %s4189_s20  }
  0x37   :  { %s4194_s29 = smov [#allocation9]   ;;  %s4195_s11 = smov [#allocation12]  }
  0x38   :  { %s50_s30 = sshll.u32 %s4194_s29, 4  ;;  %s74_s12 = sshll.u32 %s4195_s11, 4  ;;  %s51_s30 = int_to_ptr.vmem [resolvable:$true] %s50_s30  ;;  %s75_s12 = int_to_ptr.vmem [resolvable:$true] %s74_s12 }
  0x39   :  { %s4065_s15 = scalar_lea.hbm %s4451_s2, 12288 }
  0x3a   :  { %p4066_p10 = scmp.ne.s32.totalorder %s4451_s2, %s4065_s15  ;;  %p4069_p11 = scmp.lt.u32.totalorder %s4065_s15, %s4451_s2 }
  0x3c   :  { %p4071_p12 = pnand %p4069_p11, %p4066_p10 }
  0x3e   :  { %4074 = shalt.err (!%p4071_p12)
}
  0x3f   :  { %s4075_s0 = scalar_lea.vmem %s51_s30, 12288  ;;  %p4080_p0 = scmp.lt.s32.totalorder %s51_s30, %s51_s30 }
  0x40   :  { %p4076_p13 = scmp.ne.s32.totalorder %s51_s30, %s4075_s0  ;;  %p4081_p1 = scmp.lt.s32.totalorder %s4075_s0, %s4075_s0 }
  0x42   :  { %p4082_p2 = por %p4081_p1, %p4080_p0 }
  0x44   :  { %p4083_p3 = pnand %p4082_p2, %p4076_p13 }
  0x46   :  { %4086 = shalt.err (!%p4083_p3)
}
  0x47   :  { %56 = dma.hbm_to_vmem [thread:$0]  %s4451_s2, 12288, %s51_s30, [#allocation8], %s4192_s10, %s4192_s10, %s4193_s14  }
  0x48   :  { %s4087_s27 = scalar_lea.hbm %s4453_s4, 4096 }
  0x49   :  { %p4088_p4 = scmp.ne.s32.totalorder %s4453_s4, %s4087_s27  ;;  %p4091_p5 = scmp.lt.u32.totalorder %s4087_s27, %s4453_s4 }
  0x4b   :  { %p4093_p6 = pnand %p4091_p5, %p4088_p4 }
  0x4d   :  { %4096 = shalt.err (!%p4093_p6)
}
  0x4e   :  { %s4097_s11 = scalar_lea.vmem %s75_s12, 4096  ;;  %p4102_p8 = scmp.lt.s32.totalorder %s75_s12, %s75_s12 }
  0x4f   :  { %p4098_p7 = scmp.ne.s32.totalorder %s75_s12, %s4097_s11  ;;  %p4103_p9 = scmp.lt.s32.totalorder %s4097_s11, %s4097_s11 }
  0x51   :  { %p4104_p10 = por %p4103_p9, %p4102_p8 }
  0x53   :  { %p4105_p11 = pnand %p4104_p10, %p4098_p7 }
  0x55   :  { %4108 = shalt.err (!%p4105_p11)
}
  0x56   :  { %s4196_s2 = smov 128   ;;  %s4197_s10 = smov 8  }
  0x57   :  { %80 = dma.hbm_to_vmem [thread:$0]  %s4453_s4, 4096, %s75_s12, [#allocation11], %s4196_s2, %s4196_s2, %s4197_s10  }
  0x58   :  { %s4198_s13 = smov [#allocation13]   ;;  %s4109_s17 = scalar_lea.hbm %s4455_s6, 4096 }
  0x59   :  { %s88_s1 = sshll.u32 %s4198_s13, 4  ;;  %p4110_p12 = scmp.ne.s32.totalorder %s4455_s6, %s4109_s17  ;;  %s89_s1 = int_to_ptr.vmem [resolvable:$true] %s88_s1 }
  0x5a   :  { %p4113_p13 = scmp.lt.u32.totalorder %s4109_s17, %s4455_s6 }
  0x5c   :  { %p4115_p0 = pnand %p4113_p13, %p4110_p12 }
  0x5e   :  { %4118 = shalt.err (!%p4115_p0)
}
  0x5f   :  { %s4119_s22 = scalar_lea.vmem %s89_s1, 4096  ;;  %p4124_p2 = scmp.lt.s32.totalorder %s89_s1, %s89_s1 }
  0x60   :  { %p4120_p1 = scmp.ne.s32.totalorder %s89_s1, %s4119_s22  ;;  %p4125_p3 = scmp.lt.s32.totalorder %s4119_s22, %s4119_s22 }
  0x62   :  { %p4126_p4 = por %p4125_p3, %p4124_p2 }
  0x64   :  { %p4127_p5 = pnand %p4126_p4, %p4120_p1 }
  0x66   :  { %4130 = shalt.err (!%p4127_p5)
}
  0x67   :  { %94 = dma.hbm_to_vmem [thread:$0]  %s4455_s6, 4096, %s89_s1, [#allocation14], %s4196_s2, %s4196_s2, %s4197_s10  }
  0x68   :  { %4175 = dma.done.wait [#allocation5], 1024  }
  0x69   :  { %4176 = vsyncadd [#allocation5], 4294966272 }
  0x6a   :  { %4177 = dma.done.wait [#allocation8], 12800  }
  0x6b   :  { %4178 = vsyncadd [#allocation8], 4294954496 }
  0x6c   :  { %4179 = dma.done.wait [#allocation11], 16384  }
  0x6d   :  { %4180 = vsyncadd [#allocation11], 4294950912 }
  0x6e   :  { %4181 = dma.done.wait [#allocation14], 4096  }
  0x6f   :  { %4182 = vsyncadd [#allocation14], 4294963200  ;;  %v3534_v0 = vld [vmem:[#allocation9 + $0x4] ss:$24 sps:$4 sm:$0xff]   ;;  %v3536_v1 = vld [vmem:[#allocation9] ss:$24 sps:$4 sm:$0xff]  }
  0x70   :  { %710 = vmatprep.subr.bf16.mxu0 %v3534_v0  ;;  %v3537_v2 = vld [vmem:[#allocation9 + $0x34] ss:$24 sps:$4 sm:$0xff]   ;;  %v3539_v3 = vld [vmem:[#allocation9 + $0x30] ss:$24 sps:$4 sm:$0xff]   ;;  %v3540_v4 = vld [vmem:[#allocation9 + $0x64] ss:$24 sps:$4 sm:$0xff]  }
  0x71   :  { %711 = vmatpush1.bf16.msra.mxu0 %v3536_v1  ;;  %v3545_v5 = vld [vmem:[#allocation9 + $0xc] ss:$24 sps:$4 sm:$0xff]   ;;  %v3548_v6 = vld [vmem:[#allocation9 + $0x8] ss:$24 sps:$4 sm:$0xff]   ;;  %v3551_v9 = vld [vmem:[#allocation9 + $0x3c] ss:$24 sps:$4 sm:$0xff]  }
  0x72   :  { %712 = vmatprep.subr.bf16.mxu0 %v3537_v2  ;;  %v3542_v7 = vld [vmem:[#allocation9 + $0x60] ss:$24 sps:$4 sm:$0xff]   ;;  %763 = vmatprep.subr.bf16.mxu1 %v3545_v5  ;;  %v3543_v8 = vld [vmem:[#allocation9 + $0x94] ss:$24 sps:$4 sm:$0xff]   ;;  %v3547_v11 = vld [vmem:[#allocation9 + $0x90] ss:$24 sps:$4 sm:$0xff]  }
  0x73   :  { %764 = vmatpush1.bf16.msra.mxu1 %v3548_v6  ;;  %v3554_v10 = vld [vmem:[#allocation9 + $0x38] ss:$24 sps:$4 sm:$0xff]   ;;  %v3549_v12 = vld [vmem:[#allocation9 + $0xc4] ss:$24 sps:$4 sm:$0xff]   ;;  %v3560_v14 = vld [vmem:[#allocation9 + $0x68] ss:$24 sps:$4 sm:$0xff]  }
  0x74   :  { %765 = vmatprep.subr.bf16.mxu1 %v3551_v9  ;;  %v3557_v13 = vld [vmem:[#allocation9 + $0x6c] ss:$24 sps:$4 sm:$0xff]   ;;  %v3563_v15 = vld [vmem:[#allocation9 + $0x9c] ss:$24 sps:$4 sm:$0xff]   ;;  %v3553_v16 = vld [vmem:[#allocation9 + $0xc0] ss:$24 sps:$4 sm:$0xff]  }
  0x75   :  { %713 = vmatpush1.bf16.msra.mxu0 %v3539_v3  ;;  %v3555_v17 = vld [vmem:[#allocation9 + $0xf4] ss:$24 sps:$4 sm:$0xff]   ;;  %v3566_v18 = vld [vmem:[#allocation9 + $0x98] ss:$24 sps:$4 sm:$0xff]   ;;  %v3561_v21 = vld [vmem:[#allocation9 + $0x124] ss:$24 sps:$4 sm:$0xff]  }
  0x76   :  { %714 = vmatprep.subr.bf16.mxu0 %v3540_v4  ;;  %v3569_v19 = vld [vmem:[#allocation9 + $0xcc] ss:$24 sps:$4 sm:$0xff]   ;;  %v3559_v20 = vld [vmem:[#allocation9 + $0xf0] ss:$24 sps:$4 sm:$0xff]   ;;  %v3575_v23 = vld [vmem:[#allocation9 + $0xfc] ss:$24 sps:$4 sm:$0xff]  }
  0x77   :  { %766 = vmatpush1.bf16.msra.mxu1 %v3554_v10  ;;  %v3572_v22 = vld [vmem:[#allocation9 + $0xc8] ss:$24 sps:$4 sm:$0xff]   ;;  %v3567_v25 = vld [vmem:[#allocation9 + $0x154] ss:$24 sps:$4 sm:$0xff]   ;;  %v3578_v26 = vld [vmem:[#allocation9 + $0xf8] ss:$24 sps:$4 sm:$0xff]  }
  0x78   :  { %767 = vmatprep.subr.bf16.mxu1 %v3557_v13  ;;  %v3565_v24 = vld [vmem:[#allocation9 + $0x120] ss:$24 sps:$4 sm:$0xff]   ;;  %v3581_v27 = vld [vmem:[#allocation9 + $0x12c] ss:$24 sps:$4 sm:$0xff]   ;;  %v3571_v28 = vld [vmem:[#allocation9 + $0x150] ss:$24 sps:$4 sm:$0xff]  }
  0x79   :  { %715 = vmatpush1.bf16.msra.mxu0 %v3542_v7  ;;  %v3573_v29 = vld [vmem:[#allocation9 + $0x184] ss:$24 sps:$4 sm:$0xff]   ;;  %v3584_v30 = vld [vmem:[#allocation9 + $0x128] ss:$24 sps:$4 sm:$0xff]   ;;  %v3579_v33 = vld [vmem:[#allocation9 + $0x1b4] ss:$24 sps:$4 sm:$0xff]  }
  0x7a   :  { %716 = vmatprep.subr.bf16.mxu0 %v3543_v8  ;;  %v3587_v31 = vld [vmem:[#allocation9 + $0x15c] ss:$24 sps:$4 sm:$0xff]   ;;  %v3577_v32 = vld [vmem:[#allocation9 + $0x180] ss:$24 sps:$4 sm:$0xff]   ;;  %v3593_v35 = vld [vmem:[#allocation9 + $0x18c] ss:$24 sps:$4 sm:$0xff]  }
  0x7b   :  { %768 = vmatpush1.bf16.msra.mxu1 %v3560_v14  ;;  %v3590_v34 = vld [vmem:[#allocation9 + $0x158] ss:$24 sps:$4 sm:$0xff]   ;;  %v3585_v37 = vld [vmem:[#allocation9 + $0x1e4] ss:$24 sps:$4 sm:$0xff]   ;;  %v3596_v38 = vld [vmem:[#allocation9 + $0x188] ss:$24 sps:$4 sm:$0xff]  }
  0x7c   :  { %769 = vmatprep.subr.bf16.mxu1 %v3563_v15  ;;  %v3583_v36 = vld [vmem:[#allocation9 + $0x1b0] ss:$24 sps:$4 sm:$0xff]   ;;  %v3599_v39 = vld [vmem:[#allocation9 + $0x1bc] ss:$24 sps:$4 sm:$0xff]   ;;  %v3589_v41 = vld [vmem:[#allocation9 + $0x1e0] ss:$24 sps:$4 sm:$0xff]  }
  0x7d   :  { %717 = vmatpush1.bf16.msra.mxu0 %v3547_v11  ;;  %v117_v40 = vld [vmem:[#allocation4 + $0x8] sm:$0xff]  ;;  %v119_v43 = vld [vmem:[#allocation4 + $0x18] sm:$0xff]  ;;  %v116_v0 = vld [vmem:[#allocation4] sm:$0xff]  ;;  %vm1940_vm0 = vcmask 1043456   ;;  %vm1854_vm1 = vcmask 195584  }
  0x7e   :  { %718 = vmatprep.subr.bf16.mxu0 %v3549_v12  ;;  %v3591_v42 = vld [vmem:[#allocation9 + $0x214] ss:$24 sps:$4 sm:$0xff]   ;;  %v3602_v44 = vld [vmem:[#allocation9 + $0x1b8] ss:$24 sps:$4 sm:$0xff]   ;;  %v4335_v45 = vpack.c.bf16 %v119_v43, %v117_v40  ;;  %v3597_v48 = vld [vmem:[#allocation9 + $0x244] ss:$24 sps:$4 sm:$0xff]  }
  0x7f   :  { %770 = vmatpush1.bf16.msra.mxu1 %v3566_v18  ;;  %v3605_v46 = vld [vmem:[#allocation9 + $0x1ec] ss:$24 sps:$4 sm:$0xff]   ;;  %v3595_v47 = vld [vmem:[#allocation9 + $0x210] ss:$24 sps:$4 sm:$0xff]   ;;  %v3611_v50 = vld [vmem:[#allocation9 + $0x21c] ss:$24 sps:$4 sm:$0xff]  }
  0x80   :  { %771 = vmatprep.subr.bf16.mxu1 %v3569_v19  ;;  %742 = vmatprep.mubr.bf16.mxu0 %v4335_v45  ;;  %v3608_v49 = vld [vmem:[#allocation9 + $0x1e8] ss:$24 sps:$4 sm:$0xff]   ;;  %v3603_v52 = vld [vmem:[#allocation9 + $0x274] ss:$24 sps:$4 sm:$0xff]   ;;  %v3614_v53 = vld [vmem:[#allocation9 + $0x218] ss:$24 sps:$4 sm:$0xff]  }
  0x81   :  { %719 = vmatpush1.bf16.msra.mxu0 %v3553_v16  ;;  %795 = vmatprep.mubr.bf16.mxu1 %v4335_v45  ;;  %v3601_v51 = vld [vmem:[#allocation9 + $0x240] ss:$24 sps:$4 sm:$0xff]   ;;  %v3617_v54 = vld [vmem:[#allocation9 + $0x24c] ss:$24 sps:$4 sm:$0xff]   ;;  %v3607_v55 = vld [vmem:[#allocation9 + $0x270] ss:$24 sps:$4 sm:$0xff]  }
  0x82   :  { %720 = vmatprep.subr.bf16.mxu0 %v3555_v17  ;;  %v3609_v56 = vld [vmem:[#allocation9 + $0x2a4] ss:$24 sps:$4 sm:$0xff]   ;;  %v3620_v57 = vld [vmem:[#allocation9 + $0x248] ss:$24 sps:$4 sm:$0xff]   ;;  %v3615_v60 = vld [vmem:[#allocation9 + $0x2d4] ss:$24 sps:$4 sm:$0xff]  }
  0x83   :  { %772 = vmatpush1.bf16.msra.mxu1 %v3572_v22  ;;  %v3621_v58 = vld [vmem:[#allocation9 + $0x27c] ss:$24 sps:$4 sm:$0xff]   ;;  %v3613_v59 = vld [vmem:[#allocation9 + $0x2a0] ss:$24 sps:$4 sm:$0xff]   ;;  %v3627_v62 = vld [vmem:[#allocation9 + $0x2ac] ss:$24 sps:$4 sm:$0xff]  }
  0x84   :  { %773 = vmatprep.subr.bf16.mxu1 %v3575_v23  ;;  %v3626_v61 = vld [vmem:[#allocation9 + $0x278] ss:$24 sps:$4 sm:$0xff]   ;;  %v3625_v2 = vld [vmem:[#allocation9 + $0x14] ss:$24 sps:$4 sm:$0xff]   ;;  %v3632_v3 = vld [vmem:[#allocation9 + $0x2a8] ss:$24 sps:$4 sm:$0xff]  }
  0x85   :  { %721 = vmatpush1.bf16.msra.mxu0 %v3559_v20  ;;  %v3619_v63 = vld [vmem:[#allocation9 + $0x2d0] ss:$24 sps:$4 sm:$0xff]   ;;  %v3633_v4 = vld [vmem:[#allocation9 + $0x2dc] ss:$24 sps:$4 sm:$0xff]   ;;  %v3629_v10 = vld [vmem:[#allocation9 + $0x40] ss:$24 sps:$4 sm:$0xff]  }
  0x86   :  { %722 = vmatprep.subr.bf16.mxu0 %v3561_v21  ;;  %v118_v1 = vld [vmem:[#allocation4 + $0x10] sm:$0xff]  ;;  %v3631_v7 = vld [vmem:[#allocation9 + $0x44] ss:$24 sps:$4 sm:$0xff]   ;;  %v3642_v12 = vld [vmem:[#allocation10] ss:$24 sps:$4 sm:$0xff]  }
  0x87   :  { %774 = vmatpush1.bf16.msra.mxu1 %v3578_v26  ;;  %v4339_v5 = vpack.c.bf16 %v118_v1, %v116_v0  ;;  %v3623_v6 = vld [vmem:[#allocation9 + $0x10] ss:$24 sps:$4 sm:$0xff]   ;;  %v3644_v9 = vld [vmem:[#allocation10 + $0x4] ss:$24 sps:$4 sm:$0xff]   ;;  %v3637_v11 = vld [vmem:[#allocation9 + $0x74] ss:$24 sps:$4 sm:$0xff]  }
  0x88   :  { %775 = vmatprep.subr.bf16.mxu1 %v3581_v27  ;;  %v3638_v8 = vld [vmem:[#allocation9 + $0x2d8] ss:$24 sps:$4 sm:$0xff]   ;;  %v3650_v13 = vld [vmem:[#allocation10 + $0x34] ss:$24 sps:$4 sm:$0xff]   ;;  %v3641_v15 = vld [vmem:[#allocation9 + $0xa4] ss:$24 sps:$4 sm:$0xff]  }
  0x89   :  { %723 = vmatpush1.bf16.msra.mxu0 %v3565_v24  ;;  %v3635_v14 = vld [vmem:[#allocation9 + $0x70] ss:$24 sps:$4 sm:$0xff]   ;;  %v3656_v17 = vld [vmem:[#allocation10 + $0x64] ss:$24 sps:$4 sm:$0xff]   ;;  %v3639_v18 = vld [vmem:[#allocation9 + $0xa0] ss:$24 sps:$4 sm:$0xff]  }
  0x8a   :  { %724 = vmatprep.subr.bf16.mxu0 %v3567_v25  ;;  %v3648_v16 = vld [vmem:[#allocation10 + $0x30] ss:$24 sps:$4 sm:$0xff]   ;;  %v3647_v19 = vld [vmem:[#allocation9 + $0xd4] ss:$24 sps:$4 sm:$0xff]   ;;  %v3654_v20 = vld [vmem:[#allocation10 + $0x60] ss:$24 sps:$4 sm:$0xff]  }
  0x8b   :  { %776 = vmatpush1.bf16.msra.mxu1 %v3584_v30  ;;  %v3662_v21 = vld [vmem:[#allocation10 + $0x94] ss:$24 sps:$4 sm:$0xff]   ;;  %v123_v23 = vld [vmem:[#allocation4 + $0x38] sm:$0xff]  ;;  %v120_v25 = vld [vmem:[#allocation4 + $0x20] sm:$0xff] }
  0x8c   :  { %777 = vmatprep.subr.bf16.mxu1 %v3587_v31  ;;  %v121_v22 = vld [vmem:[#allocation4 + $0x28] sm:$0xff]  ;;  %v122_v26 = vld [vmem:[#allocation4 + $0x30] sm:$0xff]  ;;  %v3668_v31 = vld [vmem:[#allocation10 + $0xc4] ss:$24 sps:$4 sm:$0xff]  }
  0x8d   :  { %725 = vmatpush1.bf16.msra.mxu0 %v3571_v28  ;;  %v4343_v24 = vpack.c.bf16 %v123_v23, %v121_v22  ;;  %v3645_v27 = vld [vmem:[#allocation9 + $0xd0] ss:$24 sps:$4 sm:$0xff]   ;;  %v3653_v28 = vld [vmem:[#allocation9 + $0x104] ss:$24 sps:$4 sm:$0xff]   ;;  %v3663_v40 = vld [vmem:[#allocation9 + $0x160] ss:$24 sps:$4 sm:$0xff]  }
  0x8e   :  { %726 = vmatprep.subr.bf16.mxu0 %v3573_v29  ;;  %v4345_v29 = vpack.c.bf16 %v122_v26, %v120_v25  ;;  %v3660_v30 = vld [vmem:[#allocation10 + $0x90] ss:$24 sps:$4 sm:$0xff]   ;;  %v3701_v0 = vld [vmem:[#allocation9 + $0x284] ss:$24 sps:$4 sm:$0xff]  }
  0x8f   :  { %778 = vmatpush1.bf16.msra.mxu1 %v3590_v34  ;;  %v3666_v34 = vld [vmem:[#allocation10 + $0xc0] ss:$24 sps:$4 sm:$0xff]   ;;  %v129_v43 = vld [vmem:[#allocation7 + $0x8] sm:$0xff] }
  0x90   :  { %779 = vmatprep.subr.bf16.mxu1 %v3593_v35  ;;  %v3674_v35 = vld [vmem:[#allocation10 + $0xf4] ss:$24 sps:$4 sm:$0xff]   ;;  %v3708_v1 = vld [vmem:[#allocation10 + $0x210] ss:$24 sps:$4 sm:$0xff]  }
  0x91   :  { %727 = vmatpush1.bf16.msra.mxu0 %v3577_v32  ;;  %v3651_v32 = vld [vmem:[#allocation9 + $0x100] ss:$24 sps:$4 sm:$0xff]   ;;  %v3734_v23 = vld [vmem:[#allocation10 + $0x6c] ss:$24 sps:$4 sm:$0xff]   ;;  %v3738_v25 = vld [vmem:[#allocation10 + $0x10] ss:$24 sps:$4 sm:$0xff]  }
  0x92   :  { %728 = vmatprep.subr.bf16.mxu0 %v3579_v33  ;;  %v3659_v33 = vld [vmem:[#allocation9 + $0x134] ss:$24 sps:$4 sm:$0xff]   ;;  %v3726_v22 = vld [vmem:[#allocation10 + $0x38] ss:$24 sps:$4 sm:$0xff]  }
  0x93   :  { %780 = vmatpush1.bf16.msra.mxu1 %v3596_v38  ;;  %v3672_v38 = vld [vmem:[#allocation10 + $0xf0] ss:$24 sps:$4 sm:$0xff]  }
  0x94   :  { %781 = vmatprep.subr.bf16.mxu1 %v3599_v39  ;;  %v3680_v39 = vld [vmem:[#allocation10 + $0x124] ss:$24 sps:$4 sm:$0xff]  }
  0x95   :  { %729 = vmatpush1.bf16.msra.mxu0 %v3583_v36  ;;  %v3657_v36 = vld [vmem:[#allocation9 + $0x130] ss:$24 sps:$4 sm:$0xff]  }
  0x96   :  { %730 = vmatprep.subr.bf16.mxu0 %v3585_v37  ;;  %v3665_v37 = vld [vmem:[#allocation9 + $0x164] ss:$24 sps:$4 sm:$0xff]  }
  0x97   :  { %782 = vmatpush1.bf16.msra.mxu1 %v3602_v44  ;;  %v131_v44 = vld [vmem:[#allocation7 + $0x18] sm:$0xff] }
  0x98   :  { %783 = vmatprep.subr.bf16.mxu1 %v3605_v46  ;;  %v4352_v46 = vpack.c.bf16 %v131_v44, %v129_v43  ;;  %v3761_v43 = vld [vmem:[#allocation10 + $0x15c] ss:$24 sps:$4 sm:$0xff]   ;;  %v3768_v44 = vld [vmem:[#allocation10 + $0x100] ss:$24 sps:$4 sm:$0xff]  }
  0x99   :  { %731 = vmatpush1.bf16.msra.mxu0 %v3589_v41  ;;  %v3671_v41 = vld [vmem:[#allocation9 + $0x194] ss:$24 sps:$4 sm:$0xff]  }
  0x9a   :  { %732 = vmatprep.subr.bf16.mxu0 %v3591_v42  ;;  %v3678_v42 = vld [vmem:[#allocation10 + $0x120] ss:$24 sps:$4 sm:$0xff]  }
  0x9b   :  { %784 = vmatpush1.bf16.msra.mxu1 %v3608_v49  ;;  %v3684_v49 = vld [vmem:[#allocation10 + $0x150] ss:$24 sps:$4 sm:$0xff]  }
  0x9c   :  { %785 = vmatprep.subr.bf16.mxu1 %v3611_v50  ;;  %v3692_v50 = vld [vmem:[#allocation10 + $0x184] ss:$24 sps:$4 sm:$0xff]  }
  0x9d   :  { %733 = vmatpush1.bf16.msra.mxu0 %v3595_v47  ;;  %v3669_v47 = vld [vmem:[#allocation9 + $0x190] ss:$24 sps:$4 sm:$0xff]  }
  0x9e   :  { %734 = vmatprep.subr.bf16.mxu0 %v3597_v48  ;;  %v3677_v48 = vld [vmem:[#allocation9 + $0x1c4] ss:$24 sps:$4 sm:$0xff]  }
  0x9f   :  { %786 = vmatpush1.bf16.msra.mxu1 %v3614_v53  ;;  %v3690_v53 = vld [vmem:[#allocation10 + $0x180] ss:$24 sps:$4 sm:$0xff]  }
  0xa0   :  { %787 = vmatprep.subr.bf16.mxu1 %v3617_v54  ;;  %v3698_v54 = vld [vmem:[#allocation10 + $0x1b4] ss:$24 sps:$4 sm:$0xff]  }
  0xa1   :  { %735 = vmatpush1.bf16.msra.mxu0 %v3601_v51  ;;  %v3675_v51 = vld [vmem:[#allocation9 + $0x1c0] ss:$24 sps:$4 sm:$0xff]  }
  0xa2   :  { %736 = vmatprep.subr.bf16.mxu0 %v3603_v52  ;;  %v3683_v52 = vld [vmem:[#allocation9 + $0x1f4] ss:$24 sps:$4 sm:$0xff]  }
  0xa3   :  { %788 = vmatpush1.bf16.msra.mxu1 %v3620_v57  ;;  %v3696_v57 = vld [vmem:[#allocation10 + $0x1b0] ss:$24 sps:$4 sm:$0xff]  }
  0xa4   :  { %789 = vmatprep.subr.bf16.mxu1 %v3621_v58  ;;  %v3704_v58 = vld [vmem:[#allocation10 + $0x1e4] ss:$24 sps:$4 sm:$0xff]  }
  0xa5   :  { %737 = vmatpush1.bf16.msra.mxu0 %v3607_v55  ;;  %v3681_v55 = vld [vmem:[#allocation9 + $0x1f0] ss:$24 sps:$4 sm:$0xff]  }
  0xa6   :  { %738 = vmatprep.subr.bf16.mxu0 %v3609_v56  ;;  %v3689_v56 = vld [vmem:[#allocation9 + $0x224] ss:$24 sps:$4 sm:$0xff]  }
  0xa7   :  { %790 = vmatpush1.bf16.msra.mxu1 %v3626_v61  ;;  %v3702_v61 = vld [vmem:[#allocation10 + $0x1e0] ss:$24 sps:$4 sm:$0xff]  }
  0xa8   :  { %791 = vmatprep.subr.bf16.mxu1 %v3627_v62  ;;  %v3710_v62 = vld [vmem:[#allocation10 + $0x214] ss:$24 sps:$4 sm:$0xff]  }
  0xa9   :  { %739 = vmatpush1.bf16.msra.mxu0 %v3613_v59  ;;  %v3687_v59 = vld [vmem:[#allocation9 + $0x220] ss:$24 sps:$4 sm:$0xff]  }
  0xaa   :  { %740 = vmatprep.subr.bf16.mxu0 %v3615_v60  ;;  %v3695_v60 = vld [vmem:[#allocation9 + $0x254] ss:$24 sps:$4 sm:$0xff]  }
  0xab   :  { %792 = vmatpush1.bf16.msra.mxu1 %v3632_v3  ;;  %v3699_v3 = vld [vmem:[#allocation9 + $0x280] ss:$24 sps:$4 sm:$0xff]  }
  0xac   :  { %793 = vmatprep.subr.bf16.mxu1 %v3633_v4  ;;  %v3707_v4 = vld [vmem:[#allocation9 + $0x2b4] ss:$24 sps:$4 sm:$0xff]  }
  0xad   :  { %741 = vmatpush1.bf16.msra.mxu0 %v3619_v63  ;;  %v3693_v63 = vld [vmem:[#allocation9 + $0x250] ss:$24 sps:$4 sm:$0xff]  }
  0xae   :  { %816 = vmatprep.subr.bf16.mxu0 %v3625_v2  ;;  %v3716_v2 = vld [vmem:[#allocation10 + $0x244] ss:$24 sps:$4 sm:$0xff]  }
  0xaf   :  { %794 = vmatpush1.bf16.msra.mxu1 %v3638_v8  ;;  %v3705_v8 = vld [vmem:[#allocation9 + $0x2b0] ss:$24 sps:$4 sm:$0xff]  }
  0xb0   :  { %743 = vmatmul.mubr.bf16.vlgmr.msra.gmra.mrb[0].mxu0 %v4339_v5  ;;  %1445 = vmatprep.subr.bf16.mxu1 %v3644_v9  ;;  %v3713_v9 = vld [vmem:[#allocation9 + $0x2e4] ss:$24 sps:$4 sm:$0xff]  }
  0xb1   :  { %817 = vmatpush1.bf16.msra.mxu0 %v3623_v6  ;;  %752 = vmatprep.mubr.bf16.mxu0 %v4343_v24  ;;  %v3714_v6 = vld [vmem:[#allocation10 + $0x240] ss:$24 sps:$4 sm:$0xff]  }
  0xb2   :  { %818 = vmatprep.subr.bf16.mxu0 %v3631_v7  ;;  %796 = vmatmul.mubr.bf16.vlgmr.msra.gmra.mrb[0].mxu1 %v4339_v5  ;;  %v3719_v7 = vld [vmem:[#allocation10 + $0x274] ss:$24 sps:$4 sm:$0xff]  }
  0xb3   :  { %1446 = vmatpush1.bf16.msra.mxu1 %v3642_v12  ;;  %805 = vmatprep.mubr.bf16.mxu1 %v4343_v24  ;;  %v3711_v12 = vld [vmem:[#allocation9 + $0x2e0] ss:$24 sps:$4 sm:$0xff]  }
  0xb4   :  { %1447 = vmatprep.subr.bf16.mxu1 %v3650_v13  ;;  %v3722_v13 = vld [vmem:[#allocation10 + $0xc] ss:$24 sps:$4 sm:$0xff]  }
  0xb5   :  { %819 = vmatpush1.bf16.msra.mxu0 %v3629_v10  ;;  %v3717_v10 = vld [vmem:[#allocation10 + $0x270] ss:$24 sps:$4 sm:$0xff]  }
  0xb6   :  { %820 = vmatprep.subr.bf16.mxu0 %v3637_v11  ;;  %v3725_v11 = vld [vmem:[#allocation10 + $0x2a4] ss:$24 sps:$4 sm:$0xff]  }
  0xb7   :  { %1448 = vmatpush1.bf16.msra.mxu1 %v3648_v16  ;;  %v3720_v16 = vld [vmem:[#allocation10 + $0x8] ss:$24 sps:$4 sm:$0xff]  }
  0xb8   :  { %1449 = vmatprep.subr.bf16.mxu1 %v3656_v17  ;;  %753 = vmatmul.mubr.bf16.gmra.mrb[4].mxu0 %v4345_v29  ;;  %v3728_v17 = vld [vmem:[#allocation10 + $0x3c] ss:$24 sps:$4 sm:$0xff]  }
  0xb9   :  { %821 = vmatpush1.bf16.msra.mxu0 %v3635_v14  ;;  %848 = vmatprep.mubr.bf16.mxu0 %v4335_v45  ;;  %v3686_v45 = vld [vmem:[#allocation10 + $0x154] ss:$24 sps:$4 sm:$0xff]   ;;  %v3723_v14 = vld [vmem:[#allocation10 + $0x2a0] ss:$24 sps:$4 sm:$0xff]  }
  0xba   :  { %822 = vmatprep.subr.bf16.mxu0 %v3641_v15  ;;  %806 = vmatmul.mubr.bf16.gmra.mrb[4].mxu1 %v4345_v29  ;;  %v3731_v15 = vld [vmem:[#allocation10 + $0x2d4] ss:$24 sps:$4 sm:$0xff]  }
  0xbb   :  { %1450 = vmatpush1.bf16.msra.mxu1 %v3654_v20  ;;  %1477 = vmatprep.mubr.bf16.mxu1 %v4352_v46  ;;  %v130_v20 = vld [vmem:[#allocation7 + $0x10] sm:$0xff] }
  0xbc   :  { %1451 = vmatprep.subr.bf16.mxu1 %v3662_v21  ;;  %v3740_v21 = vld [vmem:[#allocation10 + $0x14] ss:$24 sps:$4 sm:$0xff]  }
  0xbd   :  { %823 = vmatpush1.bf16.msra.mxu0 %v3639_v18  ;;  %v3729_v18 = vld [vmem:[#allocation10 + $0x2d0] ss:$24 sps:$4 sm:$0xff]  }
  0xbe   :  { %824 = vmatprep.subr.bf16.mxu0 %v3647_v19  ;;  %v128_v19 = vld [vmem:[#allocation7] sm:$0xff] }
  0xbf   :  { %1452 = vmatpush1.bf16.msra.mxu1 %v3660_v30  ;;  %v4356_v26 = vpack.c.bf16 %v130_v20, %v128_v19  ;;  %v3737_v30 = vld [vmem:[#allocation10 + $0x9c] ss:$24 sps:$4 sm:$0xff]  }
  0xc0   :  { %1453 = vmatprep.subr.bf16.mxu1 %v3668_v31  ;;  %v3744_v31 = vld [vmem:[#allocation10 + $0x40] ss:$24 sps:$4 sm:$0xff]  }
  0xc1   :  { %825 = vmatpush1.bf16.msra.mxu0 %v3645_v27  ;;  %v3746_v27 = vld [vmem:[#allocation10 + $0x44] ss:$24 sps:$4 sm:$0xff]  }
  0xc2   :  { %826 = vmatprep.subr.bf16.mxu0 %v3653_v28  ;;  %v3732_v28 = vld [vmem:[#allocation10 + $0x68] ss:$24 sps:$4 sm:$0xff]  }
  0xc3   :  { %1454 = vmatpush1.bf16.msra.mxu1 %v3666_v34  ;;  %v3750_v34 = vld [vmem:[#allocation10 + $0x70] ss:$24 sps:$4 sm:$0xff]  }
  0xc4   :  { %1455 = vmatprep.subr.bf16.mxu1 %v3674_v35  ;;  %v3741_v35 = vld [vmem:[#allocation10 + $0xc8] ss:$24 sps:$4 sm:$0xff]  }
  0xc5   :  { %827 = vmatpush1.bf16.msra.mxu0 %v3651_v32  ;;  %v3752_v32 = vld [vmem:[#allocation10 + $0x74] ss:$24 sps:$4 sm:$0xff]  }
  0xc6   :  { %828 = vmatprep.subr.bf16.mxu0 %v3659_v33  ;;  %v3743_v33 = vld [vmem:[#allocation10 + $0xcc] ss:$24 sps:$4 sm:$0xff]  }
  0xc7   :  { %1456 = vmatpush1.bf16.msra.mxu1 %v3672_v38  ;;  %v3764_v38 = vld [vmem:[#allocation10 + $0xd4] ss:$24 sps:$4 sm:$0xff]  }
  0xc8   :  { %1457 = vmatprep.subr.bf16.mxu1 %v3680_v39  ;;  %v3747_v39 = vld [vmem:[#allocation10 + $0xf8] ss:$24 sps:$4 sm:$0xff]  }
  0xc9   :  { %829 = vmatpush1.bf16.msra.mxu0 %v3657_v36  ;;  %v3749_v36 = vld [vmem:[#allocation10 + $0xfc] ss:$24 sps:$4 sm:$0xff]  }
  0xca   :  { %830 = vmatprep.subr.bf16.mxu0 %v3665_v37  ;;  %v3756_v37 = vld [vmem:[#allocation10 + $0xa0] ss:$24 sps:$4 sm:$0xff]  }
  0xcb   :  { %1458 = vmatpush1.bf16.msra.mxu1 %v3678_v42  ;;  %v3753_v42 = vld [vmem:[#allocation10 + $0x128] ss:$24 sps:$4 sm:$0xff]  }
  0xcc   :  { %1459 = vmatprep.subr.bf16.mxu1 %v3686_v45  ;;  %v3776_v45 = vld [vmem:[#allocation10 + $0x134] ss:$24 sps:$4 sm:$0xff]  }
  0xcd   :  { %831 = vmatpush1.bf16.msra.mxu0 %v3663_v40  ;;  %v3755_v40 = vld [vmem:[#allocation10 + $0x12c] ss:$24 sps:$4 sm:$0xff]  }
  0xce   :  { %832 = vmatprep.subr.bf16.mxu0 %v3671_v41  ;;  %v3762_v41 = vld [vmem:[#allocation10 + $0xd0] ss:$24 sps:$4 sm:$0xff]  }
  0xcf   :  { %1460 = vmatpush1.bf16.msra.mxu1 %v3684_v49  ;;  %v3782_v49 = vld [vmem:[#allocation10 + $0x164] ss:$24 sps:$4 sm:$0xff]  }
  0xd0   :  { %1461 = vmatprep.subr.bf16.mxu1 %v3692_v50  ;;  %v3765_v50 = vld [vmem:[#allocation10 + $0x188] ss:$24 sps:$4 sm:$0xff]  }
  0xd1   :  { %833 = vmatpush1.bf16.msra.mxu0 %v3669_v47  ;;  %v3767_v47 = vld [vmem:[#allocation10 + $0x18c] ss:$24 sps:$4 sm:$0xff]  }
  0xd2   :  { %834 = vmatprep.subr.bf16.mxu0 %v3677_v48  ;;  %v3774_v48 = vld [vmem:[#allocation10 + $0x130] ss:$24 sps:$4 sm:$0xff]  }
  0xd3   :  { %1462 = vmatpush1.bf16.msra.mxu1 %v3690_v53  ;;  %v3788_v53 = vld [vmem:[#allocation10 + $0x194] ss:$24 sps:$4 sm:$0xff]  }
  0xd4   :  { %1463 = vmatprep.subr.bf16.mxu1 %v3698_v54  ;;  %v3771_v54 = vld [vmem:[#allocation10 + $0x1b8] ss:$24 sps:$4 sm:$0xff]  }
  0xd5   :  { %835 = vmatpush1.bf16.msra.mxu0 %v3675_v51  ;;  %v3773_v51 = vld [vmem:[#allocation10 + $0x1bc] ss:$24 sps:$4 sm:$0xff]  }
  0xd6   :  { %836 = vmatprep.subr.bf16.mxu0 %v3683_v52  ;;  %v3780_v52 = vld [vmem:[#allocation10 + $0x160] ss:$24 sps:$4 sm:$0xff]  }
  0xd7   :  { %1464 = vmatpush1.bf16.msra.mxu1 %v3696_v57  ;;  %v3794_v57 = vld [vmem:[#allocation10 + $0x1c4] ss:$24 sps:$4 sm:$0xff]  }
  0xd8   :  { %1465 = vmatprep.subr.bf16.mxu1 %v3704_v58  ;;  %v3777_v58 = vld [vmem:[#allocation10 + $0x1e8] ss:$24 sps:$4 sm:$0xff]  }
  0xd9   :  { %837 = vmatpush1.bf16.msra.mxu0 %v3681_v55  ;;  %v3779_v55 = vld [vmem:[#allocation10 + $0x1ec] ss:$24 sps:$4 sm:$0xff]  }
  0xda   :  { %838 = vmatprep.subr.bf16.mxu0 %v3689_v56  ;;  %v3786_v56 = vld [vmem:[#allocation10 + $0x190] ss:$24 sps:$4 sm:$0xff]  }
  0xdb   :  { %1466 = vmatpush1.bf16.msra.mxu1 %v3702_v61  ;;  %v3800_v61 = vld [vmem:[#allocation10 + $0x1f4] ss:$24 sps:$4 sm:$0xff]  }
  0xdc   :  { %1467 = vmatprep.subr.bf16.mxu1 %v3710_v62  ;;  %v3783_v62 = vld [vmem:[#allocation10 + $0x218] ss:$24 sps:$4 sm:$0xff]  }
  0xdd   :  { %839 = vmatpush1.bf16.msra.mxu0 %v3687_v59  ;;  %v3785_v59 = vld [vmem:[#allocation10 + $0x21c] ss:$24 sps:$4 sm:$0xff]  }
  0xde   :  { %840 = vmatprep.subr.bf16.mxu0 %v3695_v60  ;;  %v3792_v60 = vld [vmem:[#allocation10 + $0x1c0] ss:$24 sps:$4 sm:$0xff]  }
  0xdf   :  { %1468 = vmatpush1.bf16.msra.mxu1 %v3708_v1  ;;  %v3806_v1 = vld [vmem:[#allocation10 + $0x224] ss:$24 sps:$4 sm:$0xff]  }
  0xe0   :  { %1469 = vmatprep.subr.bf16.mxu1 %v3716_v2  ;;  %v3789_v2 = vld [vmem:[#allocation10 + $0x248] ss:$24 sps:$4 sm:$0xff]  }
  0xe1   :  { %841 = vmatpush1.bf16.msra.mxu0 %v3693_v63  ;;  %v3791_v63 = vld [vmem:[#allocation10 + $0x24c] ss:$24 sps:$4 sm:$0xff]  }
  0xe2   :  { %842 = vmatprep.subr.bf16.mxu0 %v3701_v0  ;;  %v3798_v0 = vld [vmem:[#allocation10 + $0x1f0] ss:$24 sps:$4 sm:$0xff]  }
  0xe3   :  { %1470 = vmatpush1.bf16.msra.mxu1 %v3714_v6  ;;  %v3812_v6 = vld [vmem:[#allocation10 + $0x254] ss:$24 sps:$4 sm:$0xff]  }
  0xe4   :  { %1471 = vmatprep.subr.bf16.mxu1 %v3719_v7  ;;  %v3795_v7 = vld [vmem:[#allocation10 + $0x278] ss:$24 sps:$4 sm:$0xff]  }
  0xe5   :  { %843 = vmatpush1.bf16.msra.mxu0 %v3699_v3  ;;  %v3797_v3 = vld [vmem:[#allocation10 + $0x27c] ss:$24 sps:$4 sm:$0xff]  }
  0xe6   :  { %844 = vmatprep.subr.bf16.mxu0 %v3707_v4  ;;  %v3804_v4 = vld [vmem:[#allocation10 + $0x220] ss:$24 sps:$4 sm:$0xff]  }
  0xe7   :  { %1472 = vmatpush1.bf16.msra.mxu1 %v3717_v10  ;;  %v3815_v10 = vld [vmem:[#allocation10 + $0x284] ss:$24 sps:$4 sm:$0xff]  }
  0xe8   :  { %1473 = vmatprep.subr.bf16.mxu1 %v3725_v11  ;;  %v3801_v11 = vld [vmem:[#allocation10 + $0x2a8] ss:$24 sps:$4 sm:$0xff]  }
  0xe9   :  { %845 = vmatpush1.bf16.msra.mxu0 %v3705_v8  ;;  %v3803_v8 = vld [vmem:[#allocation10 + $0x2ac] ss:$24 sps:$4 sm:$0xff]  }
  0xea   :  { %846 = vmatprep.subr.bf16.mxu0 %v3713_v9  ;;  %v3810_v9 = vld [vmem:[#allocation10 + $0x250] ss:$24 sps:$4 sm:$0xff]  }
  0xeb   :  { %1474 = vmatpush1.bf16.msra.mxu1 %v3723_v14  ;;  %v3818_v14 = vld [vmem:[#allocation10 + $0x2b4] ss:$24 sps:$4 sm:$0xff]  }
  0xec   :  { %1475 = vmatprep.subr.bf16.mxu1 %v3731_v15  ;;  %v3807_v15 = vld [vmem:[#allocation10 + $0x2d8] ss:$24 sps:$4 sm:$0xff]  }
  0xed   :  { %847 = vmatpush1.bf16.msra.mxu0 %v3711_v12  ;;  %v3809_v12 = vld [vmem:[#allocation10 + $0x2dc] ss:$24 sps:$4 sm:$0xff]  }
  0xee   :  { %1488 = vmatprep.subr.bf16.mxu0 %v3722_v13  ;;  %v3813_v13 = vld [vmem:[#allocation10 + $0x280] ss:$24 sps:$4 sm:$0xff]  }
  0xef   :  { %1476 = vmatpush1.bf16.msra.mxu1 %v3729_v18  ;;  %v3819_v18 = vld [vmem:[#allocation10 + $0x2e0] ss:$24 sps:$4 sm:$0xff]  }
  0xf0   :  { %849 = vmatmul.mubr.bf16.vlgmr.msra.gmra.mrb[8].mxu0 %v4339_v5  ;;  %1531 = vmatprep.subr.bf16.mxu1 %v3740_v21  ;;  %v3735_v5 = vld [vmem:[#allocation10 + $0x98] ss:$24 sps:$4 sm:$0xff]  }
  0xf1   :  { %1489 = vmatpush1.bf16.msra.mxu0 %v3720_v16  ;;  %858 = vmatprep.mubr.bf16.mxu0 %v4343_v24  ;;  %v3758_v24 = vld [vmem:[#allocation10 + $0xa4] ss:$24 sps:$4 sm:$0xff]   ;;  %v3816_v16 = vld [vmem:[#allocation10 + $0x2b0] ss:$24 sps:$4 sm:$0xff]  }
  0xf2   :  { %1490 = vmatprep.subr.bf16.mxu0 %v3728_v17  ;;  %1478 = vmatmul.mubr.bf16.vlgmr.msra.gmra.mrb[8].mxu1 %v4356_v26  ;;  %v3821_v17 = vld [vmem:[#allocation10 + $0x2e4] ss:$24 sps:$4 sm:$0xff]  }
  0xf3   :  { %1532 = vmatpush1.bf16.msra.mxu1 %v3738_v25  ;;  %1563 = vmatprep.mubr.bf16.mxu1 %v4352_v46 }
  0xf4   :  { %1533 = vmatprep.subr.bf16.mxu1 %v3746_v27 }
  0xf5   :  { %1491 = vmatpush1.bf16.msra.mxu0 %v3726_v22 }
  0xf6   :  { %1492 = vmatprep.subr.bf16.mxu0 %v3734_v23 }
  0xf7   :  { %1534 = vmatpush1.bf16.msra.mxu1 %v3744_v31 }
  0xf8   :  { %859 = vmatmul.mubr.bf16.gmra.mrb[12].mxu0 %v4345_v29  ;;  %1535 = vmatprep.subr.bf16.mxu1 %v3752_v32  ;;  %v3770_v29 = vld [vmem:[#allocation10 + $0x104] ss:$24 sps:$4 sm:$0xff]  }
  0xf9   :  { %1493 = vmatpush1.bf16.msra.mxu0 %v3732_v28  ;;  %1520 = vmatprep.mubr.bf16.mxu0 %v4352_v46  ;;  %v3759_v46 = vld [vmem:[#allocation10 + $0x158] ss:$24 sps:$4 sm:$0xff]  }
  0xfa   :  { %1494 = vmatprep.subr.bf16.mxu0 %v3737_v30 }
  0xfb   :  { %1536 = vmatpush1.bf16.msra.mxu1 %v3750_v34 }
  0xfc   :  { %1537 = vmatprep.subr.bf16.mxu1 %v3758_v24 }
  0xfd   :  { %1495 = vmatpush1.bf16.msra.mxu0 %v3735_v5 }
  0xfe   :  { %1496 = vmatprep.subr.bf16.mxu0 %v3743_v33 }
  0xff   :  { %1538 = vmatpush1.bf16.msra.mxu1 %v3756_v37 }
 0x100   :  { %1539 = vmatprep.subr.bf16.mxu1 %v3764_v38 }
 0x101   :  { %1497 = vmatpush1.bf16.msra.mxu0 %v3741_v35 }
 0x102   :  { %1498 = vmatprep.subr.bf16.mxu0 %v3749_v36 }
 0x103   :  { %1540 = vmatpush1.bf16.msra.mxu1 %v3762_v41 }
 0x104   :  { %1541 = vmatprep.subr.bf16.mxu1 %v3770_v29 }
 0x105   :  { %1499 = vmatpush1.bf16.msra.mxu0 %v3747_v39 }
 0x106   :  { %1500 = vmatprep.subr.bf16.mxu0 %v3755_v40 }
 0x107   :  { %1542 = vmatpush1.bf16.msra.mxu1 %v3768_v44 }
 0x108   :  { %1543 = vmatprep.subr.bf16.mxu1 %v3776_v45 }
 0x109   :  { %1501 = vmatpush1.bf16.msra.mxu0 %v3753_v42 }
 0x10a   :  { %1502 = vmatprep.subr.bf16.mxu0 %v3761_v43 }
 0x10b   :  { %1544 = vmatpush1.bf16.msra.mxu1 %v3774_v48 }
 0x10c   :  { %1545 = vmatprep.subr.bf16.mxu1 %v3782_v49 }
 0x10d   :  { %1503 = vmatpush1.bf16.msra.mxu0 %v3759_v46 }
 0x10e   :  { %1504 = vmatprep.subr.bf16.mxu0 %v3767_v47 }
 0x10f   :  { %1546 = vmatpush1.bf16.msra.mxu1 %v3780_v52 }
 0x110   :  { %1547 = vmatprep.subr.bf16.mxu1 %v3788_v53 }
 0x111   :  { %1505 = vmatpush1.bf16.msra.mxu0 %v3765_v50 }
 0x112   :  { %1506 = vmatprep.subr.bf16.mxu0 %v3773_v51 }
 0x113   :  { %1548 = vmatpush1.bf16.msra.mxu1 %v3786_v56 }
 0x114   :  { %1549 = vmatprep.subr.bf16.mxu1 %v3794_v57 }
 0x115   :  { %1507 = vmatpush1.bf16.msra.mxu0 %v3771_v54 }
 0x116   :  { %1508 = vmatprep.subr.bf16.mxu0 %v3779_v55 }
 0x117   :  { %1550 = vmatpush1.bf16.msra.mxu1 %v3792_v60 }
 0x118   :  { %1551 = vmatprep.subr.bf16.mxu1 %v3800_v61 }
 0x119   :  { %1509 = vmatpush1.bf16.msra.mxu0 %v3777_v58 }
 0x11a   :  { %1510 = vmatprep.subr.bf16.mxu0 %v3785_v59 }
 0x11b   :  { %1552 = vmatpush1.bf16.msra.mxu1 %v3798_v0 }
 0x11c   :  { %1553 = vmatprep.subr.bf16.mxu1 %v3806_v1 }
 0x11d   :  { %1511 = vmatpush1.bf16.msra.mxu0 %v3783_v62 }
 0x11e   :  { %1512 = vmatprep.subr.bf16.mxu0 %v3791_v63 }
 0x11f   :  { %1554 = vmatpush1.bf16.msra.mxu1 %v3804_v4 }
 0x120   :  { %1555 = vmatprep.subr.bf16.mxu1 %v3812_v6 }
 0x121   :  { %1513 = vmatpush1.bf16.msra.mxu0 %v3789_v2 }
 0x122   :  { %1514 = vmatprep.subr.bf16.mxu0 %v3797_v3 }
 0x123   :  { %1556 = vmatpush1.bf16.msra.mxu1 %v3810_v9 }
 0x124   :  { %1557 = vmatprep.subr.bf16.mxu1 %v3815_v10 }
 0x125   :  { %1515 = vmatpush1.bf16.msra.mxu0 %v3795_v7 }
 0x126   :  { %1516 = vmatprep.subr.bf16.mxu0 %v3803_v8 }
 0x127   :  { %1558 = vmatpush1.bf16.msra.mxu1 %v3813_v13 }
 0x128   :  { %1559 = vmatprep.subr.bf16.mxu1 %v3818_v14 }
 0x129   :  { %1517 = vmatpush1.bf16.msra.mxu0 %v3801_v11 }
 0x12a   :  { %1518 = vmatprep.subr.bf16.mxu0 %v3809_v12 }
 0x12b   :  { %1560 = vmatpush1.bf16.msra.mxu1 %v3816_v16 }
 0x12c   :  { %1561 = vmatprep.subr.bf16.mxu1 %v3821_v17 }
 0x12d   :  { %1519 = vmatpush1.bf16.msra.mxu0 %v3807_v15 }
 0x12f   :  { %1562 = vmatpush1.bf16.msra.mxu1 %v3819_v18 }
 0x130   :  { %1521 = vmatmul.mubr.bf16.vlgmr.msra.gmra.mrb[16].mxu0 %v4356_v26 }
 0x132   :  { %1564 = vmatmul.mubr.bf16.vlgmr.msra.gmra.mrb[12].mxu1 %v4356_v26 }
 0x183   :  { %v744_v19 = vpop.f32.mrb[0].mxu0 }
 0x184   :  { %v746_v20 = vpop.f32.mrb[1].mxu0 }
 0x185   :  { %v3390_v21 = vpack.c.bf16 %v746_v20, %v744_v19  ;;  %v748_v22 = vpop.f32.mrb[2].mxu0  ;;  %v797_v27 = vpop.f32.mrb[0].mxu1 }
 0x186   :  { %v750_v23 = vpop.f32.mrb[3].mxu0  ;;  %v799_v28 = vpop.f32.mrb[1].mxu1 }
 0x187   :  { %1646 = vst [vmem:[#allocation2] sm:$0xff] %v3390_v21  ;;  %v3393_v25 = vpack.c.bf16 %v750_v23, %v748_v22  ;;  %v3391_v30 = vpack.c.bf16 %v799_v28, %v797_v27  ;;  %v801_v31 = vpop.f32.mrb[2].mxu1 }
 0x188   :  { %v803_v32 = vpop.f32.mrb[3].mxu1 }
 0x189   :  { %1649 = vst [vmem:[#allocation2 + $0x18] sm:$0xff] %v3393_v25  ;;  %1647 = vst [vmem:[#allocation2 + $0x8] sm:$0xff] %v3391_v30  ;;  %v3394_v5 = vpack.c.bf16 %v803_v32, %v801_v31 }
 0x18b   :  { %1650 = vst [vmem:[#allocation2 + $0x20] sm:$0xff] %v3394_v5  ;;  %v754_v34 = vpop.f32.mrb[4].mxu0 }
 0x18c   :  { %v756_v26 = vpop.f32.mrb[5].mxu0 }
 0x18d   :  { %v3396_v24 = vpack.c.bf16 %v756_v26, %v754_v34  ;;  %v758_v35 = vpop.f32.mrb[6].mxu0  ;;  %v807_v38 = vpop.f32.mrb[4].mxu1 }
 0x18e   :  { %v760_v37 = vpop.f32.mrb[7].mxu0  ;;  %v809_v40 = vpop.f32.mrb[5].mxu1 }
 0x18f   :  { %1652 = vst [vmem:[#allocation2 + $0x48] sm:$0xff] %v3396_v24  ;;  %v3399_v39 = vpack.c.bf16 %v760_v37, %v758_v35  ;;  %v3397_v41 = vpack.c.bf16 %v809_v40, %v807_v38  ;;  %v811_v29 = vpop.f32.mrb[6].mxu1 }
 0x190   :  { %v3822_v33 = vld [vmem:[#allocation2] ss:$24 sps:$4 sm:$0xff]   ;;  %v813_v42 = vpop.f32.mrb[7].mxu1 }
 0x191   :  { %3456 = vmatprep.mubr.bf16.mxu0 %v3822_v33  ;;  %1655 = vst [vmem:[#allocation2 + $0x60] sm:$0xff] %v3399_v39  ;;  %1653 = vst [vmem:[#allocation2 + $0x50] sm:$0xff] %v3397_v41  ;;  %v3400_v43 = vpack.c.bf16 %v813_v42, %v811_v29 }
 0x192   :  { %v3824_v36 = vld [vmem:[#allocation2 + $0x8] ss:$24 sps:$4 sm:$0xff]   ;;  %v4368_v22 = vld [vmem:[#allocation2 + $0xc] ss:$24 sps:$4 sm:$0xff]  }
 0x193   :  { %3452 = vmatprep.subr.bf16.mxu0 %v3824_v36  ;;  %1656 = vst [vmem:[#allocation2 + $0x68] sm:$0xff] %v3400_v43 }
 0x194   :  { %3453 = vmatpush3.bf16.xpose.msra.mxu0 %v3824_v36 }
 0x198   :  { %v3823_v44 = vld [vmem:[#allocation2 + $0x48] ss:$24 sps:$4 sm:$0xff]  }
 0x199   :  { %3464 = vmatprep.mubr.bf16.mxu1 %v3823_v44 }
 0x19a   :  { %v3825_v45 = vld [vmem:[#allocation2 + $0x50] ss:$24 sps:$4 sm:$0xff]   ;;  %v4372_v25 = vld [vmem:[#allocation2 + $0x54] ss:$24 sps:$4 sm:$0xff]  }
 0x19b   :  { %3460 = vmatprep.subr.bf16.mxu1 %v3825_v45 }
 0x19c   :  { %3461 = vmatpush3.bf16.xpose.msra.mxu1 %v3825_v45 }
 0x1c3   :  { %v850_v46 = vpop.f32.mrb[8].mxu0 }
 0x1c4   :  { %v852_v47 = vpop.f32.mrb[9].mxu0 }
 0x1c5   :  { %v3392_v48 = vpack.c.bf16 %v852_v47, %v850_v46  ;;  %v854_v49 = vpop.f32.mrb[10].mxu0  ;;  %v1479_v52 = vpop.f32.mrb[8].mxu1 }
 0x1c6   :  { %v856_v50 = vpop.f32.mrb[11].mxu0  ;;  %v1481_v53 = vpop.f32.mrb[9].mxu1 }
 0x1c7   :  { %1648 = vst [vmem:[#allocation2 + $0x10] sm:$0xff] %v3392_v48  ;;  %v3395_v51 = vpack.c.bf16 %v856_v50, %v854_v49  ;;  %v3402_v54 = vpack.c.bf16 %v1481_v53, %v1479_v52  ;;  %v1483_v55 = vpop.f32.mrb[10].mxu1 }
 0x1c8   :  { %v1485_v57 = vpop.f32.mrb[11].mxu1 }
 0x1c9   :  { %1651 = vst [vmem:[#allocation2 + $0x28] sm:$0xff] %v3395_v51  ;;  %1694 = vst [vmem:[#allocation2 + $0x30] sm:$0xff] %v3402_v54  ;;  %v3405_v59 = vpack.c.bf16 %v1485_v57, %v1483_v55 }
 0x1cb   :  { %v860_v56 = vpop.f32.mrb[12].mxu0  ;;  %1697 = vst [vmem:[#allocation2 + $0x78] sm:$0xff] %v3405_v59 }
 0x1cc   :  { %v862_v58 = vpop.f32.mrb[13].mxu0 }
 0x1cd   :  { %v3398_v60 = vpack.c.bf16 %v862_v58, %v860_v56  ;;  %v864_v61 = vpop.f32.mrb[14].mxu0 }
 0x1ce   :  { %v866_v62 = vpop.f32.mrb[15].mxu0 }
 0x1cf   :  { %1654 = vst [vmem:[#allocation2 + $0x58] sm:$0xff] %v3398_v60  ;;  %v3401_v63 = vpack.c.bf16 %v866_v62, %v864_v61 }
 0x1d0   :  { %v3828_v14 = vld [vmem:[#allocation2 + $0x10] ss:$24 sps:$4 sm:$0xff]  }
 0x1d1   :  { %1657 = vst [vmem:[#allocation2 + $0x70] sm:$0xff] %v3401_v63  ;;  %v3830_v17 = vld [vmem:[#allocation2 + $0x30] ss:$0 sps:$4 sm:$0xff]  }
 0x1d2   :  { %v3831_v19 = vld [vmem:[#allocation2 + $0x78] ss:$0 sps:$4 sm:$0xff]  }
 0x1d8   :  { %v3829_v16 = vld [vmem:[#allocation2 + $0x58] ss:$24 sps:$4 sm:$0xff]  }
 0x203   :  { %v1522_v0 = vpop.f32.mrb[16].mxu0 }
 0x204   :  { %v1524_v1 = vpop.f32.mrb[17].mxu0 }
 0x205   :  { %v3403_v2 = vpack.c.bf16 %v1524_v1, %v1522_v0  ;;  %v1526_v3 = vpop.f32.mrb[18].mxu0  ;;  %v1565_v7 = vpop.f32.mrb[12].mxu1 }
 0x206   :  { %v1528_v4 = vpop.f32.mrb[19].mxu0  ;;  %v1567_v8 = vpop.f32.mrb[13].mxu1 }
 0x207   :  { %1695 = vst [vmem:[#allocation2 + $0x38] sm:$0xff] %v3403_v2  ;;  %v3406_v6 = vpack.c.bf16 %v1528_v4, %v1526_v3  ;;  %v3404_v9 = vpack.c.bf16 %v1567_v8, %v1565_v7  ;;  %v1569_v10 = vpop.f32.mrb[14].mxu1 }
 0x208   :  { %v1571_v11 = vpop.f32.mrb[15].mxu1 }
 0x209   :  { %1698 = vst [vmem:[#allocation2 + $0x80] sm:$0xff] %v3406_v6  ;;  %1696 = vst [vmem:[#allocation2 + $0x40] sm:$0xff] %v3404_v9  ;;  %v3407_v12 = vpack.c.bf16 %v1571_v11, %v1569_v10 }
 0x20b   :  { %1699 = vst [vmem:[#allocation2 + $0x88] sm:$0xff] %v3407_v12 }
 0x20e   :  { %v3826_v13 = vld [vmem:[#allocation2 + $0x38] ss:$0 sps:$4 sm:$0xff]  }
 0x20f   :  { %3454 = vmatprep.subr.bf16.mxu0 %v3826_v13 }
 0x210   :  { %v3827_v15 = vld [vmem:[#allocation2 + $0x80] ss:$0 sps:$4 sm:$0xff]   ;;  %3455 = vmatpush3.bf16.xpose.msra.mxu0 %v3826_v13 }
 0x211   :  { %3462 = vmatprep.subr.bf16.mxu1 %v3827_v15  ;;  %3468 = vmatprep.subr.bf16.mxu0 %v3828_v14  ;;  %v3832_v18 = vld [vmem:[#allocation2 + $0x40] ss:$0 sps:$4 sm:$0xff]  }
 0x212   :  { %3463 = vmatpush3.bf16.xpose.msra.mxu1 %v3827_v15  ;;  %v3833_v20 = vld [vmem:[#allocation2 + $0x88] ss:$0 sps:$4 sm:$0xff]   ;;  %v1942_v21 = vsel %vm1940_vm0, %v3832_v18, 0 }
 0x213   :  { %3476 = vmatprep.subr.bf16.mxu1 %v3829_v16  ;;  %v2008_v23 = vsel %vm1940_vm0, %v3833_v20, 0 }
 0x217   :  { %3457 = vmatmul.mubr.bf16.vlgmr.msra.gmra.mrb[20].mxu0 %v3830_v17 }
 0x218   :  { %3469 = vmatpush3.bf16.msra.mxu0 %v3828_v14 }
 0x219   :  { %3465 = vmatmul.mubr.bf16.vlgmr.msra.gmra.mrb[16].mxu1 %v3831_v19  ;;  %3516 = vmatprep.subr.msk.bf16.mxu0 %vm1940_vm0, %v3832_v18 }
 0x21a   :  { %3477 = vmatpush3.bf16.msra.mxu1 %v3829_v16 }
 0x21b   :  { %3517 = vmatprep.subr.msk.bf16.mxu1 %vm1940_vm0, %v3833_v20 }
 0x21c   :  { %3471 = vmatpush3.bf16.msra.mxu0 %v1942_v21  ;;  %v3837_v21 = vld [vmem:[#allocation2 + $0x4] ss:$24 sps:$4 sm:$0xff]  }
 0x21d   :  { %3484 = vmatprep.subr.bf16.mxu0 %v4368_v22 }
 0x21e   :  { %3479 = vmatpush3.bf16.msra.mxu1 %v2008_v23 }
 0x21f   :  { %3492 = vmatprep.subr.bf16.mxu1 %v4372_v25 }
 0x2ea   :  { %v3458_v27 = vpop.f32.mrb[20].mxu0 }
 0x2eb   :  { %v1772_v28 = vpop.f32.mrb[21].mxu0  ;;  %v1861_v30 = vsel %vm1854_vm1, %v3458_v27, -inf }
 0x2ec   :  { %1862 = vmax.xlane.f32.xlu1 %v1861_v30  ;;  %v3459_v31 = vpop.f32.mrb[22].mxu0  ;;  %v3466_v32 = vpop.f32.mrb[16].mxu1  ;;  %v1855_v5 = vsel %vm1854_vm1, %v1772_v28, -inf }
 0x2ed   :  { %1856 = vmax.xlane.f32.xlu0 %v1855_v5  ;;  %v1775_v33 = vpop.f32.mrb[23].mxu0  ;;  %v1840_v34 = vpop.f32.mrb[17].mxu1  ;;  %v1870_v37 = vsel %vm1854_vm1, %v3466_v32, -inf }
 0x2ee   :  { %v3467_v26 = vpop.f32.mrb[18].mxu1  ;;  %v1864_v24 = vsel %vm1854_vm1, %v1840_v34, -inf  ;;  %v1858_v36 = vsel %vm1854_vm1, %v1775_v33, -inf }
 0x2ef   :  { %v1843_v35 = vpop.f32.mrb[19].mxu1  ;;  %v3840_v26 = vld [vmem:[#allocation2 + $0x14] ss:$24 sps:$4 sm:$0xff]  }
 0x2f0   :  { %1865 = vmax.xlane.f32.xlu1 %v1864_v24  ;;  %v1867_v38 = vsel %vm1854_vm1, %v1843_v35, -inf  ;;  %v3842_v24 = vld [vmem:[#allocation2 + $0x5c] ss:$24 sps:$4 sm:$0xff]  }
 0x2f1   :  { %1859 = vmax.xlane.f32.xlu0 %v1858_v36 }
 0x2f4   :  { %1871 = vmax.xlane.f32.xlu1 %v1870_v37  ;;  %v3844_v37 = vld [vmem:[#allocation2 + $0x7c] ss:$0 sps:$4 sm:$0xff]  }
 0x2f5   :  { %1868 = vmax.xlane.f32.xlu0 %v1867_v38 }
 0x379   :  { %v1863_v39 = vpop.xlane.xlu1 %1862 }
 0x37a   :  { %v1875_v40 = vsub.f32 %v3458_v27, %v1863_v39  ;;  %v1857_v41 = vpop.xlane.xlu0 %1856  ;;  %v3836_v27 = vld [vmem:[#allocation2 + $0x3c] ss:$0 sps:$4 sm:$0xff]  }
 0x37b   :  { %v1873_v29 = vsub.f32 %v1772_v28, %v1857_v41 }
 0x37c   :  { %v1883_v42 = vmul.f32 1.442695, %v1875_v40 }
 0x37d   :  { %v1879_v43 = vmul.f32 1.442695, %v1873_v29  ;;  %v1866_v44 = vpop.xlane.xlu1 %1865 }
 0x37e   :  { %v1876_v45 = vsub.f32 %v1840_v34, %v1866_v44  ;;  %v1860_v46 = vpop.xlane.xlu0 %1859  ;;  %v3838_v34 = vld [vmem:[#allocation2 + $0x84] ss:$0 sps:$4 sm:$0xff]  }
 0x37f   :  { %3951 = vpow2.f32 %v1879_v43  ;;  %v1874_v47 = vsub.f32 %v1775_v33, %v1860_v46  ;;  %v3839_v33 = vld [vmem:[#allocation2 + $0x4c] ss:$24 sps:$4 sm:$0xff]  }
 0x380   :  { %3953 = vpow2.f32 %v1883_v42  ;;  %v1885_v48 = vmul.f32 1.442695, %v1876_v45 }
 0x381   :  { %v1881_v49 = vmul.f32 1.442695, %v1874_v47  ;;  %v1872_v50 = vpop.xlane.xlu1 %1871 }
 0x382   :  { %v1878_v51 = vsub.f32 %v3466_v32, %v1872_v50  ;;  %v1869_v52 = vpop.xlane.xlu0 %1868 }
 0x383   :  { %3955 = vpow2.f32 %v1881_v49  ;;  %v1877_v53 = vsub.f32 %v1843_v35, %v1869_v52  ;;  %v3843_v35 = vld [vmem:[#allocation2 + $0x44] ss:$0 sps:$4 sm:$0xff]  }
 0x384   :  { %3957 = vpow2.f32 %v1885_v48  ;;  %v1889_v54 = vmul.f32 1.442695, %v1878_v51  ;;  %v2330_v36 = vsel %vm1940_vm0, %v3843_v35, 0 }
 0x385   :  { %v1887_v55 = vmul.f32 1.442695, %v1877_v53 }
 0x387   :  { %3959 = vpow2.f32 %v1887_v55 }
 0x388   :  { %3961 = vpow2.f32 %v1889_v54 }
 0x389   :  { %v3952_v56 = vpop.eup %3951 }
 0x38a   :  { %v1891_v57 = vsel %vm1854_vm1, %v3952_v56, 0.0  ;;  %v3954_v58 = vpop.eup %3953 }
 0x38b   :  { %1892 = vadd.xlane.f32.xlu0 %v1891_v57  ;;  %v1897_v61 = vsel %vm1854_vm1, %v3954_v58, 0.0 }
 0x38d   :  { %v3956_v59 = vpop.eup %3955 }
 0x38e   :  { %v1894_v60 = vsel %vm1854_vm1, %v3956_v59, 0.0  ;;  %v3958_v62 = vpop.eup %3957 }
 0x38f   :  { %1895 = vadd.xlane.f32.xlu1 %v1894_v60  ;;  %1898 = vadd.xlane.f32.xlu0 %v1897_v61  ;;  %v1900_v0 = vsel %vm1854_vm1, %v3958_v62, 0.0 }
 0x391   :  { %v3960_v63 = vpop.eup %3959 }
 0x392   :  { %v1903_v1 = vsel %vm1854_vm1, %v3960_v63, 0.0  ;;  %v3962_v2 = vpop.eup %3961 }
 0x393   :  { %1901 = vadd.xlane.f32.xlu1 %v1900_v0  ;;  %1904 = vadd.xlane.f32.xlu0 %v1903_v1  ;;  %v1906_v3 = vsel %vm1854_vm1, %v3962_v2, 0.0 }
 0x397   :  { %1907 = vadd.xlane.f32.xlu1 %v1906_v3 }
 0x418   :  { %v1893_v4 = vpop.xlane.xlu0 %1892 }
 0x419   :  { %3963 = vrcp.f32 %v1893_v4 }
 0x41c   :  { %v1896_v6 = vpop.xlane.xlu1 %1895  ;;  %v1899_v7 = vpop.xlane.xlu0 %1898 }
 0x41d   :  { %3965 = vrcp.f32 %v1896_v6 }
 0x41e   :  { %3967 = vrcp.f32 %v1899_v7 }
 0x420   :  { %v1902_v8 = vpop.xlane.xlu1 %1901  ;;  %v1905_v9 = vpop.xlane.xlu0 %1904 }
 0x421   :  { %3969 = vrcp.f32 %v1902_v8 }
 0x422   :  { %3971 = vrcp.f32 %v1905_v9 }
 0x423   :  { %v3964_v11 = vpop.eup %3963 }
 0x424   :  { %v1908_v10 = vpop.xlane.xlu1 %1907  ;;  %v1915_v14 = vmul.f32 %v3964_v11, %v3952_v56 }
 0x425   :  { %3973 = vrcp.f32 %v1908_v10 }
 0x427   :  { %v3966_v12 = vpop.eup %3965 }
 0x428   :  { %v3968_v13 = vpop.eup %3967  ;;  %v1916_v15 = vmul.f32 %v3966_v12, %v3956_v59 }
 0x429   :  { %v1917_v16 = vmul.f32 %v3968_v13, %v3954_v58 }
 0x42a   :  { %v1921_v17 = vpack.c.bf16 %v1916_v15, %v1915_v14 }
 0x42b   :  { %v3970_v18 = vpop.eup %3969  ;;  %v1922_v19 = vpack.c.bf16 %v1917_v16, %v1917_v16 }
 0x42c   :  { %v3972_v20 = vpop.eup %3971  ;;  %3472 = vmatprep.mubr.msk.bf16.mxu0 %vm1854_vm1, %v1921_v17  ;;  %v1918_v23 = vmul.f32 %v3970_v18, %v3958_v62 }
 0x42d   :  { %3473 = vmatmul.mubr.msk.bf16.vlgmr.msra.gmra.mrb[24].mxu0 %vm1854_vm1, %v1922_v19  ;;  %v1919_v28 = vmul.f32 %v3972_v20, %v3960_v63 }
 0x42e   :  { %3485 = vmatpush3.bf16.xpose.msra.mxu0 %v4368_v22  ;;  %3488 = vmatprep.mubr.bf16.mxu0 %v3837_v21  ;;  %v3841_v22 = vld [vmem:[#allocation2 + $0x34] ss:$0 sps:$4 sm:$0xff]  }
 0x42f   :  { %v3974_v30 = vpop.eup %3973  ;;  %3486 = vmatprep.subr.bf16.mxu0 %v3836_v27  ;;  %v1923_v31 = vpack.c.bf16 %v1919_v28, %v1918_v23 }
 0x430   :  { %v1920_v32 = vmul.f32 %v3974_v30, %v3962_v2 }
 0x431   :  { %3480 = vmatprep.mubr.msk.bf16.mxu1 %vm1854_vm1, %v1923_v31 }
 0x432   :  { %v1924_v5 = vpack.c.bf16 %v1920_v32, %v1920_v32 }
 0x434   :  { %3481 = vmatmul.mubr.msk.bf16.vlgmr.msra.gmra.mrb[20].mxu1 %vm1854_vm1, %v1924_v5 }
 0x435   :  { %3493 = vmatpush3.bf16.xpose.msra.mxu1 %v4372_v25  ;;  %3496 = vmatprep.mubr.bf16.mxu1 %v3839_v33  ;;  %v3845_v25 = vld [vmem:[#allocation2 + $0x8c] ss:$0 sps:$4 sm:$0xff]  }
 0x436   :  { %3487 = vmatpush3.bf16.xpose.msra.mxu0 %v3836_v27  ;;  %3494 = vmatprep.subr.bf16.mxu1 %v3838_v34  ;;  %v2396_v38 = vsel %vm1940_vm0, %v3845_v25, 0 }
 0x437   :  { %3500 = vmatprep.subr.bf16.mxu0 %v3840_v26 }
 0x43d   :  { %3489 = vmatmul.mubr.bf16.vlgmr.msra.gmra.mrb[28].mxu0 %v3841_v22  ;;  %3495 = vmatpush3.bf16.xpose.msra.mxu1 %v3838_v34 }
 0x43e   :  { %3501 = vmatpush3.bf16.msra.mxu0 %v3840_v26  ;;  %3508 = vmatprep.subr.bf16.mxu1 %v3842_v24 }
 0x43f   :  { %3518 = vmatprep.subr.msk.bf16.mxu0 %vm1940_vm0, %v3843_v35  ;;  %v3854_v35 = vld [vmem:[#allocation13 + $0x4] ss:$8 sps:$4 sm:$0xff]  }
 0x442   :  { %3503 = vmatpush3.bf16.msra.mxu0 %v2330_v36 }
 0x444   :  { %3497 = vmatmul.mubr.bf16.vlgmr.msra.gmra.mrb[24].mxu1 %v3844_v37 }
 0x445   :  { %3509 = vmatpush3.bf16.msra.mxu1 %v3842_v24  ;;  %v3848_v24 = vld [vmem:[#allocation12 + $0x4] ss:$8 sps:$4 sm:$0xff]  }
 0x446   :  { %3519 = vmatprep.subr.msk.bf16.mxu1 %vm1940_vm0, %v3845_v25  ;;  %2708 = vmatprep.subr.bf16.mxu0 %v3848_v24  ;;  %v3906_v24 = vld [vmem:[#allocation13 + $0x90] ss:$8 sps:$4 sm:$0xff]  }
 0x449   :  { %3511 = vmatpush3.bf16.msra.mxu1 %v2396_v38 }
 0x44a   :  { %2975 = vmatprep.subr.bf16.mxu1 %v3854_v35  ;;  %v3909_v35 = vld [vmem:[#allocation12 + $0xb0] ss:$8 sps:$4 sm:$0xff]  }
 0x500   :  { %v3474_v39 = vpop.f32.mrb[24].mxu0 }
 0x501   :  { %v3410_v40 = vpack.c.bf16 %v3474_v39, %v3474_v39  ;;  %v1978_v41 = vpop.f32.mrb[25].mxu0 }
 0x502   :  { %v3408_v29 = vpack.c.bf16 %v1978_v41, %v1978_v41  ;;  %v3475_v42 = vpop.f32.mrb[26].mxu0 }
 0x503   :  { %2086 = vst [vmem:[#allocation3 + $0x10] sm:$0xf] %v3410_v40  ;;  %v1981_v43 = vpop.f32.mrb[27].mxu0 }
 0x504   :  { %2084 = vst [vmem:[#allocation3] sm:$0xf] %v3408_v29  ;;  %v3409_v44 = vpack.c.bf16 %v1981_v43, %v1981_v43 }
 0x506   :  { %2085 = vst [vmem:[#allocation3 + $0x8] sm:$0xf] %v3409_v44 }
 0x507   :  { %v3482_v45 = vpop.f32.mrb[20].mxu1 }
 0x508   :  { %v3413_v46 = vpack.c.bf16 %v3482_v45, %v3482_v45  ;;  %v2044_v47 = vpop.f32.mrb[21].mxu1 }
 0x509   :  { %v3411_v48 = vpack.c.bf16 %v2044_v47, %v2044_v47  ;;  %v3483_v49 = vpop.f32.mrb[22].mxu1  ;;  %v3846_v47 = vld [vmem:[#allocation12] ss:$8 sps:$4 sm:$0xff]  }
 0x50a   :  { %2089 = vst [vmem:[#allocation3 + $0x28] sm:$0xf] %v3413_v46  ;;  %v2047_v50 = vpop.f32.mrb[23].mxu1 }
 0x50b   :  { %2087 = vst [vmem:[#allocation3 + $0x18] sm:$0xf] %v3411_v48  ;;  %v3412_v51 = vpack.c.bf16 %v2047_v50, %v2047_v50  ;;  %v3851_v50 = vld [vmem:[#allocation12 + $0x14] ss:$8 sps:$4 sm:$0xff]  }
 0x50d   :  { %2088 = vst [vmem:[#allocation3 + $0x20] sm:$0xf] %v3412_v51 }
 0x510   :  { %v3490_v52 = vpop.f32.mrb[28].mxu0 }
 0x511   :  { %v2162_v53 = vpop.f32.mrb[29].mxu0  ;;  %v2250_v58 = vsel %vm1854_vm1, %v3490_v52, -inf }
 0x512   :  { %v3491_v54 = vpop.f32.mrb[30].mxu0  ;;  %v2244_v55 = vsel %vm1854_vm1, %v2162_v53, -inf }
 0x513   :  { %2245 = vmax.xlane.f32.xlu0 %v2244_v55  ;;  %v2165_v56 = vpop.f32.mrb[31].mxu0  ;;  %v3849_v54 = vld [vmem:[#allocation12 + $0x10] ss:$8 sps:$4 sm:$0xff]  }
 0x514   :  { %v2247_v57 = vsel %vm1854_vm1, %v2165_v56, -inf }
 0x515   :  { %2248 = vmax.xlane.f32.xlu1 %v2247_v57 }
 0x517   :  { %2251 = vmax.xlane.f32.xlu0 %v2250_v58  ;;  %v3498_v59 = vpop.f32.mrb[24].mxu1 }
 0x518   :  { %v2230_v60 = vpop.f32.mrb[25].mxu1  ;;  %v2259_v1 = vsel %vm1854_vm1, %v3498_v59, -inf }
 0x519   :  { %v3499_v61 = vpop.f32.mrb[26].mxu1  ;;  %v2253_v62 = vsel %vm1854_vm1, %v2230_v60, -inf }
 0x51a   :  { %2254 = vmax.xlane.f32.xlu1 %v2253_v62  ;;  %v2233_v63 = vpop.f32.mrb[27].mxu1  ;;  %v3855_v61 = vld [vmem:[#allocation12 + $0x20] ss:$8 sps:$4 sm:$0xff]   ;;  %v3860_v62 = vld [vmem:[#allocation13 + $0x14] ss:$8 sps:$4 sm:$0xff]  }
 0x51b   :  { %v2256_v0 = vsel %vm1854_vm1, %v2233_v63, -inf }
 0x51c   :  { %2257 = vmax.xlane.f32.xlu0 %v2256_v0  ;;  %v3858_v0 = vld [vmem:[#allocation13 + $0x10] ss:$8 sps:$4 sm:$0xff]  }
 0x51e   :  { %2260 = vmax.xlane.f32.xlu1 %v2259_v1  ;;  %v3861_v1 = vld [vmem:[#allocation12 + $0x30] ss:$8 sps:$4 sm:$0xff]  }
 0x5a0   :  { %v2246_v2 = vpop.xlane.xlu0 %2245 }
 0x5a1   :  { %v2262_v3 = vsub.f32 %v2162_v53, %v2246_v2  ;;  %v3866_v2 = vld [vmem:[#allocation13 + $0x24] ss:$8 sps:$4 sm:$0xff]  }
 0x5a2   :  { %v2249_v4 = vpop.xlane.xlu1 %2248 }
 0x5a3   :  { %v2268_v6 = vmul.f32 1.442695, %v2262_v3  ;;  %v2263_v7 = vsub.f32 %v2165_v56, %v2249_v4  ;;  %v3857_v56 = vld [vmem:[#allocation12 + $0x24] ss:$8 sps:$4 sm:$0xff]   ;;  %v3864_v4 = vld [vmem:[#allocation13 + $0x20] ss:$8 sps:$4 sm:$0xff]  }
 0x5a4   :  { %v2252_v8 = vpop.xlane.xlu0 %2251  ;;  %v3869_v3 = vld [vmem:[#allocation12 + $0x44] ss:$8 sps:$4 sm:$0xff]  }
 0x5a5   :  { %3975 = vpow2.f32 %v2268_v6  ;;  %v2270_v9 = vmul.f32 1.442695, %v2263_v7  ;;  %v2264_v10 = vsub.f32 %v3490_v52, %v2252_v8  ;;  %v3867_v6 = vld [vmem:[#allocation12 + $0x40] ss:$8 sps:$4 sm:$0xff]   ;;  %v3872_v7 = vld [vmem:[#allocation13 + $0x34] ss:$8 sps:$4 sm:$0xff]  }
 0x5a6   :  { %v3875_v8 = vld [vmem:[#allocation12 + $0x54] ss:$8 sps:$4 sm:$0xff]  }
 0x5a7   :  { %3977 = vpow2.f32 %v2270_v9  ;;  %v2272_v11 = vmul.f32 1.442695, %v2264_v10  ;;  %v2255_v12 = vpop.xlane.xlu1 %2254  ;;  %v3870_v9 = vld [vmem:[#allocation13 + $0x30] ss:$8 sps:$4 sm:$0xff]  }
 0x5a8   :  { %v2265_v13 = vsub.f32 %v2230_v60, %v2255_v12  ;;  %v3873_v10 = vld [vmem:[#allocation12 + $0x50] ss:$8 sps:$4 sm:$0xff]   ;;  %v3881_v12 = vld [vmem:[#allocation12 + $0x64] ss:$8 sps:$4 sm:$0xff]  }
 0x5a9   :  { %3979 = vpow2.f32 %v2272_v11  ;;  %v2258_v14 = vpop.xlane.xlu0 %2257  ;;  %v3878_v11 = vld [vmem:[#allocation13 + $0x44] ss:$8 sps:$4 sm:$0xff]  }
 0x5aa   :  { %v2274_v15 = vmul.f32 1.442695, %v2265_v13  ;;  %v2266_v16 = vsub.f32 %v2233_v63, %v2258_v14  ;;  %v3863_v63 = vld [vmem:[#allocation12 + $0x34] ss:$8 sps:$4 sm:$0xff]   ;;  %v3876_v13 = vld [vmem:[#allocation13 + $0x40] ss:$8 sps:$4 sm:$0xff]  }
 0x5ab   :  { %v2261_v17 = vpop.xlane.xlu1 %2260  ;;  %v3879_v14 = vld [vmem:[#allocation12 + $0x60] ss:$8 sps:$4 sm:$0xff]  }
 0x5ac   :  { %3981 = vpow2.f32 %v2274_v15  ;;  %v2276_v18 = vmul.f32 1.442695, %v2266_v16  ;;  %v2267_v19 = vsub.f32 %v3498_v59, %v2261_v17  ;;  %v3852_v59 = vld [vmem:[#allocation13] ss:$8 sps:$4 sm:$0xff]   ;;  %v3884_v15 = vld [vmem:[#allocation13 + $0x54] ss:$8 sps:$4 sm:$0xff]  }
 0x5ad   :  { %v3887_v16 = vld [vmem:[#allocation12 + $0x74] ss:$8 sps:$4 sm:$0xff]   ;;  %v3882_v17 = vld [vmem:[#allocation13 + $0x50] ss:$8 sps:$4 sm:$0xff]  }
 0x5ae   :  { %3983 = vpow2.f32 %v2276_v18  ;;  %v2278_v20 = vmul.f32 1.442695, %v2267_v19  ;;  %v3885_v18 = vld [vmem:[#allocation12 + $0x70] ss:$8 sps:$4 sm:$0xff]   ;;  %v3890_v19 = vld [vmem:[#allocation13 + $0x64] ss:$8 sps:$4 sm:$0xff]  }
 0x5af   :  { %v3976_v21 = vpop.eup %3975 }
 0x5b0   :  { %3985 = vpow2.f32 %v2278_v20  ;;  %v2280_v23 = vsel %vm1854_vm1, %v3976_v21, 0.0  ;;  %v3893_v20 = vld [vmem:[#allocation12 + $0x84] ss:$8 sps:$4 sm:$0xff]  }
 0x5b1   :  { %v3978_v27 = vpop.eup %3977  ;;  %2281 = vadd.xlane.f32.xlu0 %v2280_v23  ;;  %v3891_v23 = vld [vmem:[#allocation12 + $0x80] ss:$8 sps:$4 sm:$0xff]  }
 0x5b2   :  { %v2283_v28 = vsel %vm1854_vm1, %v3978_v27, 0.0 }
 0x5b3   :  { %v3980_v30 = vpop.eup %3979  ;;  %2284 = vadd.xlane.f32.xlu1 %v2283_v28  ;;  %v3899_v28 = vld [vmem:[#allocation12 + $0x94] ss:$8 sps:$4 sm:$0xff]  }
 0x5b4   :  { %v2286_v31 = vsel %vm1854_vm1, %v3980_v30, 0.0 }
 0x5b5   :  { %2287 = vadd.xlane.f32.xlu0 %v2286_v31  ;;  %v3897_v31 = vld [vmem:[#allocation12 + $0x90] ss:$8 sps:$4 sm:$0xff]  }
 0x5b6   :  { %v3982_v32 = vpop.eup %3981 }
 0x5b7   :  { %v2289_v5 = vsel %vm1854_vm1, %v3982_v32, 0.0 }
 0x5b8   :  { %v3984_v33 = vpop.eup %3983  ;;  %2290 = vadd.xlane.f32.xlu1 %v2289_v5  ;;  %v3905_v5 = vld [vmem:[#allocation12 + $0xa4] ss:$8 sps:$4 sm:$0xff]  }
 0x5b9   :  { %v2292_v34 = vsel %vm1854_vm1, %v3984_v33, 0.0 }
 0x5ba   :  { %v3986_v26 = vpop.eup %3985  ;;  %2293 = vadd.xlane.f32.xlu0 %v2292_v34  ;;  %v3903_v34 = vld [vmem:[#allocation12 + $0xa0] ss:$8 sps:$4 sm:$0xff]  }
 0x5bb   :  { %v2295_v22 = vsel %vm1854_vm1, %v3986_v26, 0.0 }
 0x5bc   :  { %2296 = vadd.xlane.f32.xlu1 %v2295_v22  ;;  %v3911_v22 = vld [vmem:[#allocation12 + $0xb4] ss:$8 sps:$4 sm:$0xff]  }
 0x63e   :  { %v2282_v36 = vpop.xlane.xlu0 %2281 }
 0x63f   :  { %3987 = vrcp.f32 %v2282_v36  ;;  %v3914_v36 = vld [vmem:[#allocation13 + $0xa4] ss:$8 sps:$4 sm:$0xff]  }
 0x640   :  { %v2285_v37 = vpop.xlane.xlu1 %2284 }
 0x641   :  { %3989 = vrcp.f32 %v2285_v37  ;;  %v3912_v37 = vld [vmem:[#allocation13 + $0xa0] ss:$8 sps:$4 sm:$0xff]  }
 0x642   :  { %v2288_v25 = vpop.xlane.xlu0 %2287 }
 0x643   :  { %3991 = vrcp.f32 %v2288_v25  ;;  %v3917_v25 = vld [vmem:[#allocation12 + $0xc4] ss:$8 sps:$4 sm:$0xff]  }
 0x645   :  { %v2291_v38 = vpop.xlane.xlu1 %2290 }
 0x646   :  { %3993 = vrcp.f32 %v2291_v38  ;;  %v3920_v38 = vld [vmem:[#allocation13 + $0xb4] ss:$8 sps:$4 sm:$0xff]  }
 0x647   :  { %v2294_v39 = vpop.xlane.xlu0 %2293 }
 0x648   :  { %3995 = vrcp.f32 %v2294_v39  ;;  %v3915_v39 = vld [vmem:[#allocation12 + $0xc0] ss:$8 sps:$4 sm:$0xff]  }
 0x649   :  { %v3988_v40 = vpop.eup %3987  ;;  %v2297_v41 = vpop.xlane.xlu1 %2296 }
 0x64a   :  { %3997 = vrcp.f32 %v2297_v41  ;;  %v2304_v42 = vmul.f32 %v3988_v40, %v3976_v21  ;;  %v3888_v21 = vld [vmem:[#allocation13 + $0x60] ss:$8 sps:$4 sm:$0xff]   ;;  %v3918_v40 = vld [vmem:[#allocation13 + $0xb0] ss:$8 sps:$4 sm:$0xff]   ;;  %v3923_v41 = vld [vmem:[#allocation12 + $0xd4] ss:$8 sps:$4 sm:$0xff]  }
 0x64b   :  { %v3990_v29 = vpop.eup %3989 }
 0x64c   :  { %v2305_v43 = vmul.f32 %v3990_v29, %v3978_v27  ;;  %v3896_v27 = vld [vmem:[#allocation13 + $0x74] ss:$8 sps:$4 sm:$0xff]   ;;  %v3926_v29 = vld [vmem:[#allocation13 + $0xc4] ss:$8 sps:$4 sm:$0xff]  }
 0x64d   :  { %v3992_v44 = vpop.eup %3991 }
 0x64e   :  { %v2306_v45 = vmul.f32 %v3992_v44, %v3980_v30  ;;  %v2310_v46 = vpack.c.bf16 %v2305_v43, %v2304_v42  ;;  %v3894_v30 = vld [vmem:[#allocation13 + $0x70] ss:$8 sps:$4 sm:$0xff]   ;;  %v3924_v43 = vld [vmem:[#allocation13 + $0xc0] ss:$8 sps:$4 sm:$0xff]   ;;  %v3929_v44 = vld [vmem:[#allocation12 + $0xe4] ss:$8 sps:$4 sm:$0xff]  }
 0x64f   :  { %v3921_v42 = vld [vmem:[#allocation12 + $0xd0] ss:$8 sps:$4 sm:$0xff]  }
 0x650   :  { %v3994_v48 = vpop.eup %3993  ;;  %3504 = vmatprep.mubr.msk.bf16.mxu0 %vm1854_vm1, %v2310_v46  ;;  %v2311_v49 = vpack.c.bf16 %v2306_v45, %v2306_v45  ;;  %v3932_v45 = vld [vmem:[#allocation13 + $0xd4] ss:$8 sps:$4 sm:$0xff]   ;;  %v3927_v46 = vld [vmem:[#allocation12 + $0xe0] ss:$8 sps:$4 sm:$0xff]  }
 0x651   :  { %v2307_v52 = vmul.f32 %v3994_v48, %v3982_v32  ;;  %v3902_v32 = vld [vmem:[#allocation13 + $0x84] ss:$8 sps:$4 sm:$0xff]   ;;  %v3935_v48 = vld [vmem:[#allocation12 + $0xf4] ss:$8 sps:$4 sm:$0xff]  }
 0x652   :  { %v3996_v51 = vpop.eup %3995  ;;  %3505 = vmatmul.mubr.msk.bf16.vlgmr.msra.gmra.mrb[32].mxu0 %vm1854_vm1, %v2311_v49  ;;  %v3938_v49 = vld [vmem:[#allocation13 + $0xe4] ss:$8 sps:$4 sm:$0xff]  }
 0x653   :  { %v2308_v53 = vmul.f32 %v3996_v51, %v3984_v33  ;;  %2709 = vmatpush1.bf16.msra.mxu0 %v3846_v47  ;;  %v3900_v33 = vld [vmem:[#allocation13 + $0x80] ss:$8 sps:$4 sm:$0xff]   ;;  %v3930_v47 = vld [vmem:[#allocation13 + $0xd0] ss:$8 sps:$4 sm:$0xff]  }
 0x654   :  { %v3998_v55 = vpop.eup %3997  ;;  %2710 = vmatprep.subr.bf16.mxu0 %v3851_v50  ;;  %v3933_v50 = vld [vmem:[#allocation12 + $0xf0] ss:$8 sps:$4 sm:$0xff]   ;;  %v3936_v51 = vld [vmem:[#allocation13 + $0xe0] ss:$8 sps:$4 sm:$0xff]  }
 0x655   :  { %v2309_v57 = vmul.f32 %v3998_v55, %v3986_v26  ;;  %v2312_v58 = vpack.c.bf16 %v2308_v53, %v2307_v52  ;;  %v3908_v26 = vld [vmem:[#allocation13 + $0x94] ss:$8 sps:$4 sm:$0xff]   ;;  %v3942_v53 = vld [vmem:[#allocation13 + $0xf0] ss:$8 sps:$4 sm:$0xff]  }
 0x656   :  { %v3944_v52 = vld [vmem:[#allocation13 + $0xf4] ss:$8 sps:$4 sm:$0xff]  }
 0x657   :  { %v2313_v60 = vpack.c.bf16 %v2309_v57, %v2309_v57  ;;  %3512 = vmatprep.mubr.msk.bf16.mxu1 %vm1854_vm1, %v2312_v58  ;;  %2711 = vmatpush1.bf16.msra.mxu0 %v3849_v54 }
 0x658   :  { %2712 = vmatprep.subr.bf16.mxu0 %v3857_v56 }
 0x659   :  { %3513 = vmatmul.mubr.msk.bf16.vlgmr.msra.gmra.mrb[28].mxu1 %vm1854_vm1, %v2313_v60 }
 0x65a   :  { %2976 = vmatpush1.bf16.msra.mxu1 %v3852_v59 }
 0x65b   :  { %2977 = vmatprep.subr.bf16.mxu1 %v3860_v62  ;;  %2713 = vmatpush1.bf16.msra.mxu0 %v3855_v61 }
 0x65c   :  { %2714 = vmatprep.subr.bf16.mxu0 %v3863_v63 }
 0x65e   :  { %2978 = vmatpush1.bf16.msra.mxu1 %v3858_v0 }
 0x65f   :  { %2979 = vmatprep.subr.bf16.mxu1 %v3866_v2  ;;  %2715 = vmatpush1.bf16.msra.mxu0 %v3861_v1 }
 0x660   :  { %2716 = vmatprep.subr.bf16.mxu0 %v3869_v3 }
 0x662   :  { %2980 = vmatpush1.bf16.msra.mxu1 %v3864_v4  ;;  %v3939_v4 = vld [vmem:[#allocation3] ss:$8 sps:$4 sm:$0xff]  }
 0x663   :  { %2981 = vmatprep.subr.bf16.mxu1 %v3872_v7  ;;  %2717 = vmatpush1.bf16.msra.mxu0 %v3867_v6  ;;  %v3945_v7 = vld [vmem:[#allocation3 + $0x10] ss:$24 sps:$4 sm:$0xff]  }
 0x664   :  { %2718 = vmatprep.subr.bf16.mxu0 %v3875_v8 }
 0x666   :  { %2982 = vmatpush1.bf16.msra.mxu1 %v3870_v9 }
 0x667   :  { %2983 = vmatprep.subr.bf16.mxu1 %v3878_v11  ;;  %2719 = vmatpush1.bf16.msra.mxu0 %v3873_v10  ;;  %v3950_v10 = vld [vmem:[#allocation3 + $0x18] ss:$8 sps:$4 sm:$0xff]   ;;  %v2518_v11 = vlaneseq }
 0x668   :  { %2720 = vmatprep.subr.bf16.mxu0 %v3881_v12 }
 0x669   :  { %v2519_v12 = vshrl.u32 %v2518_v11, 7 }
 0x66a   :  { %2984 = vmatpush1.bf16.msra.mxu1 %v3876_v13 }
 0x66b   :  { %2985 = vmatprep.subr.bf16.mxu1 %v3884_v15  ;;  %2721 = vmatpush1.bf16.msra.mxu0 %v3879_v14  ;;  %v2520_v13 = vsub.s32 0, %v2519_v12  ;;  %v2516_v14 = vld [vmem:[%s4454_s5] sm:$0x3]  ;;  %v2524_v15 = vsub.s32 1, %v2519_v12  ;;  %s4199_s5 = smov [#allocation16]  }
 0x66c   :  { %2722 = vmatprep.subr.bf16.mxu0 %v3887_v16  ;;  %s3047_s28 = sshll.u32 %s4199_s5, 4  ;;  %s3048_s28 = int_to_ptr.vmem [resolvable:$true] %s3047_s28 }
 0x66d   :  { %v2521_v16 = vrot.slane %v2516_v14, %v2520_v13  ;;  %s4131_s24 = scalar_lea.vmem %s3048_s28, 512  ;;  %p4136_p7 = scmp.lt.s32.totalorder %s3048_s28, %s3048_s28 }
 0x66e   :  { %2986 = vmatpush1.bf16.msra.mxu1 %v3882_v17  ;;  %v2525_v17 = vrot.slane %v2516_v14, %v2524_v15  ;;  %p4132_p6 = scmp.ne.s32.totalorder %s3048_s28, %s4131_s24  ;;  %p4137_p8 = scmp.lt.s32.totalorder %s4131_s24, %s4131_s24 }
 0x66f   :  { %2987 = vmatprep.subr.bf16.mxu1 %v3890_v19  ;;  %2723 = vmatpush1.bf16.msra.mxu0 %v3885_v18  ;;  %v2793_v18 = vld [vmem:[%s4456_s7] sm:$0x3]  ;;  %s4200_s7 = smov [#allocation15]  }
 0x670   :  { %2724 = vmatprep.subr.bf16.mxu0 %v3893_v20  ;;  %s3035_s3 = sshll.u32 %s4200_s7, 4  ;;  %p4138_p9 = por %p4137_p8, %p4136_p7  ;;  %s3036_s3 = int_to_ptr.vmem [resolvable:$true] %s3035_s3 }
 0x672   :  { %2988 = vmatpush1.bf16.msra.mxu1 %v3888_v21  ;;  %p4139_p10 = pnand %p4138_p9, %p4132_p6 }
 0x673   :  { %2989 = vmatprep.subr.bf16.mxu1 %v3896_v27  ;;  %2725 = vmatpush1.bf16.msra.mxu0 %v3891_v23  ;;  %v2798_v23 = vrot.slane %v2793_v18, %v2520_v13 }
 0x674   :  { %2726 = vmatprep.subr.bf16.mxu0 %v3899_v28 }
 0x676   :  { %2990 = vmatpush1.bf16.msra.mxu1 %v3894_v30  ;;  %v2802_v30 = vrot.slane %v2793_v18, %v2524_v15 }
 0x677   :  { %2991 = vmatprep.subr.bf16.mxu1 %v3902_v32  ;;  %2727 = vmatpush1.bf16.msra.mxu0 %v3897_v31 }
 0x678   :  { %2728 = vmatprep.subr.bf16.mxu0 %v3905_v5 }
 0x67a   :  { %2992 = vmatpush1.bf16.msra.mxu1 %v3900_v33 }
 0x67b   :  { %2993 = vmatprep.subr.bf16.mxu1 %v3908_v26  ;;  %2729 = vmatpush1.bf16.msra.mxu0 %v3903_v34 }
 0x67c   :  { %2730 = vmatprep.subr.bf16.mxu0 %v3911_v22 }
 0x67e   :  { %2994 = vmatpush1.bf16.msra.mxu1 %v3906_v24 }
 0x67f   :  { %2995 = vmatprep.subr.bf16.mxu1 %v3914_v36  ;;  %2731 = vmatpush1.bf16.msra.mxu0 %v3909_v35 }
 0x680   :  { %2732 = vmatprep.subr.bf16.mxu0 %v3917_v25 }
 0x682   :  { %2996 = vmatpush1.bf16.msra.mxu1 %v3912_v37 }
 0x683   :  { %2997 = vmatprep.subr.bf16.mxu1 %v3920_v38  ;;  %2733 = vmatpush1.bf16.msra.mxu0 %v3915_v39 }
 0x684   :  { %2734 = vmatprep.subr.bf16.mxu0 %v3923_v41 }
 0x686   :  { %2998 = vmatpush1.bf16.msra.mxu1 %v3918_v40 }
 0x687   :  { %2999 = vmatprep.subr.bf16.mxu1 %v3926_v29  ;;  %2735 = vmatpush1.bf16.msra.mxu0 %v3921_v42 }
 0x688   :  { %2736 = vmatprep.subr.bf16.mxu0 %v3929_v44 }
 0x68a   :  { %3000 = vmatpush1.bf16.msra.mxu1 %v3924_v43 }
 0x68b   :  { %3001 = vmatprep.subr.bf16.mxu1 %v3932_v45  ;;  %2737 = vmatpush1.bf16.msra.mxu0 %v3927_v46 }
 0x68c   :  { %2738 = vmatprep.subr.bf16.mxu0 %v3935_v48 }
 0x68e   :  { %3002 = vmatpush1.bf16.msra.mxu1 %v3930_v47 }
 0x68f   :  { %3003 = vmatprep.subr.bf16.mxu1 %v3938_v49  ;;  %2739 = vmatpush1.bf16.msra.mxu0 %v3933_v50 }
 0x692   :  { %3004 = vmatpush1.bf16.msra.mxu1 %v3936_v51 }
 0x693   :  { %3005 = vmatprep.subr.bf16.mxu1 %v3944_v52 }
 0x696   :  { %3006 = vmatpush1.bf16.msra.mxu1 %v3942_v53 }
 0x725   :  { %v3506_v54 = vpop.f32.mrb[32].mxu0 }
 0x726   :  { %v3416_v55 = vpack.c.bf16 %v3506_v54, %v3506_v54  ;;  %v2366_v56 = vpop.f32.mrb[33].mxu0 }
 0x727   :  { %v3414_v57 = vpack.c.bf16 %v2366_v56, %v2366_v56  ;;  %v3507_v58 = vpop.f32.mrb[34].mxu0 }
 0x728   :  { %2474 = vst [vmem:[#allocation3 + $0x14] sm:$0xf] %v3416_v55  ;;  %v2369_v59 = vpop.f32.mrb[35].mxu0 }
 0x729   :  { %2472 = vst [vmem:[#allocation3 + $0x4] sm:$0xf] %v3414_v57  ;;  %v3415_v60 = vpack.c.bf16 %v2369_v59, %v2369_v59 }
 0x72b   :  { %2473 = vst [vmem:[#allocation3 + $0xc] sm:$0xf] %v3415_v60 }
 0x72c   :  { %v3514_v61 = vpop.f32.mrb[28].mxu1 }
 0x72d   :  { %v3419_v62 = vpack.c.bf16 %v3514_v61, %v3514_v61  ;;  %v2432_v63 = vpop.f32.mrb[29].mxu1 }
 0x72e   :  { %v3417_v0 = vpack.c.bf16 %v2432_v63, %v2432_v63  ;;  %v3515_v1 = vpop.f32.mrb[30].mxu1 }
 0x72f   :  { %2477 = vst [vmem:[#allocation3 + $0x2c] sm:$0xf] %v3419_v62  ;;  %v2435_v2 = vpop.f32.mrb[31].mxu1 }
 0x730   :  { %2475 = vst [vmem:[#allocation3 + $0x1c] sm:$0xf] %v3417_v0  ;;  %v3418_v3 = vpack.c.bf16 %v2435_v2, %v2435_v2 }
 0x732   :  { %2476 = vst [vmem:[#allocation3 + $0x24] sm:$0xf] %v3418_v3  ;;  %v3941_v6 = vld [vmem:[#allocation3 + $0x4] ss:$8 sps:$4 sm:$0xff]  }
 0x733   :  { %2740 = vmatprep.mubr.bf16.mxu0 %v3941_v6 }
 0x734   :  { %2741 = vmatmul.mubr.bf16.vlgmr.msra.gmra.mrb[36].mxu0 %v3939_v4 }
 0x736   :  { %v3947_v8 = vld [vmem:[#allocation3 + $0x14] ss:$24 sps:$4 sm:$0xff]  }
 0x737   :  { %3007 = vmatprep.mubr.bf16.mxu1 %v3947_v8 }
 0x738   :  { %3008 = vmatmul.mubr.bf16.vlgmr.msra.gmra.mrb[32].mxu1 %v3945_v7 }
 0x739   :  { %v3948_v9 = vld [vmem:[#allocation3 + $0x1c] ss:$8 sps:$4 sm:$0xff]  }
 0x73a   :  { %2750 = vmatprep.mubr.bf16.mxu0 %v3948_v9 }
 0x73c   :  { %2751 = vmatmul.mubr.bf16.gmra.mrb[40].mxu0 %v3950_v10 }
 0x807   :  { %v2742_v19 = vpop.f32.mrb[36].mxu0 }
 0x808   :  { %v2743_v20 = vadd.f32 %v2742_v19, %v2521_v16  ;;  %v2744_v21 = vpop.f32.mrb[37].mxu0 }
 0x809   :  { %v2745_v27 = vadd.f32 %v2744_v21, %v2525_v17  ;;  %v2746_v28 = vpop.f32.mrb[38].mxu0 }
 0x80a   :  { %3018 = vst [vmem:[#allocation15] sm:$0xff] %v2743_v20  ;;  %v2747_v31 = vadd.f32 %v2746_v28, %v2521_v16  ;;  %v2748_v32 = vpop.f32.mrb[39].mxu0 }
 0x80b   :  { %3019 = vst [vmem:[#allocation15 + $0x8] sm:$0xff] %v2745_v27  ;;  %v2749_v5 = vadd.f32 %v2748_v32, %v2525_v17  ;;  %v3009_v33 = vpop.f32.mrb[32].mxu1 }
 0x80c   :  { %3020 = vst [vmem:[#allocation15 + $0x10] sm:$0xff] %v2747_v31  ;;  %v3010_v34 = vadd.f32 %v3009_v33, %v2798_v23  ;;  %v3011_v26 = vpop.f32.mrb[33].mxu1 }
 0x80d   :  { %3021 = vst [vmem:[#allocation15 + $0x18] sm:$0xff] %v2749_v5  ;;  %v3012_v22 = vadd.f32 %v3011_v26, %v2802_v30  ;;  %v3013_v24 = vpop.f32.mrb[34].mxu1 }
 0x80e   :  { %3026 = vst [vmem:[#allocation16] sm:$0xff] %v3010_v34  ;;  %v3014_v35 = vadd.f32 %v3013_v24, %v2798_v23  ;;  %v3015_v36 = vpop.f32.mrb[35].mxu1 }
 0x80f   :  { %3027 = vst [vmem:[#allocation16 + $0x8] sm:$0xff] %v3012_v22  ;;  %v3016_v37 = vadd.f32 %v3015_v36, %v2802_v30  ;;  %v2752_v25 = vpop.f32.mrb[40].mxu0 }
 0x810   :  { %3028 = vst [vmem:[#allocation16 + $0x10] sm:$0xff] %v3014_v35  ;;  %v2753_v38 = vadd.f32 %v2752_v25, %v2521_v16  ;;  %v2754_v39 = vpop.f32.mrb[41].mxu0 }
 0x811   :  { %3029 = vst [vmem:[#allocation16 + $0x18] sm:$0xff] %v3016_v37  ;;  %v2755_v40 = vadd.f32 %v2754_v39, %v2525_v17  ;;  %v2756_v41 = vpop.f32.mrb[42].mxu0 }
 0x812   :  { %3022 = vst [vmem:[#allocation15 + $0x20] sm:$0xff] %v2753_v38  ;;  %v2757_v29 = vadd.f32 %v2756_v41, %v2521_v16  ;;  %v2758_v42 = vpop.f32.mrb[43].mxu0 }
 0x813   :  { %4142 = shalt.err (!%p4139_p10)
}
 0x814   :  { %s4143_s2 = scalar_lea.hbm %s4458_s9, 512 }
 0x815   :  { %p4144_p11 = scmp.ne.s32.totalorder %s4458_s9, %s4143_s2  ;;  %p4147_p12 = scmp.lt.u32.totalorder %s4143_s2, %s4458_s9 }
 0x817   :  { %p4149_p13 = pnand %p4147_p12, %p4144_p11 }
 0x819   :  { %4152 = shalt.err (!%p4149_p13)
}
 0x81a   :  { %3053 = dma.vmem_to_hbm [thread:$0]  %s3048_s28, 512, %s4458_s9, [#allocation17], %s4188_s19, %s4188_s19, %s4189_s20   ;;  %3023 = vst [vmem:[#allocation15 + $0x28] sm:$0xff] %v2755_v40  ;;  %v2759_v43 = vadd.f32 %v2758_v42, %v2525_v17  ;;  %3024 = vst [vmem:[#allocation15 + $0x30] sm:$0xff] %v2757_v29 }
 0x81b   :  { %s4153_s16 = scalar_lea.vmem %s3036_s3, 1024  ;;  %p4158_p1 = scmp.lt.s32.totalorder %s3036_s3, %s3036_s3 }
 0x81c   :  { %3025 = vst [vmem:[#allocation15 + $0x38] sm:$0xff] %v2759_v43  ;;  %p4154_p0 = scmp.ne.s32.totalorder %s3036_s3, %s4153_s16  ;;  %p4159_p2 = scmp.lt.s32.totalorder %s4153_s16, %s4153_s16 }
 0x81e   :  { %p4160_p3 = por %p4159_p2, %p4158_p1 }
 0x820   :  { %p4161_p4 = pnand %p4160_p3, %p4154_p0 }
 0x822   :  { %4164 = shalt.err (!%p4161_p4)
}
 0x823   :  { %s4165_s21 = scalar_lea.hbm %s4457_s8, 1024 }
 0x824   :  { %p4166_p5 = scmp.ne.s32.totalorder %s4457_s8, %s4165_s21  ;;  %p4169_p6 = scmp.lt.u32.totalorder %s4165_s21, %s4457_s8 }
 0x826   :  { %p4171_p7 = pnand %p4169_p6, %p4166_p5 }
 0x828   :  { %4174 = shalt.err (!%p4171_p7)
}
 0x829   :  { %3041 = dma.vmem_to_hbm [thread:$0]  %s3036_s3, 1024, %s4457_s8, [#allocation6], %s4188_s19, %s4188_s19, %s4189_s20  }
 0x82a   :  { %4183 = dma.done.wait [#allocation6], 1024  }
 0x82b   :  { %4184 = vsyncadd [#allocation6], 4294966272 }
 0x82c   :  { %4185 = dma.done.wait [#allocation17], 512  }
 0x82d   :  { %4186 = vsyncadd [#allocation17], 4294966784 }
 0x82e   :  { %3060 = vsyncpa [#allocation5], 1 }
 0x82f   :  { %3061 = vsyncpa [#allocation8], 1 }
 0x830   :  { %3062 = vsyncpa [#allocation11], 1 }
 0x831   :  { %3063 = vsyncpa [#allocation14], 1 }
 0x832   :  { %3064 = vsyncpa [#allocation6], 1 }
 0x833   :  { %3065 = vsyncpa [#allocation17], 1 }

// kernel: tpu_custom_call.1
= control target key start
LH: loop header
LB: loop body
LE: loop exit
PB: predicated region body
PF: predicated region fallthrough
CT: control target
= control target key end

     0   :  { %15 = vsyncpa [#allocation5], 0  ;;  %s4449_s0 = inlined_call_operand.hbm [shape: f32[2,16,256], index: 0, kind: input, shape index: {}]   ;;  %s4450_s1 = inlined_call_operand.hbm [shape: f32[2,8,256], index: 1, kind: input, shape index: {}]   ;;  %s4451_s2 = inlined_call_operand.hbm [shape: bf16[256,768], index: 2, kind: input, shape index: {}]   ;;  %s4452_s3 = inlined_call_operand.hbm [shape: bf16[256,768], index: 3, kind: input, shape index: {}]   ;;  %s4453_s4 = inlined_call_operand.hbm [shape: bf16[256,256], index: 4, kind: input, shape index: {}]   ;;  %s4454_s5 = inlined_call_operand.vmem [shape: f32[1,256], index: 5, kind: input, shape index: {}]   ;;  %s4455_s6 = inlined_call_operand.hbm [shape: bf16[256,256], index: 6, kind: input, shape index: {}]   ;;  %s4456_s7 = inlined_call_operand.vmem [shape: f32[1,256], index: 7, kind: input, shape index: {}]   ;;  %s4457_s8 = inlined_call_operand.hbm [shape: f32[2,16,256], index: 8, kind: output, shape index: {0}]   ;;  %s4458_s9 = inlined_call_operand.hbm [shape: f32[2,8,256], index: 9, kind: output, shape index: {1}]  }
   0x1   :  { %16 = vsyncpa [#allocation8], 0 }
   0x2   :  { %17 = vsyncpa [#allocation11], 0 }
   0x3   :  { %18 = vsyncpa [#allocation14], 0 }
   0x4   :  { %19 = vsyncpa [#allocation6], 0 }
   0x5   :  { %20 = vsyncpa [#allocation17], 0  ;;  %s4187_s30 = smov [#allocation7]   ;;  %s3999_s13 = scalar_lea.hbm %s4450_s1, 512 }
   0x6   :  { %s38_s10 = sshll.u32 %s4187_s30, 4  ;;  %p4000_p0 = scmp.ne.s32.totalorder %s4450_s1, %s3999_s13  ;;  %s39_s10 = int_to_ptr.vmem [resolvable:$true] %s38_s10 }
   0x7   :  { %p4003_p1 = scmp.lt.u32.totalorder %s3999_s13, %s4450_s1 }
   0x9   :  { %p4005_p2 = pnand %p4003_p1, %p4000_p0 }
   0xb   :  { %4008 = shalt.err (!%p4005_p2)
}
   0xc   :  { %s4009_s18 = scalar_lea.vmem %s39_s10, 512  ;;  %p4014_p4 = scmp.lt.s32.totalorder %s39_s10, %s39_s10 }
   0xd   :  { %p4010_p3 = scmp.ne.s32.totalorder %s39_s10, %s4009_s18  ;;  %p4015_p5 = scmp.lt.s32.totalorder %s4009_s18, %s4009_s18 }
   0xf   :  { %p4016_p6 = por %p4015_p5, %p4014_p4 }
  0x11   :  { %p4017_p7 = pnand %p4016_p6, %p4010_p3 }
  0x13   :  { %4020 = shalt.err (!%p4017_p7)
}
  0x14   :  { %s4188_s19 = smov 256   ;;  %s4189_s20 = smov 16  }
  0x15   :  { %44 = dma.hbm_to_vmem [thread:$0]  %s4450_s1, 512, %s39_s10, [#allocation8], %s4188_s19, %s4188_s19, %s4189_s20  }
  0x16   :  { %s4190_s23 = smov [#allocation10]   ;;  %s4191_s25 = smov [#allocation4]  }
  0x17   :  { %s62_s24 = sshll.u32 %s4190_s23, 4  ;;  %s26_s26 = sshll.u32 %s4191_s25, 4  ;;  %s63_s24 = int_to_ptr.vmem [resolvable:$true] %s62_s24  ;;  %s27_s26 = int_to_ptr.vmem [resolvable:$true] %s26_s26 }
  0x18   :  { %s4021_s29 = scalar_lea.hbm %s4452_s3, 12288 }
  0x19   :  { %p4022_p8 = scmp.ne.s32.totalorder %s4452_s3, %s4021_s29  ;;  %p4025_p9 = scmp.lt.u32.totalorder %s4021_s29, %s4452_s3 }
  0x1b   :  { %p4027_p10 = pnand %p4025_p9, %p4022_p8 }
  0x1d   :  { %4030 = shalt.err (!%p4027_p10)
}
  0x1e   :  { %s4031_s1 = scalar_lea.vmem %s63_s24, 12288  ;;  %p4036_p12 = scmp.lt.s32.totalorder %s63_s24, %s63_s24 }
  0x1f   :  { %p4032_p11 = scmp.ne.s32.totalorder %s63_s24, %s4031_s1  ;;  %p4037_p13 = scmp.lt.s32.totalorder %s4031_s1, %s4031_s1 }
  0x21   :  { %p4038_p0 = por %p4037_p13, %p4036_p12 }
  0x23   :  { %p4039_p1 = pnand %p4038_p0, %p4032_p11 }
  0x25   :  { %4042 = shalt.err (!%p4039_p1)
}
  0x26   :  { %s4192_s10 = smov 384   ;;  %s4193_s14 = smov 24  }
  0x27   :  { %68 = dma.hbm_to_vmem [thread:$0]  %s4452_s3, 12288, %s63_s24, [#allocation11], %s4192_s10, %s4192_s10, %s4193_s14  }
  0x28   :  { %s4043_s21 = scalar_lea.hbm %s4449_s0, 1024 }
  0x29   :  { %p4044_p2 = scmp.ne.s32.totalorder %s4449_s0, %s4043_s21  ;;  %p4047_p3 = scmp.lt.u32.totalorder %s4043_s21, %s4449_s0 }
  0x2b   :  { %p4049_p4 = pnand %p4047_p3, %p4044_p2 }
  0x2d   :  { %4052 = shalt.err (!%p4049_p4)
}
  0x2e   :  { %s4053_s28 = scalar_lea.vmem %s27_s26, 1024  ;;  %p4058_p6 = scmp.lt.s32.totalorder %s27_s26, %s27_s26 }
  0x2f   :  { %p4054_p5 = scmp.ne.s32.totalorder %s27_s26, %s4053_s28  ;;  %p4059_p7 = scmp.lt.s32.totalorder %s4053_s28, %s4053_s28 }
  0x31   :  { %p4060_p8 = por %p4059_p7, %p4058_p6 }
  0x33   :  { %p4061_p9 = pnand %p4060_p8, %p4054_p5 }
  0x35   :  { %4064 = shalt.err (!%p4061_p9)
}
  0x36   :  { %32 = dma.hbm_to_vmem [thread:$0]  %s4449_s0, 1024, %s27_s26, [#allocation5], %s4188_s19, %s4188_s19, %s4189_s20  }
  0x37   :  { %s4194_s29 = smov [#allocation9]   ;;  %s4195_s11 = smov [#allocation12]  }
  0x38   :  { %s50_s30 = sshll.u32 %s4194_s29, 4  ;;  %s74_s12 = sshll.u32 %s4195_s11, 4  ;;  %s51_s30 = int_to_ptr.vmem [resolvable:$true] %s50_s30  ;;  %s75_s12 = int_to_ptr.vmem [resolvable:$true] %s74_s12 }
  0x39   :  { %s4065_s15 = scalar_lea.hbm %s4451_s2, 12288 }
  0x3a   :  { %p4066_p10 = scmp.ne.s32.totalorder %s4451_s2, %s4065_s15  ;;  %p4069_p11 = scmp.lt.u32.totalorder %s4065_s15, %s4451_s2 }
  0x3c   :  { %p4071_p12 = pnand %p4069_p11, %p4066_p10 }
  0x3e   :  { %4074 = shalt.err (!%p4071_p12)
}
  0x3f   :  { %s4075_s0 = scalar_lea.vmem %s51_s30, 12288  ;;  %p4080_p0 = scmp.lt.s32.totalorder %s51_s30, %s51_s30 }
  0x40   :  { %p4076_p13 = scmp.ne.s32.totalorder %s51_s30, %s4075_s0  ;;  %p4081_p1 = scmp.lt.s32.totalorder %s4075_s0, %s4075_s0 }
  0x42   :  { %p4082_p2 = por %p4081_p1, %p4080_p0 }
  0x44   :  { %p4083_p3 = pnand %p4082_p2, %p4076_p13 }
  0x46   :  { %4086 = shalt.err (!%p4083_p3)
}
  0x47   :  { %56 = dma.hbm_to_vmem [thread:$0]  %s4451_s2, 12288, %s51_s30, [#allocation8], %s4192_s10, %s4192_s10, %s4193_s14  }
  0x48   :  { %s4087_s27 = scalar_lea.hbm %s4453_s4, 4096 }
  0x49   :  { %p4088_p4 = scmp.ne.s32.totalorder %s4453_s4, %s4087_s27  ;;  %p4091_p5 = scmp.lt.u32.totalorder %s4087_s27, %s4453_s4 }
  0x4b   :  { %p4093_p6 = pnand %p4091_p5, %p4088_p4 }
  0x4d   :  { %4096 = shalt.err (!%p4093_p6)
}
  0x4e   :  { %s4097_s11 = scalar_lea.vmem %s75_s12, 4096  ;;  %p4102_p8 = scmp.lt.s32.totalorder %s75_s12, %s75_s12 }
  0x4f   :  { %p4098_p7 = scmp.ne.s32.totalorder %s75_s12, %s4097_s11  ;;  %p4103_p9 = scmp.lt.s32.totalorder %s4097_s11, %s4097_s11 }
  0x51   :  { %p4104_p10 = por %p4103_p9, %p4102_p8 }
  0x53   :  { %p4105_p11 = pnand %p4104_p10, %p4098_p7 }
  0x55   :  { %4108 = shalt.err (!%p4105_p11)
}
  0x56   :  { %s4196_s2 = smov 128   ;;  %s4197_s10 = smov 8  }
  0x57   :  { %80 = dma.hbm_to_vmem [thread:$0]  %s4453_s4, 4096, %s75_s12, [#allocation11], %s4196_s2, %s4196_s2, %s4197_s10  }
  0x58   :  { %s4198_s13 = smov [#allocation13]   ;;  %s4109_s17 = scalar_lea.hbm %s4455_s6, 4096 }
  0x59   :  { %s88_s1 = sshll.u32 %s4198_s13, 4  ;;  %p4110_p12 = scmp.ne.s32.totalorder %s4455_s6, %s4109_s17  ;;  %s89_s1 = int_to_ptr.vmem [resolvable:$true] %s88_s1 }
  0x5a   :  { %p4113_p13 = scmp.lt.u32.totalorder %s4109_s17, %s4455_s6 }
  0x5c   :  { %p4115_p0 = pnand %p4113_p13, %p4110_p12 }
  0x5e   :  { %4118 = shalt.err (!%p4115_p0)
}
  0x5f   :  { %s4119_s22 = scalar_lea.vmem %s89_s1, 4096  ;;  %p4124_p2 = scmp.lt.s32.totalorder %s89_s1, %s89_s1 }
  0x60   :  { %p4120_p1 = scmp.ne.s32.totalorder %s89_s1, %s4119_s22  ;;  %p4125_p3 = scmp.lt.s32.totalorder %s4119_s22, %s4119_s22 }
  0x62   :  { %p4126_p4 = por %p4125_p3, %p4124_p2 }
  0x64   :  { %p4127_p5 = pnand %p4126_p4, %p4120_p1 }
  0x66   :  { %4130 = shalt.err (!%p4127_p5)
}
  0x67   :  { %94 = dma.hbm_to_vmem [thread:$0]  %s4455_s6, 4096, %s89_s1, [#allocation14], %s4196_s2, %s4196_s2, %s4197_s10  }
  0x68   :  { %4175 = dma.done.wait [#allocation5], 1024  }
  0x69   :  { %4176 = vsyncadd [#allocation5], 4294966272 }
  0x6a   :  { %4177 = dma.done.wait [#allocation8], 12800  }
  0x6b   :  { %4178 = vsyncadd [#allocation8], 4294954496 }
  0x6c   :  { %4179 = dma.done.wait [#allocation11], 16384  }
  0x6d   :  { %4180 = vsyncadd [#allocation11], 4294950912 }
  0x6e   :  { %4181 = dma.done.wait [#allocation14], 4096  }
  0x6f   :  { %4182 = vsyncadd [#allocation14], 4294963200  ;;  %v3534_v0 = vld [vmem:[#allocation9 + $0x4] ss:$24 sps:$4 sm:$0xff]   ;;  %v3536_v1 = vld [vmem:[#allocation9] ss:$24 sps:$4 sm:$0xff]  }
  0x70   :  { %710 = vmatprep.subr.bf16.mxu0 %v3534_v0  ;;  %v3537_v2 = vld [vmem:[#allocation9 + $0x34] ss:$24 sps:$4 sm:$0xff]   ;;  %v3539_v3 = vld [vmem:[#allocation9 + $0x30] ss:$24 sps:$4 sm:$0xff]   ;;  %v3540_v4 = vld [vmem:[#allocation9 + $0x64] ss:$24 sps:$4 sm:$0xff]  }
  0x71   :  { %711 = vmatpush1.bf16.msra.mxu0 %v3536_v1  ;;  %v3545_v5 = vld [vmem:[#allocation9 + $0xc] ss:$24 sps:$4 sm:$0xff]   ;;  %v3548_v6 = vld [vmem:[#allocation9 + $0x8] ss:$24 sps:$4 sm:$0xff]   ;;  %v3551_v9 = vld [vmem:[#allocation9 + $0x3c] ss:$24 sps:$4 sm:$0xff]  }
  0x72   :  { %712 = vmatprep.subr.bf16.mxu0 %v3537_v2  ;;  %v3542_v7 = vld [vmem:[#allocation9 + $0x60] ss:$24 sps:$4 sm:$0xff]   ;;  %763 = vmatprep.subr.bf16.mxu1 %v3545_v5  ;;  %v3543_v8 = vld [vmem:[#allocation9 + $0x94] ss:$24 sps:$4 sm:$0xff]   ;;  %v3547_v11 = vld [vmem:[#allocation9 + $0x90] ss:$24 sps:$4 sm:$0xff]  }
  0x73   :  { %764 = vmatpush1.bf16.msra.mxu1 %v3548_v6  ;;  %v3554_v10 = vld [vmem:[#allocation9 + $0x38] ss:$24 sps:$4 sm:$0xff]   ;;  %v3549_v12 = vld [vmem:[#allocation9 + $0xc4] ss:$24 sps:$4 sm:$0xff]   ;;  %v3560_v14 = vld [vmem:[#allocation9 + $0x68] ss:$24 sps:$4 sm:$0xff]  }
  0x74   :  { %765 = vmatprep.subr.bf16.mxu1 %v3551_v9  ;;  %v3557_v13 = vld [vmem:[#allocation9 + $0x6c] ss:$24 sps:$4 sm:$0xff]   ;;  %v3563_v15 = vld [vmem:[#allocation9 + $0x9c] ss:$24 sps:$4 sm:$0xff]   ;;  %v3553_v16 = vld [vmem:[#allocation9 + $0xc0] ss:$24 sps:$4 sm:$0xff]  }
  0x75   :  { %713 = vmatpush1.bf16.msra.mxu0 %v3539_v3  ;;  %v3555_v17 = vld [vmem:[#allocation9 + $0xf4] ss:$24 sps:$4 sm:$0xff]   ;;  %v3566_v18 = vld [vmem:[#allocation9 + $0x98] ss:$24 sps:$4 sm:$0xff]   ;;  %v3561_v21 = vld [vmem:[#allocation9 + $0x124] ss:$24 sps:$4 sm:$0xff]  }
  0x76   :  { %714 = vmatprep.subr.bf16.mxu0 %v3540_v4  ;;  %v3569_v19 = vld [vmem:[#allocation9 + $0xcc] ss:$24 sps:$4 sm:$0xff]   ;;  %v3559_v20 = vld [vmem:[#allocation9 + $0xf0] ss:$24 sps:$4 sm:$0xff]   ;;  %v3575_v23 = vld [vmem:[#allocation9 + $0xfc] ss:$24 sps:$4 sm:$0xff]  }
  0x77   :  { %766 = vmatpush1.bf16.msra.mxu1 %v3554_v10  ;;  %v3572_v22 = vld [vmem:[#allocation9 + $0xc8] ss:$24 sps:$4 sm:$0xff]   ;;  %v3567_v25 = vld [vmem:[#allocation9 + $0x154] ss:$24 sps:$4 sm:$0xff]   ;;  %v3578_v26 = vld [vmem:[#allocation9 + $0xf8] ss:$24 sps:$4 sm:$0xff]  }
  0x78   :  { %767 = vmatprep.subr.bf16.mxu1 %v3557_v13  ;;  %v3565_v24 = vld [vmem:[#allocation9 + $0x120] ss:$24 sps:$4 sm:$0xff]   ;;  %v3581_v27 = vld [vmem:[#allocation9 + $0x12c] ss:$24 sps:$4 sm:$0xff]   ;;  %v3571_v28 = vld [vmem:[#allocation9 + $0x150] ss:$24 sps:$4 sm:$0xff]  }
  0x79   :  { %715 = vmatpush1.bf16.msra.mxu0 %v3542_v7  ;;  %v3573_v29 = vld [vmem:[#allocation9 + $0x184] ss:$24 sps:$4 sm:$0xff]   ;;  %v3584_v30 = vld [vmem:[#allocation9 + $0x128] ss:$24 sps:$4 sm:$0xff]   ;;  %v3579_v33 = vld [vmem:[#allocation9 + $0x1b4] ss:$24 sps:$4 sm:$0xff]  }
  0x7a   :  { %716 = vmatprep.subr.bf16.mxu0 %v3543_v8  ;;  %v3587_v31 = vld [vmem:[#allocation9 + $0x15c] ss:$24 sps:$4 sm:$0xff]   ;;  %v3577_v32 = vld [vmem:[#allocation9 + $0x180] ss:$24 sps:$4 sm:$0xff]   ;;  %v3593_v35 = vld [vmem:[#allocation9 + $0x18c] ss:$24 sps:$4 sm:$0xff]  }
  0x7b   :  { %768 = vmatpush1.bf16.msra.mxu1 %v3560_v14  ;;  %v3590_v34 = vld [vmem:[#allocation9 + $0x158] ss:$24 sps:$4 sm:$0xff]   ;;  %v3585_v37 = vld [vmem:[#allocation9 + $0x1e4] ss:$24 sps:$4 sm:$0xff]   ;;  %v3596_v38 = vld [vmem:[#allocation9 + $0x188] ss:$24 sps:$4 sm:$0xff]  }
  0x7c   :  { %769 = vmatprep.subr.bf16.mxu1 %v3563_v15  ;;  %v3583_v36 = vld [vmem:[#allocation9 + $0x1b0] ss:$24 sps:$4 sm:$0xff]   ;;  %v3599_v39 = vld [vmem:[#allocation9 + $0x1bc] ss:$24 sps:$4 sm:$0xff]   ;;  %v3589_v41 = vld [vmem:[#allocation9 + $0x1e0] ss:$24 sps:$4 sm:$0xff]  }
  0x7d   :  { %717 = vmatpush1.bf16.msra.mxu0 %v3547_v11  ;;  %v117_v40 = vld [vmem:[#allocation4 + $0x8] sm:$0xff]  ;;  %v119_v43 = vld [vmem:[#allocation4 + $0x18] sm:$0xff]  ;;  %v116_v0 = vld [vmem:[#allocation4] sm:$0xff]  ;;  %vm1940_vm0 = vcmask 1043456   ;;  %vm1854_vm1 = vcmask 195584  }
  0x7e   :  { %718 = vmatprep.subr.bf16.mxu0 %v3549_v12  ;;  %v3591_v42 = vld [vmem:[#allocation9 + $0x214] ss:$24 sps:$4 sm:$0xff]   ;;  %v3602_v44 = vld [vmem:[#allocation9 + $0x1b8] ss:$24 sps:$4 sm:$0xff]   ;;  %v4335_v45 = vpack.c.bf16 %v119_v43, %v117_v40  ;;  %v3597_v48 = vld [vmem:[#allocation9 + $0x244] ss:$24 sps:$4 sm:$0xff]  }
  0x7f   :  { %770 = vmatpush1.bf16.msra.mxu1 %v3566_v18  ;;  %v3605_v46 = vld [vmem:[#allocation9 + $0x1ec] ss:$24 sps:$4 sm:$0xff]   ;;  %v3595_v47 = vld [vmem:[#allocation9 + $0x210] ss:$24 sps:$4 sm:$0xff]   ;;  %v3611_v50 = vld [vmem:[#allocation9 + $0x21c] ss:$24 sps:$4 sm:$0xff]  }
  0x80   :  { %771 = vmatprep.subr.bf16.mxu1 %v3569_v19  ;;  %742 = vmatprep.mubr.bf16.mxu0 %v4335_v45  ;;  %v3608_v49 = vld [vmem:[#allocation9 + $0x1e8] ss:$24 sps:$4 sm:$0xff]   ;;  %v3603_v52 = vld [vmem:[#allocation9 + $0x274] ss:$24 sps:$4 sm:$0xff]   ;;  %v3614_v53 = vld [vmem:[#allocation9 + $0x218] ss:$24 sps:$4 sm:$0xff]  }
  0x81   :  { %719 = vmatpush1.bf16.msra.mxu0 %v3553_v16  ;;  %795 = vmatprep.mubr.bf16.mxu1 %v4335_v45  ;;  %v3601_v51 = vld [vmem:[#allocation9 + $0x240] ss:$24 sps:$4 sm:$0xff]   ;;  %v3617_v54 = vld [vmem:[#allocation9 + $0x24c] ss:$24 sps:$4 sm:$0xff]   ;;  %v3607_v55 = vld [vmem:[#allocation9 + $0x270] ss:$24 sps:$4 sm:$0xff]  }
  0x82   :  { %720 = vmatprep.subr.bf16.mxu0 %v3555_v17  ;;  %v3609_v56 = vld [vmem:[#allocation9 + $0x2a4] ss:$24 sps:$4 sm:$0xff]   ;;  %v3620_v57 = vld [vmem:[#allocation9 + $0x248] ss:$24 sps:$4 sm:$0xff]   ;;  %v3615_v60 = vld [vmem:[#allocation9 + $0x2d4] ss:$24 sps:$4 sm:$0xff]  }
  0x83   :  { %772 = vmatpush1.bf16.msra.mxu1 %v3572_v22  ;;  %v3621_v58 = vld [vmem:[#allocation9 + $0x27c] ss:$24 sps:$4 sm:$0xff]   ;;  %v3613_v59 = vld [vmem:[#allocation9 + $0x2a0] ss:$24 sps:$4 sm:$0xff]   ;;  %v3627_v62 = vld [vmem:[#allocation9 + $0x2ac] ss:$24 sps:$4 sm:$0xff]  }
  0x84   :  { %773 = vmatprep.subr.bf16.mxu1 %v3575_v23  ;;  %v3626_v61 = vld [vmem:[#allocation9 + $0x278] ss:$24 sps:$4 sm:$0xff]   ;;  %v3625_v2 = vld [vmem:[#allocation9 + $0x14] ss:$24 sps:$4 sm:$0xff]   ;;  %v3632_v3 = vld [vmem:[#allocation9 + $0x2a8] ss:$24 sps:$4 sm:$0xff]  }
  0x85   :  { %721 = vmatpush1.bf16.msra.mxu0 %v3559_v20  ;;  %v3619_v63 = vld [vmem:[#allocation9 + $0x2d0] ss:$24 sps:$4 sm:$0xff]   ;;  %v3633_v4 = vld [vmem:[#allocation9 + $0x2dc] ss:$24 sps:$4 sm:$0xff]   ;;  %v3629_v10 = vld [vmem:[#allocation9 + $0x40] ss:$24 sps:$4 sm:$0xff]  }
  0x86   :  { %722 = vmatprep.subr.bf16.mxu0 %v3561_v21  ;;  %v118_v1 = vld [vmem:[#allocation4 + $0x10] sm:$0xff]  ;;  %v3631_v7 = vld [vmem:[#allocation9 + $0x44] ss:$24 sps:$4 sm:$0xff]   ;;  %v3642_v12 = vld [vmem:[#allocation10] ss:$24 sps:$4 sm:$0xff]  }
  0x87   :  { %774 = vmatpush1.bf16.msra.mxu1 %v3578_v26  ;;  %v4339_v5 = vpack.c.bf16 %v118_v1, %v116_v0  ;;  %v3623_v6 = vld [vmem:[#allocation9 + $0x10] ss:$24 sps:$4 sm:$0xff]   ;;  %v3644_v9 = vld [vmem:[#allocation10 + $0x4] ss:$24 sps:$4 sm:$0xff]   ;;  %v3637_v11 = vld [vmem:[#allocation9 + $0x74] ss:$24 sps:$4 sm:$0xff]  }
  0x88   :  { %775 = vmatprep.subr.bf16.mxu1 %v3581_v27  ;;  %v3638_v8 = vld [vmem:[#allocation9 + $0x2d8] ss:$24 sps:$4 sm:$0xff]   ;;  %v3650_v13 = vld [vmem:[#allocation10 + $0x34] ss:$24 sps:$4 sm:$0xff]   ;;  %v3641_v15 = vld [vmem:[#allocation9 + $0xa4] ss:$24 sps:$4 sm:$0xff]  }
  0x89   :  { %723 = vmatpush1.bf16.msra.mxu0 %v3565_v24  ;;  %v3635_v14 = vld [vmem:[#allocation9 + $0x70] ss:$24 sps:$4 sm:$0xff]   ;;  %v3656_v17 = vld [vmem:[#allocation10 + $0x64] ss:$24 sps:$4 sm:$0xff]   ;;  %v3639_v18 = vld [vmem:[#allocation9 + $0xa0] ss:$24 sps:$4 sm:$0xff]  }
  0x8a   :  { %724 = vmatprep.subr.bf16.mxu0 %v3567_v25  ;;  %v3648_v16 = vld [vmem:[#allocation10 + $0x30] ss:$24 sps:$4 sm:$0xff]   ;;  %v3647_v19 = vld [vmem:[#allocation9 + $0xd4] ss:$24 sps:$4 sm:$0xff]   ;;  %v3654_v20 = vld [vmem:[#allocation10 + $0x60] ss:$24 sps:$4 sm:$0xff]  }
  0x8b   :  { %776 = vmatpush1.bf16.msra.mxu1 %v3584_v30  ;;  %v3662_v21 = vld [vmem:[#allocation10 + $0x94] ss:$24 sps:$4 sm:$0xff]   ;;  %v123_v23 = vld [vmem:[#allocation4 + $0x38] sm:$0xff]  ;;  %v120_v25 = vld [vmem:[#allocation4 + $0x20] sm:$0xff] }
  0x8c   :  { %777 = vmatprep.subr.bf16.mxu1 %v3587_v31  ;;  %v121_v22 = vld [vmem:[#allocation4 + $0x28] sm:$0xff]  ;;  %v122_v26 = vld [vmem:[#allocation4 + $0x30] sm:$0xff]  ;;  %v3668_v31 = vld [vmem:[#allocation10 + $0xc4] ss:$24 sps:$4 sm:$0xff]  }
  0x8d   :  { %725 = vmatpush1.bf16.msra.mxu0 %v3571_v28  ;;  %v4343_v24 = vpack.c.bf16 %v123_v23, %v121_v22  ;;  %v3645_v27 = vld [vmem:[#allocation9 + $0xd0] ss:$24 sps:$4 sm:$0xff]   ;;  %v3653_v28 = vld [vmem:[#allocation9 + $0x104] ss:$24 sps:$4 sm:$0xff]   ;;  %v3663_v40 = vld [vmem:[#allocation9 + $0x160] ss:$24 sps:$4 sm:$0xff]  }
  0x8e   :  { %726 = vmatprep.subr.bf16.mxu0 %v3573_v29  ;;  %v4345_v29 = vpack.c.bf16 %v122_v26, %v120_v25  ;;  %v3660_v30 = vld [vmem:[#allocation10 + $0x90] ss:$24 sps:$4 sm:$0xff]   ;;  %v3701_v0 = vld [vmem:[#allocation9 + $0x284] ss:$24 sps:$4 sm:$0xff]  }
  0x8f   :  { %778 = vmatpush1.bf16.msra.mxu1 %v3590_v34  ;;  %v3666_v34 = vld [vmem:[#allocation10 + $0xc0] ss:$24 sps:$4 sm:$0xff]   ;;  %v129_v43 = vld [vmem:[#allocation7 + $0x8] sm:$0xff] }
  0x90   :  { %779 = vmatprep.subr.bf16.mxu1 %v3593_v35  ;;  %v3674_v35 = vld [vmem:[#allocation10 + $0xf4] ss:$24 sps:$4 sm:$0xff]   ;;  %v3708_v1 = vld [vmem:[#allocation10 + $0x210] ss:$24 sps:$4 sm:$0xff]  }
  0x91   :  { %727 = vmatpush1.bf16.msra.mxu0 %v3577_v32  ;;  %v3651_v32 = vld [vmem:[#allocation9 + $0x100] ss:$24 sps:$4 sm:$0xff]   ;;  %v3734_v23 = vld [vmem:[#allocation10 + $0x6c] ss:$24 sps:$4 sm:$0xff]   ;;  %v3738_v25 = vld [vmem:[#allocation10 + $0x10] ss:$24 sps:$4 sm:$0xff]  }
  0x92   :  { %728 = vmatprep.subr.bf16.mxu0 %v3579_v33  ;;  %v3659_v33 = vld [vmem:[#allocation9 + $0x134] ss:$24 sps:$4 sm:$0xff]   ;;  %v3726_v22 = vld [vmem:[#allocation10 + $0x38] ss:$24 sps:$4 sm:$0xff]  }
  0x93   :  { %780 = vmatpush1.bf16.msra.mxu1 %v3596_v38  ;;  %v3672_v38 = vld [vmem:[#allocation10 + $0xf0] ss:$24 sps:$4 sm:$0xff]  }
  0x94   :  { %781 = vmatprep.subr.bf16.mxu1 %v3599_v39  ;;  %v3680_v39 = vld [vmem:[#allocation10 + $0x124] ss:$24 sps:$4 sm:$0xff]  }
  0x95   :  { %729 = vmatpush1.bf16.msra.mxu0 %v3583_v36  ;;  %v3657_v36 = vld [vmem:[#allocation9 + $0x130] ss:$24 sps:$4 sm:$0xff]  }
  0x96   :  { %730 = vmatprep.subr.bf16.mxu0 %v3585_v37  ;;  %v3665_v37 = vld [vmem:[#allocation9 + $0x164] ss:$24 sps:$4 sm:$0xff]  }
  0x97   :  { %782 = vmatpush1.bf16.msra.mxu1 %v3602_v44  ;;  %v131_v44 = vld [vmem:[#allocation7 + $0x18] sm:$0xff] }
  0x98   :  { %783 = vmatprep.subr.bf16.mxu1 %v3605_v46  ;;  %v4352_v46 = vpack.c.bf16 %v131_v44, %v129_v43  ;;  %v3761_v43 = vld [vmem:[#allocation10 + $0x15c] ss:$24 sps:$4 sm:$0xff]   ;;  %v3768_v44 = vld [vmem:[#allocation10 + $0x100] ss:$24 sps:$4 sm:$0xff]  }
  0x99   :  { %731 = vmatpush1.bf16.msra.mxu0 %v3589_v41  ;;  %v3671_v41 = vld [vmem:[#allocation9 + $0x194] ss:$24 sps:$4 sm:$0xff]  }
  0x9a   :  { %732 = vmatprep.subr.bf16.mxu0 %v3591_v42  ;;  %v3678_v42 = vld [vmem:[#allocation10 + $0x120] ss:$24 sps:$4 sm:$0xff]  }
  0x9b   :  { %784 = vmatpush1.bf16.msra.mxu1 %v3608_v49  ;;  %v3684_v49 = vld [vmem:[#allocation10 + $0x150] ss:$24 sps:$4 sm:$0xff]  }
  0x9c   :  { %785 = vmatprep.subr.bf16.mxu1 %v3611_v50  ;;  %v3692_v50 = vld [vmem:[#allocation10 + $0x184] ss:$24 sps:$4 sm:$0xff]  }
  0x9d   :  { %733 = vmatpush1.bf16.msra.mxu0 %v3595_v47  ;;  %v3669_v47 = vld [vmem:[#allocation9 + $0x190] ss:$24 sps:$4 sm:$0xff]  }
  0x9e   :  { %734 = vmatprep.subr.bf16.mxu0 %v3597_v48  ;;  %v3677_v48 = vld [vmem:[#allocation9 + $0x1c4] ss:$24 sps:$4 sm:$0xff]  }
  0x9f   :  { %786 = vmatpush1.bf16.msra.mxu1 %v3614_v53  ;;  %v3690_v53 = vld [vmem:[#allocation10 + $0x180] ss:$24 sps:$4 sm:$0xff]  }
  0xa0   :  { %787 = vmatprep.subr.bf16.mxu1 %v3617_v54  ;;  %v3698_v54 = vld [vmem:[#allocation10 + $0x1b4] ss:$24 sps:$4 sm:$0xff]  }
  0xa1   :  { %735 = vmatpush1.bf16.msra.mxu0 %v3601_v51  ;;  %v3675_v51 = vld [vmem:[#allocation9 + $0x1c0] ss:$24 sps:$4 sm:$0xff]  }
  0xa2   :  { %736 = vmatprep.subr.bf16.mxu0 %v3603_v52  ;;  %v3683_v52 = vld [vmem:[#allocation9 + $0x1f4] ss:$24 sps:$4 sm:$0xff]  }
  0xa3   :  { %788 = vmatpush1.bf16.msra.mxu1 %v3620_v57  ;;  %v3696_v57 = vld [vmem:[#allocation10 + $0x1b0] ss:$24 sps:$4 sm:$0xff]  }
  0xa4   :  { %789 = vmatprep.subr.bf16.mxu1 %v3621_v58  ;;  %v3704_v58 = vld [vmem:[#allocation10 + $0x1e4] ss:$24 sps:$4 sm:$0xff]  }
  0xa5   :  { %737 = vmatpush1.bf16.msra.mxu0 %v3607_v55  ;;  %v3681_v55 = vld [vmem:[#allocation9 + $0x1f0] ss:$24 sps:$4 sm:$0xff]  }
  0xa6   :  { %738 = vmatprep.subr.bf16.mxu0 %v3609_v56  ;;  %v3689_v56 = vld [vmem:[#allocation9 + $0x224] ss:$24 sps:$4 sm:$0xff]  }
  0xa7   :  { %790 = vmatpush1.bf16.msra.mxu1 %v3626_v61  ;;  %v3702_v61 = vld [vmem:[#allocation10 + $0x1e0] ss:$24 sps:$4 sm:$0xff]  }
  0xa8   :  { %791 = vmatprep.subr.bf16.mxu1 %v3627_v62  ;;  %v3710_v62 = vld [vmem:[#allocation10 + $0x214] ss:$24 sps:$4 sm:$0xff]  }
  0xa9   :  { %739 = vmatpush1.bf16.msra.mxu0 %v3613_v59  ;;  %v3687_v59 = vld [vmem:[#allocation9 + $0x220] ss:$24 sps:$4 sm:$0xff]  }
  0xaa   :  { %740 = vmatprep.subr.bf16.mxu0 %v3615_v60  ;;  %v3695_v60 = vld [vmem:[#allocation9 + $0x254] ss:$24 sps:$4 sm:$0xff]  }
  0xab   :  { %792 = vmatpush1.bf16.msra.mxu1 %v3632_v3  ;;  %v3699_v3 = vld [vmem:[#allocation9 + $0x280] ss:$24 sps:$4 sm:$0xff]  }
  0xac   :  { %793 = vmatprep.subr.bf16.mxu1 %v3633_v4  ;;  %v3707_v4 = vld [vmem:[#allocation9 + $0x2b4] ss:$24 sps:$4 sm:$0xff]  }
  0xad   :  { %741 = vmatpush1.bf16.msra.mxu0 %v3619_v63  ;;  %v3693_v63 = vld [vmem:[#allocation9 + $0x250] ss:$24 sps:$4 sm:$0xff]  }
  0xae   :  { %816 = vmatprep.subr.bf16.mxu0 %v3625_v2  ;;  %v3716_v2 = vld [vmem:[#allocation10 + $0x244] ss:$24 sps:$4 sm:$0xff]  }
  0xaf   :  { %794 = vmatpush1.bf16.msra.mxu1 %v3638_v8  ;;  %v3705_v8 = vld [vmem:[#allocation9 + $0x2b0] ss:$24 sps:$4 sm:$0xff]  }
  0xb0   :  { %743 = vmatmul.mubr.bf16.vlgmr.msra.gmra.mrb[0].mxu0 %v4339_v5  ;;  %1445 = vmatprep.subr.bf16.mxu1 %v3644_v9  ;;  %v3713_v9 = vld [vmem:[#allocation9 + $0x2e4] ss:$24 sps:$4 sm:$0xff]  }
  0xb1   :  { %817 = vmatpush1.bf16.msra.mxu0 %v3623_v6  ;;  %752 = vmatprep.mubr.bf16.mxu0 %v4343_v24  ;;  %v3714_v6 = vld [vmem:[#allocation10 + $0x240] ss:$24 sps:$4 sm:$0xff]  }
  0xb2   :  { %818 = vmatprep.subr.bf16.mxu0 %v3631_v7  ;;  %796 = vmatmul.mubr.bf16.vlgmr.msra.gmra.mrb[0].mxu1 %v4339_v5  ;;  %v3719_v7 = vld [vmem:[#allocation10 + $0x274] ss:$24 sps:$4 sm:$0xff]  }
  0xb3   :  { %1446 = vmatpush1.bf16.msra.mxu1 %v3642_v12  ;;  %805 = vmatprep.mubr.bf16.mxu1 %v4343_v24  ;;  %v3711_v12 = vld [vmem:[#allocation9 + $0x2e0] ss:$24 sps:$4 sm:$0xff]  }
  0xb4   :  { %1447 = vmatprep.subr.bf16.mxu1 %v3650_v13  ;;  %v3722_v13 = vld [vmem:[#allocation10 + $0xc] ss:$24 sps:$4 sm:$0xff]  }
  0xb5   :  { %819 = vmatpush1.bf16.msra.mxu0 %v3629_v10  ;;  %v3717_v10 = vld [vmem:[#allocation10 + $0x270] ss:$24 sps:$4 sm:$0xff]  }
  0xb6   :  { %820 = vmatprep.subr.bf16.mxu0 %v3637_v11  ;;  %v3725_v11 = vld [vmem:[#allocation10 + $0x2a4] ss:$24 sps:$4 sm:$0xff]  }
  0xb7   :  { %1448 = vmatpush1.bf16.msra.mxu1 %v3648_v16  ;;  %v3720_v16 = vld [vmem:[#allocation10 + $0x8] ss:$24 sps:$4 sm:$0xff]  }
  0xb8   :  { %1449 = vmatprep.subr.bf16.mxu1 %v3656_v17  ;;  %753 = vmatmul.mubr.bf16.gmra.mrb[4].mxu0 %v4345_v29  ;;  %v3728_v17 = vld [vmem:[#allocation10 + $0x3c] ss:$24 sps:$4 sm:$0xff]  }
  0xb9   :  { %821 = vmatpush1.bf16.msra.mxu0 %v3635_v14  ;;  %848 = vmatprep.mubr.bf16.mxu0 %v4335_v45  ;;  %v3686_v45 = vld [vmem:[#allocation10 + $0x154] ss:$24 sps:$4 sm:$0xff]   ;;  %v3723_v14 = vld [vmem:[#allocation10 + $0x2a0] ss:$24 sps:$4 sm:$0xff]  }
  0xba   :  { %822 = vmatprep.subr.bf16.mxu0 %v3641_v15  ;;  %806 = vmatmul.mubr.bf16.gmra.mrb[4].mxu1 %v4345_v29  ;;  %v3731_v15 = vld [vmem:[#allocation10 + $0x2d4] ss:$24 sps:$4 sm:$0xff]  }
  0xbb   :  { %1450 = vmatpush1.bf16.msra.mxu1 %v3654_v20  ;;  %1477 = vmatprep.mubr.bf16.mxu1 %v4352_v46  ;;  %v130_v20 = vld [vmem:[#allocation7 + $0x10] sm:$0xff] }
  0xbc   :  { %1451 = vmatprep.subr.bf16.mxu1 %v3662_v21  ;;  %v3740_v21 = vld [vmem:[#allocation10 + $0x14] ss:$24 sps:$4 sm:$0xff]  }
  0xbd   :  { %823 = vmatpush1.bf16.msra.mxu0 %v3639_v18  ;;  %v3729_v18 = vld [vmem:[#allocation10 + $0x2d0] ss:$24 sps:$4 sm:$0xff]  }
  0xbe   :  { %824 = vmatprep.subr.bf16.mxu0 %v3647_v19  ;;  %v128_v19 = vld [vmem:[#allocation7] sm:$0xff] }
  0xbf   :  { %1452 = vmatpush1.bf16.msra.mxu1 %v3660_v30  ;;  %v4356_v26 = vpack.c.bf16 %v130_v20, %v128_v19  ;;  %v3737_v30 = vld [vmem:[#allocation10 + $0x9c] ss:$24 sps:$4 sm:$0xff]  }
  0xc0   :  { %1453 = vmatprep.subr.bf16.mxu1 %v3668_v31  ;;  %v3744_v31 = vld [vmem:[#allocation10 + $0x40] ss:$24 sps:$4 sm:$0xff]  }
  0xc1   :  { %825 = vmatpush1.bf16.msra.mxu0 %v3645_v27  ;;  %v3746_v27 = vld [vmem:[#allocation10 + $0x44] ss:$24 sps:$4 sm:$0xff]  }
  0xc2   :  { %826 = vmatprep.subr.bf16.mxu0 %v3653_v28  ;;  %v3732_v28 = vld [vmem:[#allocation10 + $0x68] ss:$24 sps:$4 sm:$0xff]  }
  0xc3   :  { %1454 = vmatpush1.bf16.msra.mxu1 %v3666_v34  ;;  %v3750_v34 = vld [vmem:[#allocation10 + $0x70] ss:$24 sps:$4 sm:$0xff]  }
  0xc4   :  { %1455 = vmatprep.subr.bf16.mxu1 %v3674_v35  ;;  %v3741_v35 = vld [vmem:[#allocation10 + $0xc8] ss:$24 sps:$4 sm:$0xff]  }
  0xc5   :  { %827 = vmatpush1.bf16.msra.mxu0 %v3651_v32  ;;  %v3752_v32 = vld [vmem:[#allocation10 + $0x74] ss:$24 sps:$4 sm:$0xff]  }
  0xc6   :  { %828 = vmatprep.subr.bf16.mxu0 %v3659_v33  ;;  %v3743_v33 = vld [vmem:[#allocation10 + $0xcc] ss:$24 sps:$4 sm:$0xff]  }
  0xc7   :  { %1456 = vmatpush1.bf16.msra.mxu1 %v3672_v38  ;;  %v3764_v38 = vld [vmem:[#allocation10 + $0xd4] ss:$24 sps:$4 sm:$0xff]  }
  0xc8   :  { %1457 = vmatprep.subr.bf16.mxu1 %v3680_v39  ;;  %v3747_v39 = vld [vmem:[#allocation10 + $0xf8] ss:$24 sps:$4 sm:$0xff]  }
  0xc9   :  { %829 = vmatpush1.bf16.msra.mxu0 %v3657_v36  ;;  %v3749_v36 = vld [vmem:[#allocation10 + $0xfc] ss:$24 sps:$4 sm:$0xff]  }
  0xca   :  { %830 = vmatprep.subr.bf16.mxu0 %v3665_v37  ;;  %v3756_v37 = vld [vmem:[#allocation10 + $0xa0] ss:$24 sps:$4 sm:$0xff]  }
  0xcb   :  { %1458 = vmatpush1.bf16.msra.mxu1 %v3678_v42  ;;  %v3753_v42 = vld [vmem:[#allocation10 + $0x128] ss:$24 sps:$4 sm:$0xff]  }
  0xcc   :  { %1459 = vmatprep.subr.bf16.mxu1 %v3686_v45  ;;  %v3776_v45 = vld [vmem:[#allocation10 + $0x134] ss:$24 sps:$4 sm:$0xff]  }
  0xcd   :  { %831 = vmatpush1.bf16.msra.mxu0 %v3663_v40  ;;  %v3755_v40 = vld [vmem:[#allocation10 + $0x12c] ss:$24 sps:$4 sm:$0xff]  }
  0xce   :  { %832 = vmatprep.subr.bf16.mxu0 %v3671_v41  ;;  %v3762_v41 = vld [vmem:[#allocation10 + $0xd0] ss:$24 sps:$4 sm:$0xff]  }
  0xcf   :  { %1460 = vmatpush1.bf16.msra.mxu1 %v3684_v49  ;;  %v3782_v49 = vld [vmem:[#allocation10 + $0x164] ss:$24 sps:$4 sm:$0xff]  }
  0xd0   :  { %1461 = vmatprep.subr.bf16.mxu1 %v3692_v50  ;;  %v3765_v50 = vld [vmem:[#allocation10 + $0x188] ss:$24 sps:$4 sm:$0xff]  }
  0xd1   :  { %833 = vmatpush1.bf16.msra.mxu0 %v3669_v47  ;;  %v3767_v47 = vld [vmem:[#allocation10 + $0x18c] ss:$24 sps:$4 sm:$0xff]  }
  0xd2   :  { %834 = vmatprep.subr.bf16.mxu0 %v3677_v48  ;;  %v3774_v48 = vld [vmem:[#allocation10 + $0x130] ss:$24 sps:$4 sm:$0xff]  }
  0xd3   :  { %1462 = vmatpush1.bf16.msra.mxu1 %v3690_v53  ;;  %v3788_v53 = vld [vmem:[#allocation10 + $0x194] ss:$24 sps:$4 sm:$0xff]  }
  0xd4   :  { %1463 = vmatprep.subr.bf16.mxu1 %v3698_v54  ;;  %v3771_v54 = vld [vmem:[#allocation10 + $0x1b8] ss:$24 sps:$4 sm:$0xff]  }
  0xd5   :  { %835 = vmatpush1.bf16.msra.mxu0 %v3675_v51  ;;  %v3773_v51 = vld [vmem:[#allocation10 + $0x1bc] ss:$24 sps:$4 sm:$0xff]  }
  0xd6   :  { %836 = vmatprep.subr.bf16.mxu0 %v3683_v52  ;;  %v3780_v52 = vld [vmem:[#allocation10 + $0x160] ss:$24 sps:$4 sm:$0xff]  }
  0xd7   :  { %1464 = vmatpush1.bf16.msra.mxu1 %v3696_v57  ;;  %v3794_v57 = vld [vmem:[#allocation10 + $0x1c4] ss:$24 sps:$4 sm:$0xff]  }
  0xd8   :  { %1465 = vmatprep.subr.bf16.mxu1 %v3704_v58  ;;  %v3777_v58 = vld [vmem:[#allocation10 + $0x1e8] ss:$24 sps:$4 sm:$0xff]  }
  0xd9   :  { %837 = vmatpush1.bf16.msra.mxu0 %v3681_v55  ;;  %v3779_v55 = vld [vmem:[#allocation10 + $0x1ec] ss:$24 sps:$4 sm:$0xff]  }
  0xda   :  { %838 = vmatprep.subr.bf16.mxu0 %v3689_v56  ;;  %v3786_v56 = vld [vmem:[#allocation10 + $0x190] ss:$24 sps:$4 sm:$0xff]  }
  0xdb   :  { %1466 = vmatpush1.bf16.msra.mxu1 %v3702_v61  ;;  %v3800_v61 = vld [vmem:[#allocation10 + $0x1f4] ss:$24 sps:$4 sm:$0xff]  }
  0xdc   :  { %1467 = vmatprep.subr.bf16.mxu1 %v3710_v62  ;;  %v3783_v62 = vld [vmem:[#allocation10 + $0x218] ss:$24 sps:$4 sm:$0xff]  }
  0xdd   :  { %839 = vmatpush1.bf16.msra.mxu0 %v3687_v59  ;;  %v3785_v59 = vld [vmem:[#allocation10 + $0x21c] ss:$24 sps:$4 sm:$0xff]  }
  0xde   :  { %840 = vmatprep.subr.bf16.mxu0 %v3695_v60  ;;  %v3792_v60 = vld [vmem:[#allocation10 + $0x1c0] ss:$24 sps:$4 sm:$0xff]  }
  0xdf   :  { %1468 = vmatpush1.bf16.msra.mxu1 %v3708_v1  ;;  %v3806_v1 = vld [vmem:[#allocation10 + $0x224] ss:$24 sps:$4 sm:$0xff]  }
  0xe0   :  { %1469 = vmatprep.subr.bf16.mxu1 %v3716_v2  ;;  %v3789_v2 = vld [vmem:[#allocation10 + $0x248] ss:$24 sps:$4 sm:$0xff]  }
  0xe1   :  { %841 = vmatpush1.bf16.msra.mxu0 %v3693_v63  ;;  %v3791_v63 = vld [vmem:[#allocation10 + $0x24c] ss:$24 sps:$4 sm:$0xff]  }
  0xe2   :  { %842 = vmatprep.subr.bf16.mxu0 %v3701_v0  ;;  %v3798_v0 = vld [vmem:[#allocation10 + $0x1f0] ss:$24 sps:$4 sm:$0xff]  }
  0xe3   :  { %1470 = vmatpush1.bf16.msra.mxu1 %v3714_v6  ;;  %v3812_v6 = vld [vmem:[#allocation10 + $0x254] ss:$24 sps:$4 sm:$0xff]  }
  0xe4   :  { %1471 = vmatprep.subr.bf16.mxu1 %v3719_v7  ;;  %v3795_v7 = vld [vmem:[#allocation10 + $0x278] ss:$24 sps:$4 sm:$0xff]  }
  0xe5   :  { %843 = vmatpush1.bf16.msra.mxu0 %v3699_v3  ;;  %v3797_v3 = vld [vmem:[#allocation10 + $0x27c] ss:$24 sps:$4 sm:$0xff]  }
  0xe6   :  { %844 = vmatprep.subr.bf16.mxu0 %v3707_v4  ;;  %v3804_v4 = vld [vmem:[#allocation10 + $0x220] ss:$24 sps:$4 sm:$0xff]  }
  0xe7   :  { %1472 = vmatpush1.bf16.msra.mxu1 %v3717_v10  ;;  %v3815_v10 = vld [vmem:[#allocation10 + $0x284] ss:$24 sps:$4 sm:$0xff]  }
  0xe8   :  { %1473 = vmatprep.subr.bf16.mxu1 %v3725_v11  ;;  %v3801_v11 = vld [vmem:[#allocation10 + $0x2a8] ss:$24 sps:$4 sm:$0xff]  }
  0xe9   :  { %845 = vmatpush1.bf16.msra.mxu0 %v3705_v8  ;;  %v3803_v8 = vld [vmem:[#allocation10 + $0x2ac] ss:$24 sps:$4 sm:$0xff]  }
  0xea   :  { %846 = vmatprep.subr.bf16.mxu0 %v3713_v9  ;;  %v3810_v9 = vld [vmem:[#allocation10 + $0x250] ss:$24 sps:$4 sm:$0xff]  }
  0xeb   :  { %1474 = vmatpush1.bf16.msra.mxu1 %v3723_v14  ;;  %v3818_v14 = vld [vmem:[#allocation10 + $0x2b4] ss:$24 sps:$4 sm:$0xff]  }
  0xec   :  { %1475 = vmatprep.subr.bf16.mxu1 %v3731_v15  ;;  %v3807_v15 = vld [vmem:[#allocation10 + $0x2d8] ss:$24 sps:$4 sm:$0xff]  }
  0xed   :  { %847 = vmatpush1.bf16.msra.mxu0 %v3711_v12  ;;  %v3809_v12 = vld [vmem:[#allocation10 + $0x2dc] ss:$24 sps:$4 sm:$0xff]  }
  0xee   :  { %1488 = vmatprep.subr.bf16.mxu0 %v3722_v13  ;;  %v3813_v13 = vld [vmem:[#allocation10 + $0x280] ss:$24 sps:$4 sm:$0xff]  }
  0xef   :  { %1476 = vmatpush1.bf16.msra.mxu1 %v3729_v18  ;;  %v3819_v18 = vld [vmem:[#allocation10 + $0x2e0] ss:$24 sps:$4 sm:$0xff]  }
  0xf0   :  { %849 = vmatmul.mubr.bf16.vlgmr.msra.gmra.mrb[8].mxu0 %v4339_v5  ;;  %1531 = vmatprep.subr.bf16.mxu1 %v3740_v21  ;;  %v3735_v5 = vld [vmem:[#allocation10 + $0x98] ss:$24 sps:$4 sm:$0xff]  }
  0xf1   :  { %1489 = vmatpush1.bf16.msra.mxu0 %v3720_v16  ;;  %858 = vmatprep.mubr.bf16.mxu0 %v4343_v24  ;;  %v3758_v24 = vld [vmem:[#allocation10 + $0xa4] ss:$24 sps:$4 sm:$0xff]   ;;  %v3816_v16 = vld [vmem:[#allocation10 + $0x2b0] ss:$24 sps:$4 sm:$0xff]  }
  0xf2   :  { %1490 = vmatprep.subr.bf16.mxu0 %v3728_v17  ;;  %1478 = vmatmul.mubr.bf16.vlgmr.msra.gmra.mrb[8].mxu1 %v4356_v26  ;;  %v3821_v17 = vld [vmem:[#allocation10 + $0x2e4] ss:$24 sps:$4 sm:$0xff]  }
  0xf3   :  { %1532 = vmatpush1.bf16.msra.mxu1 %v3738_v25  ;;  %1563 = vmatprep.mubr.bf16.mxu1 %v4352_v46 }
  0xf4   :  { %1533 = vmatprep.subr.bf16.mxu1 %v3746_v27 }
  0xf5   :  { %1491 = vmatpush1.bf16.msra.mxu0 %v3726_v22 }
  0xf6   :  { %1492 = vmatprep.subr.bf16.mxu0 %v3734_v23 }
  0xf7   :  { %1534 = vmatpush1.bf16.msra.mxu1 %v3744_v31 }
  0xf8   :  { %859 = vmatmul.mubr.bf16.gmra.mrb[12].mxu0 %v4345_v29  ;;  %1535 = vmatprep.subr.bf16.mxu1 %v3752_v32  ;;  %v3770_v29 = vld [vmem:[#allocation10 + $0x104] ss:$24 sps:$4 sm:$0xff]  }
  0xf9   :  { %1493 = vmatpush1.bf16.msra.mxu0 %v3732_v28  ;;  %1520 = vmatprep.mubr.bf16.mxu0 %v4352_v46  ;;  %v3759_v46 = vld [vmem:[#allocation10 + $0x158] ss:$24 sps:$4 sm:$0xff]  }
  0xfa   :  { %1494 = vmatprep.subr.bf16.mxu0 %v3737_v30 }
  0xfb   :  { %1536 = vmatpush1.bf16.msra.mxu1 %v3750_v34 }
  0xfc   :  { %1537 = vmatprep.subr.bf16.mxu1 %v3758_v24 }
  0xfd   :  { %1495 = vmatpush1.bf16.msra.mxu0 %v3735_v5 }
  0xfe   :  { %1496 = vmatprep.subr.bf16.mxu0 %v3743_v33 }
  0xff   :  { %1538 = vmatpush1.bf16.msra.mxu1 %v3756_v37 }
 0x100   :  { %1539 = vmatprep.subr.bf16.mxu1 %v3764_v38 }
 0x101   :  { %1497 = vmatpush1.bf16.msra.mxu0 %v3741_v35 }
 0x102   :  { %1498 = vmatprep.subr.bf16.mxu0 %v3749_v36 }
 0x103   :  { %1540 = vmatpush1.bf16.msra.mxu1 %v3762_v41 }
 0x104   :  { %1541 = vmatprep.subr.bf16.mxu1 %v3770_v29 }
 0x105   :  { %1499 = vmatpush1.bf16.msra.mxu0 %v3747_v39 }
 0x106   :  { %1500 = vmatprep.subr.bf16.mxu0 %v3755_v40 }
 0x107   :  { %1542 = vmatpush1.bf16.msra.mxu1 %v3768_v44 }
 0x108   :  { %1543 = vmatprep.subr.bf16.mxu1 %v3776_v45 }
 0x109   :  { %1501 = vmatpush1.bf16.msra.mxu0 %v3753_v42 }
 0x10a   :  { %1502 = vmatprep.subr.bf16.mxu0 %v3761_v43 }
 0x10b   :  { %1544 = vmatpush1.bf16.msra.mxu1 %v3774_v48 }
 0x10c   :  { %1545 = vmatprep.subr.bf16.mxu1 %v3782_v49 }
 0x10d   :  { %1503 = vmatpush1.bf16.msra.mxu0 %v3759_v46 }
 0x10e   :  { %1504 = vmatprep.subr.bf16.mxu0 %v3767_v47 }
 0x10f   :  { %1546 = vmatpush1.bf16.msra.mxu1 %v3780_v52 }
 0x110   :  { %1547 = vmatprep.subr.bf16.mxu1 %v3788_v53 }
 0x111   :  { %1505 = vmatpush1.bf16.msra.mxu0 %v3765_v50 }
 0x112   :  { %1506 = vmatprep.subr.bf16.mxu0 %v3773_v51 }
 0x113   :  { %1548 = vmatpush1.bf16.msra.mxu1 %v3786_v56 }
 0x114   :  { %1549 = vmatprep.subr.bf16.mxu1 %v3794_v57 }
 0x115   :  { %1507 = vmatpush1.bf16.msra.mxu0 %v3771_v54 }
 0x116   :  { %1508 = vmatprep.subr.bf16.mxu0 %v3779_v55 }
 0x117   :  { %1550 = vmatpush1.bf16.msra.mxu1 %v3792_v60 }
 0x118   :  { %1551 = vmatprep.subr.bf16.mxu1 %v3800_v61 }
 0x119   :  { %1509 = vmatpush1.bf16.msra.mxu0 %v3777_v58 }
 0x11a   :  { %1510 = vmatprep.subr.bf16.mxu0 %v3785_v59 }
 0x11b   :  { %1552 = vmatpush1.bf16.msra.mxu1 %v3798_v0 }
 0x11c   :  { %1553 = vmatprep.subr.bf16.mxu1 %v3806_v1 }
 0x11d   :  { %1511 = vmatpush1.bf16.msra.mxu0 %v3783_v62 }
 0x11e   :  { %1512 = vmatprep.subr.bf16.mxu0 %v3791_v63 }
 0x11f   :  { %1554 = vmatpush1.bf16.msra.mxu1 %v3804_v4 }
 0x120   :  { %1555 = vmatprep.subr.bf16.mxu1 %v3812_v6 }
 0x121   :  { %1513 = vmatpush1.bf16.msra.mxu0 %v3789_v2 }
 0x122   :  { %1514 = vmatprep.subr.bf16.mxu0 %v3797_v3 }
 0x123   :  { %1556 = vmatpush1.bf16.msra.mxu1 %v3810_v9 }
 0x124   :  { %1557 = vmatprep.subr.bf16.mxu1 %v3815_v10 }
 0x125   :  { %1515 = vmatpush1.bf16.msra.mxu0 %v3795_v7 }
 0x126   :  { %1516 = vmatprep.subr.bf16.mxu0 %v3803_v8 }
 0x127   :  { %1558 = vmatpush1.bf16.msra.mxu1 %v3813_v13 }
 0x128   :  { %1559 = vmatprep.subr.bf16.mxu1 %v3818_v14 }
 0x129   :  { %1517 = vmatpush1.bf16.msra.mxu0 %v3801_v11 }
 0x12a   :  { %1518 = vmatprep.subr.bf16.mxu0 %v3809_v12 }
 0x12b   :  { %1560 = vmatpush1.bf16.msra.mxu1 %v3816_v16 }
 0x12c   :  { %1561 = vmatprep.subr.bf16.mxu1 %v3821_v17 }
 0x12d   :  { %1519 = vmatpush1.bf16.msra.mxu0 %v3807_v15 }
 0x12f   :  { %1562 = vmatpush1.bf16.msra.mxu1 %v3819_v18 }
 0x130   :  { %1521 = vmatmul.mubr.bf16.vlgmr.msra.gmra.mrb[16].mxu0 %v4356_v26 }
 0x132   :  { %1564 = vmatmul.mubr.bf16.vlgmr.msra.gmra.mrb[12].mxu1 %v4356_v26 }
 0x183   :  { %v744_v19 = vpop.f32.mrb[0].mxu0 }
 0x184   :  { %v746_v20 = vpop.f32.mrb[1].mxu0 }
 0x185   :  { %v3390_v21 = vpack.c.bf16 %v746_v20, %v744_v19  ;;  %v748_v22 = vpop.f32.mrb[2].mxu0  ;;  %v797_v27 = vpop.f32.mrb[0].mxu1 }
 0x186   :  { %v750_v23 = vpop.f32.mrb[3].mxu0  ;;  %v799_v28 = vpop.f32.mrb[1].mxu1 }
 0x187   :  { %1646 = vst [vmem:[#allocation2] sm:$0xff] %v3390_v21  ;;  %v3393_v25 = vpack.c.bf16 %v750_v23, %v748_v22  ;;  %v3391_v30 = vpack.c.bf16 %v799_v28, %v797_v27  ;;  %v801_v31 = vpop.f32.mrb[2].mxu1 }
 0x188   :  { %v803_v32 = vpop.f32.mrb[3].mxu1 }
 0x189   :  { %1649 = vst [vmem:[#allocation2 + $0x18] sm:$0xff] %v3393_v25  ;;  %1647 = vst [vmem:[#allocation2 + $0x8] sm:$0xff] %v3391_v30  ;;  %v3394_v5 = vpack.c.bf16 %v803_v32, %v801_v31 }
 0x18b   :  { %1650 = vst [vmem:[#allocation2 + $0x20] sm:$0xff] %v3394_v5  ;;  %v754_v34 = vpop.f32.mrb[4].mxu0 }
 0x18c   :  { %v756_v26 = vpop.f32.mrb[5].mxu0 }
 0x18d   :  { %v3396_v24 = vpack.c.bf16 %v756_v26, %v754_v34  ;;  %v758_v35 = vpop.f32.mrb[6].mxu0  ;;  %v807_v38 = vpop.f32.mrb[4].mxu1 }
 0x18e   :  { %v760_v37 = vpop.f32.mrb[7].mxu0  ;;  %v809_v40 = vpop.f32.mrb[5].mxu1 }
 0x18f   :  { %1652 = vst [vmem:[#allocation2 + $0x48] sm:$0xff] %v3396_v24  ;;  %v3399_v39 = vpack.c.bf16 %v760_v37, %v758_v35  ;;  %v3397_v41 = vpack.c.bf16 %v809_v40, %v807_v38  ;;  %v811_v29 = vpop.f32.mrb[6].mxu1 }
 0x190   :  { %v3822_v33 = vld [vmem:[#allocation2] ss:$24 sps:$4 sm:$0xff]   ;;  %v813_v42 = vpop.f32.mrb[7].mxu1 }
 0x191   :  { %3456 = vmatprep.mubr.bf16.mxu0 %v3822_v33  ;;  %1655 = vst [vmem:[#allocation2 + $0x60] sm:$0xff] %v3399_v39  ;;  %1653 = vst [vmem:[#allocation2 + $0x50] sm:$0xff] %v3397_v41  ;;  %v3400_v43 = vpack.c.bf16 %v813_v42, %v811_v29 }
 0x192   :  { %v3824_v36 = vld [vmem:[#allocation2 + $0x8] ss:$24 sps:$4 sm:$0xff]   ;;  %v4368_v22 = vld [vmem:[#allocation2 + $0xc] ss:$24 sps:$4 sm:$0xff]  }
 0x193   :  { %3452 = vmatprep.subr.bf16.mxu0 %v3824_v36  ;;  %1656 = vst [vmem:[#allocation2 + $0x68] sm:$0xff] %v3400_v43 }
 0x194   :  { %3453 = vmatpush3.bf16.xpose.msra.mxu0 %v3824_v36 }
 0x198   :  { %v3823_v44 = vld [vmem:[#allocation2 + $0x48] ss:$24 sps:$4 sm:$0xff]  }
 0x199   :  { %3464 = vmatprep.mubr.bf16.mxu1 %v3823_v44 }
 0x19a   :  { %v3825_v45 = vld [vmem:[#allocation2 + $0x50] ss:$24 sps:$4 sm:$0xff]   ;;  %v4372_v25 = vld [vmem:[#allocation2 + $0x54] ss:$24 sps:$4 sm:$0xff]  }
 0x19b   :  { %3460 = vmatprep.subr.bf16.mxu1 %v3825_v45 }
 0x19c   :  { %3461 = vmatpush3.bf16.xpose.msra.mxu1 %v3825_v45 }
 0x1c3   :  { %v850_v46 = vpop.f32.mrb[8].mxu0 }
 0x1c4   :  { %v852_v47 = vpop.f32.mrb[9].mxu0 }
 0x1c5   :  { %v3392_v48 = vpack.c.bf16 %v852_v47, %v850_v46  ;;  %v854_v49 = vpop.f32.mrb[10].mxu0  ;;  %v1479_v52 = vpop.f32.mrb[8].mxu1 }
 0x1c6   :  { %v856_v50 = vpop.f32.mrb[11].mxu0  ;;  %v1481_v53 = vpop.f32.mrb[9].mxu1 }
 0x1c7   :  { %1648 = vst [vmem:[#allocation2 + $0x10] sm:$0xff] %v3392_v48  ;;  %v3395_v51 = vpack.c.bf16 %v856_v50, %v854_v49  ;;  %v3402_v54 = vpack.c.bf16 %v1481_v53, %v1479_v52  ;;  %v1483_v55 = vpop.f32.mrb[10].mxu1 }
 0x1c8   :  { %v1485_v57 = vpop.f32.mrb[11].mxu1 }
 0x1c9   :  { %1651 = vst [vmem:[#allocation2 + $0x28] sm:$0xff] %v3395_v51  ;;  %1694 = vst [vmem:[#allocation2 + $0x30] sm:$0xff] %v3402_v54  ;;  %v3405_v59 = vpack.c.bf16 %v1485_v57, %v1483_v55 }
 0x1cb   :  { %v860_v56 = vpop.f32.mrb[12].mxu0  ;;  %1697 = vst [vmem:[#allocation2 + $0x78] sm:$0xff] %v3405_v59 }
 0x1cc   :  { %v862_v58 = vpop.f32.mrb[13].mxu0 }
 0x1cd   :  { %v3398_v60 = vpack.c.bf16 %v862_v58, %v860_v56  ;;  %v864_v61 = vpop.f32.mrb[14].mxu0 }
 0x1ce   :  { %v866_v62 = vpop.f32.mrb[15].mxu0 }
 0x1cf   :  { %1654 = vst [vmem:[#allocation2 + $0x58] sm:$0xff] %v3398_v60  ;;  %v3401_v63 = vpack.c.bf16 %v866_v62, %v864_v61 }
 0x1d0   :  { %v3828_v14 = vld [vmem:[#allocation2 + $0x10] ss:$24 sps:$4 sm:$0xff]  }
 0x1d1   :  { %1657 = vst [vmem:[#allocation2 + $0x70] sm:$0xff] %v3401_v63  ;;  %v3830_v17 = vld [vmem:[#allocation2 + $0x30] ss:$0 sps:$4 sm:$0xff]  }
 0x1d2   :  { %v3831_v19 = vld [vmem:[#allocation2 + $0x78] ss:$0 sps:$4 sm:$0xff]  }
 0x1d8   :  { %v3829_v16 = vld [vmem:[#allocation2 + $0x58] ss:$24 sps:$4 sm:$0xff]  }
 0x203   :  { %v1522_v0 = vpop.f32.mrb[16].mxu0 }
 0x204   :  { %v1524_v1 = vpop.f32.mrb[17].mxu0 }
 0x205   :  { %v3403_v2 = vpack.c.bf16 %v1524_v1, %v1522_v0  ;;  %v1526_v3 = vpop.f32.mrb[18].mxu0  ;;  %v1565_v7 = vpop.f32.mrb[12].mxu1 }
 0x206   :  { %v1528_v4 = vpop.f32.mrb[19].mxu0  ;;  %v1567_v8 = vpop.f32.mrb[13].mxu1 }
 0x207   :  { %1695 = vst [vmem:[#allocation2 + $0x38] sm:$0xff] %v3403_v2  ;;  %v3406_v6 = vpack.c.bf16 %v1528_v4, %v1526_v3  ;;  %v3404_v9 = vpack.c.bf16 %v1567_v8, %v1565_v7  ;;  %v1569_v10 = vpop.f32.mrb[14].mxu1 }
 0x208   :  { %v1571_v11 = vpop.f32.mrb[15].mxu1 }
 0x209   :  { %1698 = vst [vmem:[#allocation2 + $0x80] sm:$0xff] %v3406_v6  ;;  %1696 = vst [vmem:[#allocation2 + $0x40] sm:$0xff] %v3404_v9  ;;  %v3407_v12 = vpack.c.bf16 %v1571_v11, %v1569_v10 }
 0x20b   :  { %1699 = vst [vmem:[#allocation2 + $0x88] sm:$0xff] %v3407_v12 }
 0x20e   :  { %v3826_v13 = vld [vmem:[#allocation2 + $0x38] ss:$0 sps:$4 sm:$0xff]  }
 0x20f   :  { %3454 = vmatprep.subr.bf16.mxu0 %v3826_v13 }
 0x210   :  { %v3827_v15 = vld [vmem:[#allocation2 + $0x80] ss:$0 sps:$4 sm:$0xff]   ;;  %3455 = vmatpush3.bf16.xpose.msra.mxu0 %v3826_v13 }
 0x211   :  { %3462 = vmatprep.subr.bf16.mxu1 %v3827_v15  ;;  %3468 = vmatprep.subr.bf16.mxu0 %v3828_v14  ;;  %v3832_v18 = vld [vmem:[#allocation2 + $0x40] ss:$0 sps:$4 sm:$0xff]  }
 0x212   :  { %3463 = vmatpush3.bf16.xpose.msra.mxu1 %v3827_v15  ;;  %v3833_v20 = vld [vmem:[#allocation2 + $0x88] ss:$0 sps:$4 sm:$0xff]   ;;  %v1942_v21 = vsel %vm1940_vm0, %v3832_v18, 0 }
 0x213   :  { %3476 = vmatprep.subr.bf16.mxu1 %v3829_v16  ;;  %v2008_v23 = vsel %vm1940_vm0, %v3833_v20, 0 }
 0x217   :  { %3457 = vmatmul.mubr.bf16.vlgmr.msra.gmra.mrb[20].mxu0 %v3830_v17 }
 0x218   :  { %3469 = vmatpush3.bf16.msra.mxu0 %v3828_v14 }
 0x219   :  { %3465 = vmatmul.mubr.bf16.vlgmr.msra.gmra.mrb[16].mxu1 %v3831_v19  ;;  %3516 = vmatprep.subr.msk.bf16.mxu0 %vm1940_vm0, %v3832_v18 }
 0x21a   :  { %3477 = vmatpush3.bf16.msra.mxu1 %v3829_v16 }
 0x21b   :  { %3517 = vmatprep.subr.msk.bf16.mxu1 %vm1940_vm0, %v3833_v20 }
 0x21c   :  { %3471 = vmatpush3.bf16.msra.mxu0 %v1942_v21  ;;  %v3837_v21 = vld [vmem:[#allocation2 + $0x4] ss:$24 sps:$4 sm:$0xff]  }
 0x21d   :  { %3484 = vmatprep.subr.bf16.mxu0 %v4368_v22 }
 0x21e   :  { %3479 = vmatpush3.bf16.msra.mxu1 %v2008_v23 }
 0x21f   :  { %3492 = vmatprep.subr.bf16.mxu1 %v4372_v25 }
 0x2ea   :  { %v3458_v27 = vpop.f32.mrb[20].mxu0 }
 0x2eb   :  { %v1772_v28 = vpop.f32.mrb[21].mxu0  ;;  %v1861_v30 = vsel %vm1854_vm1, %v3458_v27, -inf }
 0x2ec   :  { %1862 = vmax.xlane.f32.xlu1 %v1861_v30  ;;  %v3459_v31 = vpop.f32.mrb[22].mxu0  ;;  %v3466_v32 = vpop.f32.mrb[16].mxu1  ;;  %v1855_v5 = vsel %vm1854_vm1, %v1772_v28, -inf }
 0x2ed   :  { %1856 = vmax.xlane.f32.xlu0 %v1855_v5  ;;  %v1775_v33 = vpop.f32.mrb[23].mxu0  ;;  %v1840_v34 = vpop.f32.mrb[17].mxu1  ;;  %v1870_v37 = vsel %vm1854_vm1, %v3466_v32, -inf }
 0x2ee   :  { %v3467_v26 = vpop.f32.mrb[18].mxu1  ;;  %v1864_v24 = vsel %vm1854_vm1, %v1840_v34, -inf  ;;  %v1858_v36 = vsel %vm1854_vm1, %v1775_v33, -inf }
 0x2ef   :  { %v1843_v35 = vpop.f32.mrb[19].mxu1  ;;  %v3840_v26 = vld [vmem:[#allocation2 + $0x14] ss:$24 sps:$4 sm:$0xff]  }
 0x2f0   :  { %1865 = vmax.xlane.f32.xlu1 %v1864_v24  ;;  %v1867_v38 = vsel %vm1854_vm1, %v1843_v35, -inf  ;;  %v3842_v24 = vld [vmem:[#allocation2 + $0x5c] ss:$24 sps:$4 sm:$0xff]  }
 0x2f1   :  { %1859 = vmax.xlane.f32.xlu0 %v1858_v36 }
 0x2f4   :  { %1871 = vmax.xlane.f32.xlu1 %v1870_v37  ;;  %v3844_v37 = vld [vmem:[#allocation2 + $0x7c] ss:$0 sps:$4 sm:$0xff]  }
 0x2f5   :  { %1868 = vmax.xlane.f32.xlu0 %v1867_v38 }
 0x379   :  { %v1863_v39 = vpop.xlane.xlu1 %1862 }
 0x37a   :  { %v1875_v40 = vsub.f32 %v3458_v27, %v1863_v39  ;;  %v1857_v41 = vpop.xlane.xlu0 %1856  ;;  %v3836_v27 = vld [vmem:[#allocation2 + $0x3c] ss:$0 sps:$4 sm:$0xff]  }
 0x37b   :  { %v1873_v29 = vsub.f32 %v1772_v28, %v1857_v41 }
 0x37c   :  { %v1883_v42 = vmul.f32 1.442695, %v1875_v40 }
 0x37d   :  { %v1879_v43 = vmul.f32 1.442695, %v1873_v29  ;;  %v1866_v44 = vpop.xlane.xlu1 %1865 }
 0x37e   :  { %v1876_v45 = vsub.f32 %v1840_v34, %v1866_v44  ;;  %v1860_v46 = vpop.xlane.xlu0 %1859  ;;  %v3838_v34 = vld [vmem:[#allocation2 + $0x84] ss:$0 sps:$4 sm:$0xff]  }
 0x37f   :  { %3951 = vpow2.f32 %v1879_v43  ;;  %v1874_v47 = vsub.f32 %v1775_v33, %v1860_v46  ;;  %v3839_v33 = vld [vmem:[#allocation2 + $0x4c] ss:$24 sps:$4 sm:$0xff]  }
 0x380   :  { %3953 = vpow2.f32 %v1883_v42  ;;  %v1885_v48 = vmul.f32 1.442695, %v1876_v45 }
 0x381   :  { %v1881_v49 = vmul.f32 1.442695, %v1874_v47  ;;  %v1872_v50 = vpop.xlane.xlu1 %1871 }
 0x382   :  { %v1878_v51 = vsub.f32 %v3466_v32, %v1872_v50  ;;  %v1869_v52 = vpop.xlane.xlu0 %1868 }
 0x383   :  { %3955 = vpow2.f32 %v1881_v49  ;;  %v1877_v53 = vsub.f32 %v1843_v35, %v1869_v52  ;;  %v3843_v35 = vld [vmem:[#allocation2 + $0x44] ss:$0 sps:$4 sm:$0xff]  }
 0x384   :  { %3957 = vpow2.f32 %v1885_v48  ;;  %v1889_v54 = vmul.f32 1.442695, %v1878_v51  ;;  %v2330_v36 = vsel %vm1940_vm0, %v3843_v35, 0 }
 0x385   :  { %v1887_v55 = vmul.f32 1.442695, %v1877_v53 }
 0x387   :  { %3959 = vpow2.f32 %v1887_v55 }
 0x388   :  { %3961 = vpow2.f32 %v1889_v54 }
 0x389   :  { %v3952_v56 = vpop.eup %3951 }
 0x38a   :  { %v1891_v57 = vsel %vm1854_vm1, %v3952_v56, 0.0  ;;  %v3954_v58 = vpop.eup %3953 }
 0x38b   :  { %1892 = vadd.xlane.f32.xlu0 %v1891_v57  ;;  %v1897_v61 = vsel %vm1854_vm1, %v3954_v58, 0.0 }
 0x38d   :  { %v3956_v59 = vpop.eup %3955 }
 0x38e   :  { %v1894_v60 = vsel %vm1854_vm1, %v3956_v59, 0.0  ;;  %v3958_v62 = vpop.eup %3957 }
 0x38f   :  { %1895 = vadd.xlane.f32.xlu1 %v1894_v60  ;;  %1898 = vadd.xlane.f32.xlu0 %v1897_v61  ;;  %v1900_v0 = vsel %vm1854_vm1, %v3958_v62, 0.0 }
 0x391   :  { %v3960_v63 = vpop.eup %3959 }
 0x392   :  { %v1903_v1 = vsel %vm1854_vm1, %v3960_v63, 0.0  ;;  %v3962_v2 = vpop.eup %3961 }
 0x393   :  { %1901 = vadd.xlane.f32.xlu1 %v1900_v0  ;;  %1904 = vadd.xlane.f32.xlu0 %v1903_v1  ;;  %v1906_v3 = vsel %vm1854_vm1, %v3962_v2, 0.0 }
 0x397   :  { %1907 = vadd.xlane.f32.xlu1 %v1906_v3 }
 0x418   :  { %v1893_v4 = vpop.xlane.xlu0 %1892 }
 0x419   :  { %3963 = vrcp.f32 %v1893_v4 }
 0x41c   :  { %v1896_v6 = vpop.xlane.xlu1 %1895  ;;  %v1899_v7 = vpop.xlane.xlu0 %1898 }
 0x41d   :  { %3965 = vrcp.f32 %v1896_v6 }
 0x41e   :  { %3967 = vrcp.f32 %v1899_v7 }
 0x420   :  { %v1902_v8 = vpop.xlane.xlu1 %1901  ;;  %v1905_v9 = vpop.xlane.xlu0 %1904 }
 0x421   :  { %3969 = vrcp.f32 %v1902_v8 }
 0x422   :  { %3971 = vrcp.f32 %v1905_v9 }
 0x423   :  { %v3964_v11 = vpop.eup %3963 }
 0x424   :  { %v1908_v10 = vpop.xlane.xlu1 %1907  ;;  %v1915_v14 = vmul.f32 %v3964_v11, %v3952_v56 }
 0x425   :  { %3973 = vrcp.f32 %v1908_v10 }
 0x427   :  { %v3966_v12 = vpop.eup %3965 }
 0x428   :  { %v3968_v13 = vpop.eup %3967  ;;  %v1916_v15 = vmul.f32 %v3966_v12, %v3956_v59 }
 0x429   :  { %v1917_v16 = vmul.f32 %v3968_v13, %v3954_v58 }
 0x42a   :  { %v1921_v17 = vpack.c.bf16 %v1916_v15, %v1915_v14 }
 0x42b   :  { %v3970_v18 = vpop.eup %3969  ;;  %v1922_v19 = vpack.c.bf16 %v1917_v16, %v1917_v16 }
 0x42c   :  { %v3972_v20 = vpop.eup %3971  ;;  %3472 = vmatprep.mubr.msk.bf16.mxu0 %vm1854_vm1, %v1921_v17  ;;  %v1918_v23 = vmul.f32 %v3970_v18, %v3958_v62 }
 0x42d   :  { %3473 = vmatmul.mubr.msk.bf16.vlgmr.msra.gmra.mrb[24].mxu0 %vm1854_vm1, %v1922_v19  ;;  %v1919_v28 = vmul.f32 %v3972_v20, %v3960_v63 }
 0x42e   :  { %3485 = vmatpush3.bf16.xpose.msra.mxu0 %v4368_v22  ;;  %3488 = vmatprep.mubr.bf16.mxu0 %v3837_v21  ;;  %v3841_v22 = vld [vmem:[#allocation2 + $0x34] ss:$0 sps:$4 sm:$0xff]  }
 0x42f   :  { %v3974_v30 = vpop.eup %3973  ;;  %3486 = vmatprep.subr.bf16.mxu0 %v3836_v27  ;;  %v1923_v31 = vpack.c.bf16 %v1919_v28, %v1918_v23 }
 0x430   :  { %v1920_v32 = vmul.f32 %v3974_v30, %v3962_v2 }
 0x431   :  { %3480 = vmatprep.mubr.msk.bf16.mxu1 %vm1854_vm1, %v1923_v31 }
 0x432   :  { %v1924_v5 = vpack.c.bf16 %v1920_v32, %v1920_v32 }
 0x434   :  { %3481 = vmatmul.mubr.msk.bf16.vlgmr.msra.gmra.mrb[20].mxu1 %vm1854_vm1, %v1924_v5 }
 0x435   :  { %3493 = vmatpush3.bf16.xpose.msra.mxu1 %v4372_v25  ;;  %3496 = vmatprep.mubr.bf16.mxu1 %v3839_v33  ;;  %v3845_v25 = vld [vmem:[#allocation2 + $0x8c] ss:$0 sps:$4 sm:$0xff]  }
 0x436   :  { %3487 = vmatpush3.bf16.xpose.msra.mxu0 %v3836_v27  ;;  %3494 = vmatprep.subr.bf16.mxu1 %v3838_v34  ;;  %v2396_v38 = vsel %vm1940_vm0, %v3845_v25, 0 }
 0x437   :  { %3500 = vmatprep.subr.bf16.mxu0 %v3840_v26 }
 0x43d   :  { %3489 = vmatmul.mubr.bf16.vlgmr.msra.gmra.mrb[28].mxu0 %v3841_v22  ;;  %3495 = vmatpush3.bf16.xpose.msra.mxu1 %v3838_v34 }
 0x43e   :  { %3501 = vmatpush3.bf16.msra.mxu0 %v3840_v26  ;;  %3508 = vmatprep.subr.bf16.mxu1 %v3842_v24 }
 0x43f   :  { %3518 = vmatprep.subr.msk.bf16.mxu0 %vm1940_vm0, %v3843_v35  ;;  %v3854_v35 = vld [vmem:[#allocation13 + $0x4] ss:$8 sps:$4 sm:$0xff]  }
 0x442   :  { %3503 = vmatpush3.bf16.msra.mxu0 %v2330_v36 }
 0x444   :  { %3497 = vmatmul.mubr.bf16.vlgmr.msra.gmra.mrb[24].mxu1 %v3844_v37 }
 0x445   :  { %3509 = vmatpush3.bf16.msra.mxu1 %v3842_v24  ;;  %v3848_v24 = vld [vmem:[#allocation12 + $0x4] ss:$8 sps:$4 sm:$0xff]  }
 0x446   :  { %3519 = vmatprep.subr.msk.bf16.mxu1 %vm1940_vm0, %v3845_v25  ;;  %2708 = vmatprep.subr.bf16.mxu0 %v3848_v24  ;;  %v3906_v24 = vld [vmem:[#allocation13 + $0x90] ss:$8 sps:$4 sm:$0xff]  }
 0x449   :  { %3511 = vmatpush3.bf16.msra.mxu1 %v2396_v38 }
 0x44a   :  { %2975 = vmatprep.subr.bf16.mxu1 %v3854_v35  ;;  %v3909_v35 = vld [vmem:[#allocation12 + $0xb0] ss:$8 sps:$4 sm:$0xff]  }
 0x500   :  { %v3474_v39 = vpop.f32.mrb[24].mxu0 }
 0x501   :  { %v3410_v40 = vpack.c.bf16 %v3474_v39, %v3474_v39  ;;  %v1978_v41 = vpop.f32.mrb[25].mxu0 }
 0x502   :  { %v3408_v29 = vpack.c.bf16 %v1978_v41, %v1978_v41  ;;  %v3475_v42 = vpop.f32.mrb[26].mxu0 }
 0x503   :  { %2086 = vst [vmem:[#allocation3 + $0x10] sm:$0xf] %v3410_v40  ;;  %v1981_v43 = vpop.f32.mrb[27].mxu0 }
 0x504   :  { %2084 = vst [vmem:[#allocation3] sm:$0xf] %v3408_v29  ;;  %v3409_v44 = vpack.c.bf16 %v1981_v43, %v1981_v43 }
 0x506   :  { %2085 = vst [vmem:[#allocation3 + $0x8] sm:$0xf] %v3409_v44 }
 0x507   :  { %v3482_v45 = vpop.f32.mrb[20].mxu1 }
 0x508   :  { %v3413_v46 = vpack.c.bf16 %v3482_v45, %v3482_v45  ;;  %v2044_v47 = vpop.f32.mrb[21].mxu1 }
 0x509   :  { %v3411_v48 = vpack.c.bf16 %v2044_v47, %v2044_v47  ;;  %v3483_v49 = vpop.f32.mrb[22].mxu1  ;;  %v3846_v47 = vld [vmem:[#allocation12] ss:$8 sps:$4 sm:$0xff]  }
 0x50a   :  { %2089 = vst [vmem:[#allocation3 + $0x28] sm:$0xf] %v3413_v46  ;;  %v2047_v50 = vpop.f32.mrb[23].mxu1 }
 0x50b   :  { %2087 = vst [vmem:[#allocation3 + $0x18] sm:$0xf] %v3411_v48  ;;  %v3412_v51 = vpack.c.bf16 %v2047_v50, %v2047_v50  ;;  %v3851_v50 = vld [vmem:[#allocation12 + $0x14] ss:$8 sps:$4 sm:$0xff]  }
 0x50d   :  { %2088 = vst [vmem:[#allocation3 + $0x20] sm:$0xf] %v3412_v51 }
 0x510   :  { %v3490_v52 = vpop.f32.mrb[28].mxu0 }
 0x511   :  { %v2162_v53 = vpop.f32.mrb[29].mxu0  ;;  %v2250_v58 = vsel %vm1854_vm1, %v3490_v52, -inf }
 0x512   :  { %v3491_v54 = vpop.f32.mrb[30].mxu0  ;;  %v2244_v55 = vsel %vm1854_vm1, %v2162_v53, -inf }
 0x513   :  { %2245 = vmax.xlane.f32.xlu0 %v2244_v55  ;;  %v2165_v56 = vpop.f32.mrb[31].mxu0  ;;  %v3849_v54 = vld [vmem:[#allocation12 + $0x10] ss:$8 sps:$4 sm:$0xff]  }
 0x514   :  { %v2247_v57 = vsel %vm1854_vm1, %v2165_v56, -inf }
 0x515   :  { %2248 = vmax.xlane.f32.xlu1 %v2247_v57 }
 0x517   :  { %2251 = vmax.xlane.f32.xlu0 %v2250_v58  ;;  %v3498_v59 = vpop.f32.mrb[24].mxu1 }
 0x518   :  { %v2230_v60 = vpop.f32.mrb[25].mxu1  ;;  %v2259_v1 = vsel %vm1854_vm1, %v3498_v59, -inf }
 0x519   :  { %v3499_v61 = vpop.f32.mrb[26].mxu1  ;;  %v2253_v62 = vsel %vm1854_vm1, %v2230_v60, -inf }
 0x51a   :  { %2254 = vmax.xlane.f32.xlu1 %v2253_v62  ;;  %v2233_v63 = vpop.f32.mrb[27].mxu1  ;;  %v3855_v61 = vld [vmem:[#allocation12 + $0x20] ss:$8 sps:$4 sm:$0xff]   ;;  %v3860_v62 = vld [vmem:[#allocation13 + $0x14] ss:$8 sps:$4 sm:$0xff]  }
 0x51b   :  { %v2256_v0 = vsel %vm1854_vm1, %v2233_v63, -inf }
 0x51c   :  { %2257 = vmax.xlane.f32.xlu0 %v2256_v0  ;;  %v3858_v0 = vld [vmem:[#allocation13 + $0x10] ss:$8 sps:$4 sm:$0xff]  }
 0x51e   :  { %2260 = vmax.xlane.f32.xlu1 %v2259_v1  ;;  %v3861_v1 = vld [vmem:[#allocation12 + $0x30] ss:$8 sps:$4 sm:$0xff]  }
 0x5a0   :  { %v2246_v2 = vpop.xlane.xlu0 %2245 }
 0x5a1   :  { %v2262_v3 = vsub.f32 %v2162_v53, %v2246_v2  ;;  %v3866_v2 = vld [vmem:[#allocation13 + $0x24] ss:$8 sps:$4 sm:$0xff]  }
 0x5a2   :  { %v2249_v4 = vpop.xlane.xlu1 %2248 }
 0x5a3   :  { %v2268_v6 = vmul.f32 1.442695, %v2262_v3  ;;  %v2263_v7 = vsub.f32 %v2165_v56, %v2249_v4  ;;  %v3857_v56 = vld [vmem:[#allocation12 + $0x24] ss:$8 sps:$4 sm:$0xff]   ;;  %v3864_v4 = vld [vmem:[#allocation13 + $0x20] ss:$8 sps:$4 sm:$0xff]  }
 0x5a4   :  { %v2252_v8 = vpop.xlane.xlu0 %2251  ;;  %v3869_v3 = vld [vmem:[#allocation12 + $0x44] ss:$8 sps:$4 sm:$0xff]  }
 0x5a5   :  { %3975 = vpow2.f32 %v2268_v6  ;;  %v2270_v9 = vmul.f32 1.442695, %v2263_v7  ;;  %v2264_v10 = vsub.f32 %v3490_v52, %v2252_v8  ;;  %v3867_v6 = vld [vmem:[#allocation12 + $0x40] ss:$8 sps:$4 sm:$0xff]   ;;  %v3872_v7 = vld [vmem:[#allocation13 + $0x34] ss:$8 sps:$4 sm:$0xff]  }
 0x5a6   :  { %v3875_v8 = vld [vmem:[#allocation12 + $0x54] ss:$8 sps:$4 sm:$0xff]  }
 0x5a7   :  { %3977 = vpow2.f32 %v2270_v9  ;;  %v2272_v11 = vmul.f32 1.442695, %v2264_v10  ;;  %v2255_v12 = vpop.xlane.xlu1 %2254  ;;  %v3870_v9 = vld [vmem:[#allocation13 + $0x30] ss:$8 sps:$4 sm:$0xff]  }
 0x5a8   :  { %v2265_v13 = vsub.f32 %v2230_v60, %v2255_v12  ;;  %v3873_v10 = vld [vmem:[#allocation12 + $0x50] ss:$8 sps:$4 sm:$0xff]   ;;  %v3881_v12 = vld [vmem:[#allocation12 + $0x64] ss:$8 sps:$4 sm:$0xff]  }
 0x5a9   :  { %3979 = vpow2.f32 %v2272_v11  ;;  %v2258_v14 = vpop.xlane.xlu0 %2257  ;;  %v3878_v11 = vld [vmem:[#allocation13 + $0x44] ss:$8 sps:$4 sm:$0xff]  }
 0x5aa   :  { %v2274_v15 = vmul.f32 1.442695, %v2265_v13  ;;  %v2266_v16 = vsub.f32 %v2233_v63, %v2258_v14  ;;  %v3863_v63 = vld [vmem:[#allocation12 + $0x34] ss:$8 sps:$4 sm:$0xff]   ;;  %v3876_v13 = vld [vmem:[#allocation13 + $0x40] ss:$8 sps:$4 sm:$0xff]  }
 0x5ab   :  { %v2261_v17 = vpop.xlane.xlu1 %2260  ;;  %v3879_v14 = vld [vmem:[#allocation12 + $0x60] ss:$8 sps:$4 sm:$0xff]  }
 0x5ac   :  { %3981 = vpow2.f32 %v2274_v15  ;;  %v2276_v18 = vmul.f32 1.442695, %v2266_v16  ;;  %v2267_v19 = vsub.f32 %v3498_v59, %v2261_v17  ;;  %v3852_v59 = vld [vmem:[#allocation13] ss:$8 sps:$4 sm:$0xff]   ;;  %v3884_v15 = vld [vmem:[#allocation13 + $0x54] ss:$8 sps:$4 sm:$0xff]  }
 0x5ad   :  { %v3887_v16 = vld [vmem:[#allocation12 + $0x74] ss:$8 sps:$4 sm:$0xff]   ;;  %v3882_v17 = vld [vmem:[#allocation13 + $0x50] ss:$8 sps:$4 sm:$0xff]  }
 0x5ae   :  { %3983 = vpow2.f32 %v2276_v18  ;;  %v2278_v20 = vmul.f32 1.442695, %v2267_v19  ;;  %v3885_v18 = vld [vmem:[#allocation12 + $0x70] ss:$8 sps:$4 sm:$0xff]   ;;  %v3890_v19 = vld [vmem:[#allocation13 + $0x64] ss:$8 sps:$4 sm:$0xff]  }
 0x5af   :  { %v3976_v21 = vpop.eup %3975 }
 0x5b0   :  { %3985 = vpow2.f32 %v2278_v20  ;;  %v2280_v23 = vsel %vm1854_vm1, %v3976_v21, 0.0  ;;  %v3893_v20 = vld [vmem:[#allocation12 + $0x84] ss:$8 sps:$4 sm:$0xff]  }
 0x5b1   :  { %v3978_v27 = vpop.eup %3977  ;;  %2281 = vadd.xlane.f32.xlu0 %v2280_v23  ;;  %v3891_v23 = vld [vmem:[#allocation12 + $0x80] ss:$8 sps:$4 sm:$0xff]  }
 0x5b2   :  { %v2283_v28 = vsel %vm1854_vm1, %v3978_v27, 0.0 }
 0x5b3   :  { %v3980_v30 = vpop.eup %3979  ;;  %2284 = vadd.xlane.f32.xlu1 %v2283_v28  ;;  %v3899_v28 = vld [vmem:[#allocation12 + $0x94] ss:$8 sps:$4 sm:$0xff]  }
 0x5b4   :  { %v2286_v31 = vsel %vm1854_vm1, %v3980_v30, 0.0 }
 0x5b5   :  { %2287 = vadd.xlane.f32.xlu0 %v2286_v31  ;;  %v3897_v31 = vld [vmem:[#allocation12 + $0x90] ss:$8 sps:$4 sm:$0xff]  }
 0x5b6   :  { %v3982_v32 = vpop.eup %3981 }
 0x5b7   :  { %v2289_v5 = vsel %vm1854_vm1, %v3982_v32, 0.0 }
 0x5b8   :  { %v3984_v33 = vpop.eup %3983  ;;  %2290 = vadd.xlane.f32.xlu1 %v2289_v5  ;;  %v3905_v5 = vld [vmem:[#allocation12 + $0xa4] ss:$8 sps:$4 sm:$0xff]  }
 0x5b9   :  { %v2292_v34 = vsel %vm1854_vm1, %v3984_v33, 0.0 }
 0x5ba   :  { %v3986_v26 = vpop.eup %3985  ;;  %2293 = vadd.xlane.f32.xlu0 %v2292_v34  ;;  %v3903_v34 = vld [vmem:[#allocation12 + $0xa0] ss:$8 sps:$4 sm:$0xff]  }
 0x5bb   :  { %v2295_v22 = vsel %vm1854_vm1, %v3986_v26, 0.0 }
 0x5bc   :  { %2296 = vadd.xlane.f32.xlu1 %v2295_v22  ;;  %v3911_v22 = vld [vmem:[#allocation12 + $0xb4] ss:$8 sps:$4 sm:$0xff]  }
 0x63e   :  { %v2282_v36 = vpop.xlane.xlu0 %2281 }
 0x63f   :  { %3987 = vrcp.f32 %v2282_v36  ;;  %v3914_v36 = vld [vmem:[#allocation13 + $0xa4] ss:$8 sps:$4 sm:$0xff]  }
 0x640   :  { %v2285_v37 = vpop.xlane.xlu1 %2284 }
 0x641   :  { %3989 = vrcp.f32 %v2285_v37  ;;  %v3912_v37 = vld [vmem:[#allocation13 + $0xa0] ss:$8 sps:$4 sm:$0xff]  }
 0x642   :  { %v2288_v25 = vpop.xlane.xlu0 %2287 }
 0x643   :  { %3991 = vrcp.f32 %v2288_v25  ;;  %v3917_v25 = vld [vmem:[#allocation12 + $0xc4] ss:$8 sps:$4 sm:$0xff]  }
 0x645   :  { %v2291_v38 = vpop.xlane.xlu1 %2290 }
 0x646   :  { %3993 = vrcp.f32 %v2291_v38  ;;  %v3920_v38 = vld [vmem:[#allocation13 + $0xb4] ss:$8 sps:$4 sm:$0xff]  }
 0x647   :  { %v2294_v39 = vpop.xlane.xlu0 %2293 }
 0x648   :  { %3995 = vrcp.f32 %v2294_v39  ;;  %v3915_v39 = vld [vmem:[#allocation12 + $0xc0] ss:$8 sps:$4 sm:$0xff]  }
 0x649   :  { %v3988_v40 = vpop.eup %3987  ;;  %v2297_v41 = vpop.xlane.xlu1 %2296 }
 0x64a   :  { %3997 = vrcp.f32 %v2297_v41  ;;  %v2304_v42 = vmul.f32 %v3988_v40, %v3976_v21  ;;  %v3888_v21 = vld [vmem:[#allocation13 + $0x60] ss:$8 sps:$4 sm:$0xff]   ;;  %v3918_v40 = vld [vmem:[#allocation13 + $0xb0] ss:$8 sps:$4 sm:$0xff]   ;;  %v3923_v41 = vld [vmem:[#allocation12 + $0xd4] ss:$8 sps:$4 sm:$0xff]  }
 0x64b   :  { %v3990_v29 = vpop.eup %3989 }
 0x64c   :  { %v2305_v43 = vmul.f32 %v3990_v29, %v3978_v27  ;;  %v3896_v27 = vld [vmem:[#allocation13 + $0x74] ss:$8 sps:$4 sm:$0xff]   ;;  %v3926_v29 = vld [vmem:[#allocation13 + $0xc4] ss:$8 sps:$4 sm:$0xff]  }
 0x64d   :  { %v3992_v44 = vpop.eup %3991 }
 0x64e   :  { %v2306_v45 = vmul.f32 %v3992_v44, %v3980_v30  ;;  %v2310_v46 = vpack.c.bf16 %v2305_v43, %v2304_v42  ;;  %v3894_v30 = vld [vmem:[#allocation13 + $0x70] ss:$8 sps:$4 sm:$0xff]   ;;  %v3924_v43 = vld [vmem:[#allocation13 + $0xc0] ss:$8 sps:$4 sm:$0xff]   ;;  %v3929_v44 = vld [vmem:[#allocation12 + $0xe4] ss:$8 sps:$4 sm:$0xff]  }
 0x64f   :  { %v3921_v42 = vld [vmem:[#allocation12 + $0xd0] ss:$8 sps:$4 sm:$0xff]  }
 0x650   :  { %v3994_v48 = vpop.eup %3993  ;;  %3504 = vmatprep.mubr.msk.bf16.mxu0 %vm1854_vm1, %v2310_v46  ;;  %v2311_v49 = vpack.c.bf16 %v2306_v45, %v2306_v45  ;;  %v3932_v45 = vld [vmem:[#allocation13 + $0xd4] ss:$8 sps:$4 sm:$0xff]   ;;  %v3927_v46 = vld [vmem:[#allocation12 + $0xe0] ss:$8 sps:$4 sm:$0xff]  }
 0x651   :  { %v2307_v52 = vmul.f32 %v3994_v48, %v3982_v32  ;;  %v3902_v32 = vld [vmem:[#allocation13 + $0x84] ss:$8 sps:$4 sm:$0xff]   ;;  %v3935_v48 = vld [vmem:[#allocation12 + $0xf4] ss:$8 sps:$4 sm:$0xff]  }
 0x652   :  { %v3996_v51 = vpop.eup %3995  ;;  %3505 = vmatmul.mubr.msk.bf16.vlgmr.msra.gmra.mrb[32].mxu0 %vm1854_vm1, %v2311_v49  ;;  %v3938_v49 = vld [vmem:[#allocation13 + $0xe4] ss:$8 sps:$4 sm:$0xff]  }
 0x653   :  { %v2308_v53 = vmul.f32 %v3996_v51, %v3984_v33  ;;  %2709 = vmatpush1.bf16.msra.mxu0 %v3846_v47  ;;  %v3900_v33 = vld [vmem:[#allocation13 + $0x80] ss:$8 sps:$4 sm:$0xff]   ;;  %v3930_v47 = vld [vmem:[#allocation13 + $0xd0] ss:$8 sps:$4 sm:$0xff]  }
 0x654   :  { %v3998_v55 = vpop.eup %3997  ;;  %2710 = vmatprep.subr.bf16.mxu0 %v3851_v50  ;;  %v3933_v50 = vld [vmem:[#allocation12 + $0xf0] ss:$8 sps:$4 sm:$0xff]   ;;  %v3936_v51 = vld [vmem:[#allocation13 + $0xe0] ss:$8 sps:$4 sm:$0xff]  }
 0x655   :  { %v2309_v57 = vmul.f32 %v3998_v55, %v3986_v26  ;;  %v2312_v58 = vpack.c.bf16 %v2308_v53, %v2307_v52  ;;  %v3908_v26 = vld [vmem:[#allocation13 + $0x94] ss:$8 sps:$4 sm:$0xff]   ;;  %v3942_v53 = vld [vmem:[#allocation13 + $0xf0] ss:$8 sps:$4 sm:$0xff]  }
 0x656   :  { %v3944_v52 = vld [vmem:[#allocation13 + $0xf4] ss:$8 sps:$4 sm:$0xff]  }
 0x657   :  { %v2313_v60 = vpack.c.bf16 %v2309_v57, %v2309_v57  ;;  %3512 = vmatprep.mubr.msk.bf16.mxu1 %vm1854_vm1, %v2312_v58  ;;  %2711 = vmatpush1.bf16.msra.mxu0 %v3849_v54 }
 0x658   :  { %2712 = vmatprep.subr.bf16.mxu0 %v3857_v56 }
 0x659   :  { %3513 = vmatmul.mubr.msk.bf16.vlgmr.msra.gmra.mrb[28].mxu1 %vm1854_vm1, %v2313_v60 }
 0x65a   :  { %2976 = vmatpush1.bf16.msra.mxu1 %v3852_v59 }
 0x65b   :  { %2977 = vmatprep.subr.bf16.mxu1 %v3860_v62  ;;  %2713 = vmatpush1.bf16.msra.mxu0 %v3855_v61 }
 0x65c   :  { %2714 = vmatprep.subr.bf16.mxu0 %v3863_v63 }
 0x65e   :  { %2978 = vmatpush1.bf16.msra.mxu1 %v3858_v0 }
 0x65f   :  { %2979 = vmatprep.subr.bf16.mxu1 %v3866_v2  ;;  %2715 = vmatpush1.bf16.msra.mxu0 %v3861_v1 }
 0x660   :  { %2716 = vmatprep.subr.bf16.mxu0 %v3869_v3 }
 0x662   :  { %2980 = vmatpush1.bf16.msra.mxu1 %v3864_v4  ;;  %v3939_v4 = vld [vmem:[#allocation3] ss:$8 sps:$4 sm:$0xff]  }
 0x663   :  { %2981 = vmatprep.subr.bf16.mxu1 %v3872_v7  ;;  %2717 = vmatpush1.bf16.msra.mxu0 %v3867_v6  ;;  %v3945_v7 = vld [vmem:[#allocation3 + $0x10] ss:$24 sps:$4 sm:$0xff]  }
 0x664   :  { %2718 = vmatprep.subr.bf16.mxu0 %v3875_v8 }
 0x666   :  { %2982 = vmatpush1.bf16.msra.mxu1 %v3870_v9 }
 0x667   :  { %2983 = vmatprep.subr.bf16.mxu1 %v3878_v11  ;;  %2719 = vmatpush1.bf16.msra.mxu0 %v3873_v10  ;;  %v3950_v10 = vld [vmem:[#allocation3 + $0x18] ss:$8 sps:$4 sm:$0xff]   ;;  %v2518_v11 = vlaneseq }
 0x668   :  { %2720 = vmatprep.subr.bf16.mxu0 %v3881_v12 }
 0x669   :  { %v2519_v12 = vshrl.u32 %v2518_v11, 7 }
 0x66a   :  { %2984 = vmatpush1.bf16.msra.mxu1 %v3876_v13 }
 0x66b   :  { %2985 = vmatprep.subr.bf16.mxu1 %v3884_v15  ;;  %2721 = vmatpush1.bf16.msra.mxu0 %v3879_v14  ;;  %v2520_v13 = vsub.s32 0, %v2519_v12  ;;  %v2516_v14 = vld [vmem:[%s4454_s5] sm:$0x3]  ;;  %v2524_v15 = vsub.s32 1, %v2519_v12  ;;  %s4199_s5 = smov [#allocation16]  }
 0x66c   :  { %2722 = vmatprep.subr.bf16.mxu0 %v3887_v16  ;;  %s3047_s28 = sshll.u32 %s4199_s5, 4  ;;  %s3048_s28 = int_to_ptr.vmem [resolvable:$true] %s3047_s28 }
 0x66d   :  { %v2521_v16 = vrot.slane %v2516_v14, %v2520_v13  ;;  %s4131_s24 = scalar_lea.vmem %s3048_s28, 512  ;;  %p4136_p7 = scmp.lt.s32.totalorder %s3048_s28, %s3048_s28 }
 0x66e   :  { %2986 = vmatpush1.bf16.msra.mxu1 %v3882_v17  ;;  %v2525_v17 = vrot.slane %v2516_v14, %v2524_v15  ;;  %p4132_p6 = scmp.ne.s32.totalorder %s3048_s28, %s4131_s24  ;;  %p4137_p8 = scmp.lt.s32.totalorder %s4131_s24, %s4131_s24 }
 0x66f   :  { %2987 = vmatprep.subr.bf16.mxu1 %v3890_v19  ;;  %2723 = vmatpush1.bf16.msra.mxu0 %v3885_v18  ;;  %v2793_v18 = vld [vmem:[%s4456_s7] sm:$0x3]  ;;  %s4200_s7 = smov [#allocation15]  }
 0x670   :  { %2724 = vmatprep.subr.bf16.mxu0 %v3893_v20  ;;  %s3035_s3 = sshll.u32 %s4200_s7, 4  ;;  %p4138_p9 = por %p4137_p8, %p4136_p7  ;;  %s3036_s3 = int_to_ptr.vmem [resolvable:$true] %s3035_s3 }
 0x672   :  { %2988 = vmatpush1.bf16.msra.mxu1 %v3888_v21  ;;  %p4139_p10 = pnand %p4138_p9, %p4132_p6 }
 0x673   :  { %2989 = vmatprep.subr.bf16.mxu1 %v3896_v27  ;;  %2725 = vmatpush1.bf16.msra.mxu0 %v3891_v23  ;;  %v2798_v23 = vrot.slane %v2793_v18, %v2520_v13 }
 0x674   :  { %2726 = vmatprep.subr.bf16.mxu0 %v3899_v28 }
 0x676   :  { %2990 = vmatpush1.bf16.msra.mxu1 %v3894_v30  ;;  %v2802_v30 = vrot.slane %v2793_v18, %v2524_v15 }
 0x677   :  { %2991 = vmatprep.subr.bf16.mxu1 %v3902_v32  ;;  %2727 = vmatpush1.bf16.msra.mxu0 %v3897_v31 }
 0x678   :  { %2728 = vmatprep.subr.bf16.mxu0 %v3905_v5 }
 0x67a   :  { %2992 = vmatpush1.bf16.msra.mxu1 %v3900_v33 }
 0x67b   :  { %2993 = vmatprep.subr.bf16.mxu1 %v3908_v26  ;;  %2729 = vmatpush1.bf16.msra.mxu0 %v3903_v34 }
 0x67c   :  { %2730 = vmatprep.subr.bf16.mxu0 %v3911_v22 }
 0x67e   :  { %2994 = vmatpush1.bf16.msra.mxu1 %v3906_v24 }
 0x67f   :  { %2995 = vmatprep.subr.bf16.mxu1 %v3914_v36  ;;  %2731 = vmatpush1.bf16.msra.mxu0 %v3909_v35 }
 0x680   :  { %2732 = vmatprep.subr.bf16.mxu0 %v3917_v25 }
 0x682   :  { %2996 = vmatpush1.bf16.msra.mxu1 %v3912_v37 }
 0x683   :  { %2997 = vmatprep.subr.bf16.mxu1 %v3920_v38  ;;  %2733 = vmatpush1.bf16.msra.mxu0 %v3915_v39 }
 0x684   :  { %2734 = vmatprep.subr.bf16.mxu0 %v3923_v41 }
 0x686   :  { %2998 = vmatpush1.bf16.msra.mxu1 %v3918_v40 }
 0x687   :  { %2999 = vmatprep.subr.bf16.mxu1 %v3926_v29  ;;  %2735 = vmatpush1.bf16.msra.mxu0 %v3921_v42 }
 0x688   :  { %2736 = vmatprep.subr.bf16.mxu0 %v3929_v44 }
 0x68a   :  { %3000 = vmatpush1.bf16.msra.mxu1 %v3924_v43 }
 0x68b   :  { %3001 = vmatprep.subr.bf16.mxu1 %v3932_v45  ;;  %2737 = vmatpush1.bf16.msra.mxu0 %v3927_v46 }
 0x68c   :  { %2738 = vmatprep.subr.bf16.mxu0 %v3935_v48 }
 0x68e   :  { %3002 = vmatpush1.bf16.msra.mxu1 %v3930_v47 }
 0x68f   :  { %3003 = vmatprep.subr.bf16.mxu1 %v3938_v49  ;;  %2739 = vmatpush1.bf16.msra.mxu0 %v3933_v50 }
 0x692   :  { %3004 = vmatpush1.bf16.msra.mxu1 %v3936_v51 }
 0x693   :  { %3005 = vmatprep.subr.bf16.mxu1 %v3944_v52 }
 0x696   :  { %3006 = vmatpush1.bf16.msra.mxu1 %v3942_v53 }
 0x725   :  { %v3506_v54 = vpop.f32.mrb[32].mxu0 }
 0x726   :  { %v3416_v55 = vpack.c.bf16 %v3506_v54, %v3506_v54  ;;  %v2366_v56 = vpop.f32.mrb[33].mxu0 }
 0x727   :  { %v3414_v57 = vpack.c.bf16 %v2366_v56, %v2366_v56  ;;  %v3507_v58 = vpop.f32.mrb[34].mxu0 }
 0x728   :  { %2474 = vst [vmem:[#allocation3 + $0x14] sm:$0xf] %v3416_v55  ;;  %v2369_v59 = vpop.f32.mrb[35].mxu0 }
 0x729   :  { %2472 = vst [vmem:[#allocation3 + $0x4] sm:$0xf] %v3414_v57  ;;  %v3415_v60 = vpack.c.bf16 %v2369_v59, %v2369_v59 }
 0x72b   :  { %2473 = vst [vmem:[#allocation3 + $0xc] sm:$0xf] %v3415_v60 }
 0x72c   :  { %v3514_v61 = vpop.f32.mrb[28].mxu1 }
 0x72d   :  { %v3419_v62 = vpack.c.bf16 %v3514_v61, %v3514_v61  ;;  %v2432_v63 = vpop.f32.mrb[29].mxu1 }
 0x72e   :  { %v3417_v0 = vpack.c.bf16 %v2432_v63, %v2432_v63  ;;  %v3515_v1 = vpop.f32.mrb[30].mxu1 }
 0x72f   :  { %2477 = vst [vmem:[#allocation3 + $0x2c] sm:$0xf] %v3419_v62  ;;  %v2435_v2 = vpop.f32.mrb[31].mxu1 }
 0x730   :  { %2475 = vst [vmem:[#allocation3 + $0x1c] sm:$0xf] %v3417_v0  ;;  %v3418_v3 = vpack.c.bf16 %v2435_v2, %v2435_v2 }
 0x732   :  { %2476 = vst [vmem:[#allocation3 + $0x24] sm:$0xf] %v3418_v3  ;;  %v3941_v6 = vld [vmem:[#allocation3 + $0x4] ss:$8 sps:$4 sm:$0xff]  }
 0x733   :  { %2740 = vmatprep.mubr.bf16.mxu0 %v3941_v6 }
 0x734   :  { %2741 = vmatmul.mubr.bf16.vlgmr.msra.gmra.mrb[36].mxu0 %v3939_v4 }
 0x736   :  { %v3947_v8 = vld [vmem:[#allocation3 + $0x14] ss:$24 sps:$4 sm:$0xff]  }
 0x737   :  { %3007 = vmatprep.mubr.bf16.mxu1 %v3947_v8 }
 0x738   :  { %3008 = vmatmul.mubr.bf16.vlgmr.msra.gmra.mrb[32].mxu1 %v3945_v7 }
 0x739   :  { %v3948_v9 = vld [vmem:[#allocation3 + $0x1c] ss:$8 sps:$4 sm:$0xff]  }
 0x73a   :  { %2750 = vmatprep.mubr.bf16.mxu0 %v3948_v9 }
 0x73c   :  { %2751 = vmatmul.mubr.bf16.gmra.mrb[40].mxu0 %v3950_v10 }
 0x807   :  { %v2742_v19 = vpop.f32.mrb[36].mxu0 }
 0x808   :  { %v2743_v20 = vadd.f32 %v2742_v19, %v2521_v16  ;;  %v2744_v21 = vpop.f32.mrb[37].mxu0 }
 0x809   :  { %v2745_v27 = vadd.f32 %v2744_v21, %v2525_v17  ;;  %v2746_v28 = vpop.f32.mrb[38].mxu0 }
 0x80a   :  { %3018 = vst [vmem:[#allocation15] sm:$0xff] %v2743_v20  ;;  %v2747_v31 = vadd.f32 %v2746_v28, %v2521_v16  ;;  %v2748_v32 = vpop.f32.mrb[39].mxu0 }
 0x80b   :  { %3019 = vst [vmem:[#allocation15 + $0x8] sm:$0xff] %v2745_v27  ;;  %v2749_v5 = vadd.f32 %v2748_v32, %v2525_v17  ;;  %v3009_v33 = vpop.f32.mrb[32].mxu1 }
 0x80c   :  { %3020 = vst [vmem:[#allocation15 + $0x10] sm:$0xff] %v2747_v31  ;;  %v3010_v34 = vadd.f32 %v3009_v33, %v2798_v23  ;;  %v3011_v26 = vpop.f32.mrb[33].mxu1 }
 0x80d   :  { %3021 = vst [vmem:[#allocation15 + $0x18] sm:$0xff] %v2749_v5  ;;  %v3012_v22 = vadd.f32 %v3011_v26, %v2802_v30  ;;  %v3013_v24 = vpop.f32.mrb[34].mxu1 }
 0x80e   :  { %3026 = vst [vmem:[#allocation16] sm:$0xff] %v3010_v34  ;;  %v3014_v35 = vadd.f32 %v3013_v24, %v2798_v23  ;;  %v3015_v36 = vpop.f32.mrb[35].mxu1 }
 0x80f   :  { %3027 = vst [vmem:[#allocation16 + $0x8] sm:$0xff] %v3012_v22  ;;  %v3016_v37 = vadd.f32 %v3015_v36, %v2802_v30  ;;  %v2752_v25 = vpop.f32.mrb[40].mxu0 }
 0x810   :  { %3028 = vst [vmem:[#allocation16 + $0x10] sm:$0xff] %v3014_v35  ;;  %v2753_v38 = vadd.f32 %v2752_v25, %v2521_v16  ;;  %v2754_v39 = vpop.f32.mrb[41].mxu0 }
 0x811   :  { %3029 = vst [vmem:[#allocation16 + $0x18] sm:$0xff] %v3016_v37  ;;  %v2755_v40 = vadd.f32 %v2754_v39, %v2525_v17  ;;  %v2756_v41 = vpop.f32.mrb[42].mxu0 }
 0x812   :  { %3022 = vst [vmem:[#allocation15 + $0x20] sm:$0xff] %v2753_v38  ;;  %v2757_v29 = vadd.f32 %v2756_v41, %v2521_v16  ;;  %v2758_v42 = vpop.f32.mrb[43].mxu0 }
 0x813   :  { %4142 = shalt.err (!%p4139_p10)
}
 0x814   :  { %s4143_s2 = scalar_lea.hbm %s4458_s9, 512 }
 0x815   :  { %p4144_p11 = scmp.ne.s32.totalorder %s4458_s9, %s4143_s2  ;;  %p4147_p12 = scmp.lt.u32.totalorder %s4143_s2, %s4458_s9 }
 0x817   :  { %p4149_p13 = pnand %p4147_p12, %p4144_p11 }
 0x819   :  { %4152 = shalt.err (!%p4149_p13)
}
 0x81a   :  { %3053 = dma.vmem_to_hbm [thread:$0]  %s3048_s28, 512, %s4458_s9, [#allocation17], %s4188_s19, %s4188_s19, %s4189_s20   ;;  %3023 = vst [vmem:[#allocation15 + $0x28] sm:$0xff] %v2755_v40  ;;  %v2759_v43 = vadd.f32 %v2758_v42, %v2525_v17  ;;  %3024 = vst [vmem:[#allocation15 + $0x30] sm:$0xff] %v2757_v29 }
 0x81b   :  { %s4153_s16 = scalar_lea.vmem %s3036_s3, 1024  ;;  %p4158_p1 = scmp.lt.s32.totalorder %s3036_s3, %s3036_s3 }
 0x81c   :  { %3025 = vst [vmem:[#allocation15 + $0x38] sm:$0xff] %v2759_v43  ;;  %p4154_p0 = scmp.ne.s32.totalorder %s3036_s3, %s4153_s16  ;;  %p4159_p2 = scmp.lt.s32.totalorder %s4153_s16, %s4153_s16 }
 0x81e   :  { %p4160_p3 = por %p4159_p2, %p4158_p1 }
 0x820   :  { %p4161_p4 = pnand %p4160_p3, %p4154_p0 }
 0x822   :  { %4164 = shalt.err (!%p4161_p4)
}
 0x823   :  { %s4165_s21 = scalar_lea.hbm %s4457_s8, 1024 }
 0x824   :  { %p4166_p5 = scmp.ne.s32.totalorder %s4457_s8, %s4165_s21  ;;  %p4169_p6 = scmp.lt.u32.totalorder %s4165_s21, %s4457_s8 }
 0x826   :  { %p4171_p7 = pnand %p4169_p6, %p4166_p5 }
 0x828   :  { %4174 = shalt.err (!%p4171_p7)
}
 0x829   :  { %3041 = dma.vmem_to_hbm [thread:$0]  %s3036_s3, 1024, %s4457_s8, [#allocation6], %s4188_s19, %s4188_s19, %s4189_s20  }
 0x82a   :  { %4183 = dma.done.wait [#allocation6], 1024  }
 0x82b   :  { %4184 = vsyncadd [#allocation6], 4294966272 }
 0x82c   :  { %4185 = dma.done.wait [#allocation17], 512  }
 0x82d   :  { %4186 = vsyncadd [#allocation17], 4294966784 }
 0x82e   :  { %3060 = vsyncpa [#allocation5], 1 }
 0x82f   :  { %3061 = vsyncpa [#allocation8], 1 }
 0x830   :  { %3062 = vsyncpa [#allocation11], 1 }
 0x831   :  { %3063 = vsyncpa [#allocation14], 1 }
 0x832   :  { %3064 = vsyncpa [#allocation6], 1 }
 0x833   :  { %3065 = vsyncpa [#allocation17], 1 }

</bundles_post_ra>
